<compile_context>
chip_gen: v7x
topology: tpu7x:2x2x1
jax: 0.10.0
libtpu: 0.0.40
codegen_flags: <defaults>
</compile_context>

<pallas_src>
import math
import numpy as np

import jax
import jax.numpy as jnp
from jax import lax
from jax.experimental import pallas as pl
from jax.experimental.pallas import tpu as pltpu

# ----------------------------- model hyper-params ---------------------------
B = 2
C_IN = 3
H = W = 32
PATCH = 8
HP, WP = H // PATCH, W // PATCH     # 4, 4
N_TOK = HP * WP                     # 16 tokens per image
BN = B * N_TOK                      # 32 tokens total (batch folded)
CPP = C_IN * PATCH * PATCH          # 192
D = 32                              # embed dim
HEADS = 4
DH = D // HEADS                     # 8
DEPTH = 2
MLP_H = 4 * D                       # 128
NUM_CLASSES = 4
LN_EPS = 1e-6
ATT_SCALE = 1.0 / math.sqrt(DH)


# ------------------------- packed-weight slab layout -------------------------
def _build_layout():
    l32, l128 = [], []
    l32.append(('w_pe', CPP)); l32.append(('b_pe', 1)); l32.append(('pos', BN))
    for d in range(DEPTH):
        p = f'{d}_'
        l32 += [(p + 'ln1_g', 1), (p + 'ln1_b', 1),
                (p + 'w_q', D), (p + 'b_q', 1),
                (p + 'wkvT', 2 * D), (p + 'b_v', 1),
                (p + 'w_proj', D), (p + 'b_proj', 1),
                (p + 'ln2_g', 1), (p + 'ln2_b', 1),
                (p + 'w_fc2', MLP_H), (p + 'b_fc2', 1)]
        l128 += [(p + 'w_fc1', D), (p + 'b_fc1', 1)]
    l32 += [('norm_g', 1), ('norm_b', 1), ('w_head', D), ('b_head', 1)]
    off32, r = {}, 0
    for n, k in l32:
        off32[n] = (r, k); r += k
    off128, r2 = {}, 0
    for n, k in l128:
        off128[n] = (r2, k); r2 += k
    return off32, r, off128, r2


OFF32, ROWS32, OFF128, ROWS128 = _build_layout()


# ------------------------------ in-kernel helpers ----------------------------
def _dot(a, b):
    return jnp.dot(a, b, preferred_element_type=jnp.float32)


def _dot_tb(a, b):
    # contract last dim of a with last dim of b: A @ B^T without materializing B^T
    return lax.dot_general(a, b, (((1,), (1,)), ((), ())),
                           preferred_element_type=jnp.float32)


def _layernorm(x, g, b):
    mu = jnp.mean(x, axis=-1, keepdims=True)
    xc = x - mu
    var = jnp.mean(xc * xc, axis=-1, keepdims=True)
    return xc * lax.rsqrt(var + LN_EPS) * g + b


def _gelu_tanh(x):
    # TODO(synk): PyTorch nn.GELU defaults to exact erf GELU; tanh approximation used here.
    c = math.sqrt(2.0 / math.pi)
    return 0.5 * x * (1.0 + jnp.tanh(c * (x + 0.044715 * x * x * x)))


# --------------------------------- fused kernel ------------------------------
def _fused_forward_kernel(xp_ref, w32_ref, w128_ref, mrs_ref, out_ref):
    def W32(name):
        o, n = OFF32[name]
        return w32_ref[o:o + n, :]

    def W128(name):
        o, n = OFF128[name]
        return w128_ref[o:o + n, :]

    # --- patch embedding (conv-as-matmul) + position embedding --------------
    tok = _dot(xp_ref[...], W32('w_pe')) + W32('b_pe') + W32('pos')   # (BN, D)

    # --- transformer blocks (static unroll over DEPTH) -----------------------
    for d in range(DEPTH):
        pr = f'{d}_'
        # ---------- multi-head self-attention (per-image) -------------------
        h = _layernorm(tok, W32(pr + 'ln1_g'), W32(pr + 'ln1_b'))
        q_all = _dot(h, W32(pr + 'w_q')) + W32(pr + 'b_q')            # (BN, D)
        w_proj = W32(pr + 'w_proj')                                   # (D, D)
        wkvT = W32(pr + 'wkvT')                                       # (2D, D): [w_k^T ; w_v^T]
        # Key bias dropped (per-row constant under softmax); value bias folded
        # through the row-stochastic softmax into a row bias after projection.
        bias_row = _dot(W32(pr + 'b_v'), w_proj) + W32(pr + 'b_proj')  # (1, D)
        # Hoist the per-head Q lane slices (shared by both batch elements).
        q_heads = [q_all[:, hd * DH:(hd + 1) * DH] for hd in range(HEADS)]
        rows = []
        for b in range(B):                                            # static batch loop
            h_b = h[b * N_TOK:(b + 1) * N_TOK, :]                     # (N, D) sublane slice
            # K^T / V^T channel-major: heads land on sublane-aligned row blocks.
            kvT = _dot(wkvT, h_b.T)                                   # (2D, N)
            acc = bias_row
            for hd in range(HEADS):                                   # static head loop
                lo = hd * DH
                qh = q_heads[hd][b * N_TOK:(b + 1) * N_TOK, :]        # (N, DH)
                kT = kvT[lo:lo + DH, :]                               # (DH, N)  free slice
                vT = kvT[D + lo:D + lo + DH, :]                       # (DH, N)  free slice
                s = _dot(qh, kT) * ATT_SCALE                          # (N, N)
                s = s - jnp.max(s, axis=-1, keepdims=True)
                e = jnp.exp(s)
                p = e / jnp.sum(e, axis=-1, keepdims=True)            # exact softmax
                oh = _dot_tb(p, vT)                                   # (N, DH) = P @ V
                # concat over heads then @ w_proj == sum_h oh @ w_proj[head rows]
                acc = acc + _dot(oh, w_proj[lo:lo + DH, :])           # (N, D)
            rows.append(tok[b * N_TOK:(b + 1) * N_TOK, :] + acc)      # residual
        tok = jnp.concatenate(rows, axis=0)                           # (BN, D)

        # ---------- MLP -------------------------------------------------------
        h2 = _layernorm(tok, W32(pr + 'ln2_g'), W32(pr + 'ln2_b'))
        h1 = _gelu_tanh(_dot(h2, W128(pr + 'w_fc1')) + W128(pr + 'b_fc1'))  # (BN, MLP_H)
        tok = tok + _dot(h1, W32(pr + 'w_fc2')) + W32(pr + 'b_fc2')   # residual

    # --- backbone final norm + 1x1-conv decode head ---------------------------
    tok = _layernorm(tok, W32('norm_g'), W32('norm_b'))
    o, n = OFF32['w_head']
    w_head = w32_ref[o:o + n, 0:NUM_CLASSES]                          # (D, NC)
    o, n = OFF32['b_head']
    b_head = w32_ref[o:o + n, 0:NUM_CLASSES]                          # (1, NC)
    logits = _dot(tok, w_head) + b_head                               # (BN, NC)

    # --- fused bilinear resize (align_corners=False), lane-dense (8,1024) ----
    mrs = mrs_ref[...]                                                # (N_TOK, H*W)
    outs = [_dot(logits[b * N_TOK:(b + 1) * N_TOK, :].T, mrs)         # (NC, H*W)
            for b in range(B)]
    out_ref[...] = jnp.concatenate(outs, axis=0).astype(out_ref.dtype)  # (B*NC, H*W)


# ------------------------------ JAX-side setup --------------------------------
def _bilinear_matrix(out_size, in_size):
    """Interp matrix matching torch F.interpolate(mode='bilinear', align_corners=False)."""
    A = np.zeros((out_size, in_size), dtype=np.float32)
    if in_size == 1:
        A[:, 0] = 1.0
        return A
    scale = in_size / out_size
    for i in range(out_size):
        src = max((i + 0.5) * scale - 0.5, 0.0)
        i0 = int(np.floor(src))
        i0 = min(i0, in_size - 1)
        i1 = min(i0 + 1, in_size - 1)
        w = src - i0
        A[i, i0] += 1.0 - w
        A[i, i1] += w
    return A


def init_params(key):
    def nrm(k, shape, std=0.02):
        return std * jax.random.normal(k, shape, dtype=jnp.float32)

    keys = jax.random.split(key, 16)
    it = iter(keys)
    return {
        'w_pe': nrm(next(it), (CPP, D)),
        'b_pe': jnp.zeros((1, D), jnp.float32),
        'pos': nrm(next(it), (N_TOK, D)),
        'ln1_g': jnp.ones((DEPTH, 1, D), jnp.float32),
        'ln1_b': jnp.zeros((DEPTH, 1, D), jnp.float32),
        'w_qkv': nrm(next(it), (DEPTH, D, 3 * D)),
        'b_qkv': jnp.zeros((DEPTH, 1, 3 * D), jnp.float32),
        'w_proj': nrm(next(it), (DEPTH, D, D)),
        'b_proj': jnp.zeros((DEPTH, 1, D), jnp.float32),
        'ln2_g': jnp.ones((DEPTH, 1, D), jnp.float32),
        'ln2_b': jnp.zeros((DEPTH, 1, D), jnp.float32),
        'w_fc1': nrm(next(it), (DEPTH, D, MLP_H)),
        'b_fc1': jnp.zeros((DEPTH, 1, MLP_H), jnp.float32),
        'w_fc2': nrm(next(it), (DEPTH, MLP_H, D)),
        'b_fc2': jnp.zeros((DEPTH, 1, D), jnp.float32),
        'norm_g': jnp.ones((1, D), jnp.float32),
        'norm_b': jnp.zeros((1, D), jnp.float32),
        'w_head': nrm(next(it), (D, NUM_CLASSES)),
        'b_head': jnp.zeros((1, NUM_CLASSES), jnp.float32),
    }


def pack_params(params):
    """One-time host-side packing of all weights into 3 flat lane-friendly slabs."""
    p = {k: np.asarray(v, np.float32) for k, v in params.items()}
    s32 = np.zeros((ROWS32, D), np.float32)
    s128 = np.zeros((ROWS128, MLP_H), np.float32)

    def put32(name, arr):
        o, n = OFF32[name]
        arr = np.asarray(arr, np.float32)
        if arr.shape[1] < D:
            arr = np.pad(arr, ((0, 0), (0, D - arr.shape[1])))
        assert arr.shape == (n, D), (name, arr.shape)
        s32[o:o + n] = arr

    def put128(name, arr):
        o, n = OFF128[name]
        assert arr.shape == (n, MLP_H), (name, arr.shape)
        s128[o:o + n] = arr

    put32('w_pe', p['w_pe']); put32('b_pe', p['b_pe'])
    put32('pos', np.tile(p['pos'], (B, 1)))                 # pre-tiled for folded batch
    for d in range(DEPTH):
        pr = f'{d}_'
        put32(pr + 'ln1_g', p['ln1_g'][d]); put32(pr + 'ln1_b', p['ln1_b'][d])
        wqkv, bqkv = p['w_qkv'][d], p['b_qkv'][d]
        put32(pr + 'w_q', wqkv[:, :D]); put32(pr + 'b_q', bqkv[:, :D])
        # K/V weights stored pre-transposed so per-head slices are sublane-aligned.
        put32(pr + 'wkvT', np.concatenate([wqkv[:, D:2 * D].T, wqkv[:, 2 * D:].T], axis=0))
        # Key bias omitted (no effect under softmax); value bias kept as a row.
        put32(pr + 'b_v', bqkv[:, 2 * D:])
        put32(pr + 'w_proj', p['w_proj'][d]); put32(pr + 'b_proj', p['b_proj'][d])
        put32(pr + 'ln2_g', p['ln2_g'][d]); put32(pr + 'ln2_b', p['ln2_b'][d])
        put32(pr + 'w_fc2', p['w_fc2'][d]); put32(pr + 'b_fc2', p['b_fc2'][d])
        put128(pr + 'w_fc1', p['w_fc1'][d]); put128(pr + 'b_fc1', p['b_fc1'][d])
    put32('norm_g', p['norm_g']); put32('norm_b', p['norm_b'])
    put32('w_head', p['w_head']); put32('b_head', p['b_head'])

    # Combined separable bilinear matrix (align_corners=False):
    # M[p*WP+q, h*W+w] = A_h[h,p] * A_w[w,q], shape (N_TOK, H*W).
    a_h = _bilinear_matrix(H, HP)
    a_w = _bilinear_matrix(W, WP)
    m_resize = np.kron(a_h, a_w).T.astype(np.float32)
    return jnp.asarray(s32), jnp.asarray(s128), jnp.asarray(m_resize)


def cae_v2_seg_forward(x, slab32, slab128, m_resize):
    """x: (B, C, H, W) NCHW float32 -> logits (B, NUM_CLASSES, H, W)."""
    assert x.shape == (B, C_IN, H, W), x.shape

    # One-time input layout plumbing: patchify + fold batch into tokens.
    xp = x.reshape(B, C_IN, HP, PATCH, WP, PATCH)
    xp = jnp.transpose(xp, (0, 2, 4, 1, 3, 5)).reshape(BN, CPP)

    out = pl.pallas_call(
        _fused_forward_kernel,
        out_shape=jax.ShapeDtypeStruct((B * NUM_CLASSES, H * W), jnp.float32),
        grid=(1,),
        in_specs=[
            pl.BlockSpec((BN, CPP), lambda i: (0, 0)),            # patchified input
            pl.BlockSpec((ROWS32, D), lambda i: (0, 0)),          # packed width-32 weights
            pl.BlockSpec((ROWS128, MLP_H), lambda i: (0, 0)),     # packed width-128 weights
            pl.BlockSpec((N_TOK, H * W), lambda i: (0, 0)),       # resize matrix
        ],
        out_specs=pl.BlockSpec((B * NUM_CLASSES, H * W), lambda i: (0, 0)),
        compiler_params=pltpu.CompilerParams(dimension_semantics=("arbitrary",)),
    )(xp, slab32, slab128, m_resize)

    # Lane-dense (B*NC, H*W) slab -> NCHW (contiguous reshape, free).
    return out.reshape(B, NUM_CLASSES, H, W)


# ----------------------------------- main ------------------------------------
if __name__ == "__main__":
    key = jax.random.PRNGKey(0)
    kx, kp = jax.random.split(key)
    x = jax.random.normal(kx, (B, C_IN, H, W), dtype=jnp.float32)
    params = init_params(kp)
    slab32, slab128, m_resize = pack_params(params)

    fwd = jax.jit(cae_v2_seg_forward)
    out = jax.block_until_ready(fwd(x, slab32, slab128, m_resize))

    assert out.shape == (B, NUM_CLASSES, H, W), out.shape
    assert bool(jnp.all(jnp.isfinite(out)))
    print("KERNEL_OK")
</pallas_src>

<mosaic_0001>
module attributes {stable_mosaic.version = 11 : i64} {
  func.func @_fused_forward_kernel(%arg0: i32, %arg1: memref<32x192xf32, #tpu.memory_space<vmem>>, %arg2: memref<788x32xf32, #tpu.memory_space<vmem>>, %arg3: memref<66x128xf32, #tpu.memory_space<vmem>>, %arg4: memref<16x1024xf32, #tpu.memory_space<vmem>>, %arg5: memref<8x1024xf32, #tpu.memory_space<vmem>>) attributes {dimension_semantics = [#tpu.dimension_semantics<arbitrary>], iteration_bounds = array<i64: 1>, scalar_prefetch = 0 : i64, scratch_operands = 0 : i64, tpu.core_type = #tpu.core_type<tc>, window_params = [{pipeline_mode = #tpu.pipeline_mode<synchronous>, transform_indices = @transform_0, window_bounds = array<i64: 32, 192>}, {pipeline_mode = #tpu.pipeline_mode<synchronous>, transform_indices = @transform_1, window_bounds = array<i64: 788, 32>}, {pipeline_mode = #tpu.pipeline_mode<synchronous>, transform_indices = @transform_2, window_bounds = array<i64: 66, 128>}, {pipeline_mode = #tpu.pipeline_mode<synchronous>, transform_indices = @transform_3, window_bounds = array<i64: 16, 1024>}, {pipeline_mode = #tpu.pipeline_mode<synchronous>, transform_indices = @transform_4, window_bounds = array<i64: 8, 1024>}]} {
    %c0 = arith.constant 0 : index
    %c0_0 = arith.constant 0 : index
    %0 = vector.load %arg1[%c0, %c0_0] : memref<32x192xf32, #tpu.memory_space<vmem>>, vector<32x192xf32>
    %c0_1 = arith.constant 0 : index
    %c0_2 = arith.constant 0 : index
    %1 = vector.load %arg2[%c0_1, %c0_2] : memref<788x32xf32, #tpu.memory_space<vmem>>, vector<192x32xf32>
    %cst = arith.constant dense<0.000000e+00> : vector<32x32xf32>
    %2 = tpu.matmul %0, %1, %cst {dimension_numbers = #tpu.dot_dimension_numbers<[1], [0], [0], [1], [0, 0, 1, 1], [], []>} : vector<32x192xf32>, vector<192x32xf32>, vector<32x32xf32> -> vector<32x32xf32>
    %c192 = arith.constant 192 : index
    %c0_3 = arith.constant 0 : index
    %3 = vector.load %arg2[%c192, %c0_3] : memref<788x32xf32, #tpu.memory_space<vmem>>, vector<1x32xf32>
    %4 = vector.broadcast %3 : vector<1x32xf32> to vector<32x32xf32>
    %5 = arith.addf %2, %4 : vector<32x32xf32>
    %c193 = arith.constant 193 : index
    %c0_4 = arith.constant 0 : index
    %6 = vector.load %arg2[%c193, %c0_4] : memref<788x32xf32, #tpu.memory_space<vmem>>, vector<32x32xf32>
    %7 = arith.addf %5, %6 : vector<32x32xf32>
    %c225 = arith.constant 225 : index
    %c0_5 = arith.constant 0 : index
    %8 = vector.load %arg2[%c225, %c0_5] : memref<788x32xf32, #tpu.memory_space<vmem>>, vector<1x32xf32>
    %c226 = arith.constant 226 : index
    %c0_6 = arith.constant 0 : index
    %9 = vector.load %arg2[%c226, %c0_6] : memref<788x32xf32, #tpu.memory_space<vmem>>, vector<1x32xf32>
    %cst_7 = arith.constant dense<0.000000e+00> : vector<32xf32>
    %10 = vector.multi_reduction <add>, %7, %cst_7 [1] : vector<32x32xf32> to vector<32xf32>
    %11 = vector.shape_cast %10 : vector<32xf32> to vector<32x1xf32>
    %cst_8 = arith.constant 3.200000e+01 : f32
    %12 = vector.broadcast %cst_8 : f32 to vector<32x1xf32>
    %13 = arith.divf %11, %12 : vector<32x1xf32>
    %14 = vector.broadcast %13 : vector<32x1xf32> to vector<32x32xf32>
    %15 = arith.subf %7, %14 : vector<32x32xf32>
    %16 = arith.mulf %15, %15 : vector<32x32xf32>
    %cst_9 = arith.constant dense<0.000000e+00> : vector<32xf32>
    %17 = vector.multi_reduction <add>, %16, %cst_9 [1] : vector<32x32xf32> to vector<32xf32>
    %18 = vector.shape_cast %17 : vector<32xf32> to vector<32x1xf32>
    %cst_10 = arith.constant 3.200000e+01 : f32
    %19 = vector.broadcast %cst_10 : f32 to vector<32x1xf32>
    %20 = arith.divf %18, %19 : vector<32x1xf32>
    %cst_11 = arith.constant 9.99999997E-7 : f32
    %21 = vector.broadcast %cst_11 : f32 to vector<32x1xf32>
    %22 = arith.addf %20, %21 : vector<32x1xf32>
    %23 = math.rsqrt %22 : vector<32x1xf32>
    %24 = vector.broadcast %23 : vector<32x1xf32> to vector<32x32xf32>
    %25 = arith.mulf %15, %24 : vector<32x32xf32>
    %26 = vector.broadcast %8 : vector<1x32xf32> to vector<32x32xf32>
    %27 = arith.mulf %25, %26 : vector<32x32xf32>
    %28 = vector.broadcast %9 : vector<1x32xf32> to vector<32x32xf32>
    %29 = arith.addf %27, %28 : vector<32x32xf32>
    %c227 = arith.constant 227 : index
    %c0_12 = arith.constant 0 : index
    %30 = vector.load %arg2[%c227, %c0_12] : memref<788x32xf32, #tpu.memory_space<vmem>>, vector<32x32xf32>
    %cst_13 = arith.constant dense<0.000000e+00> : vector<32x32xf32>
    %31 = tpu.matmul %29, %30, %cst_13 {dimension_numbers = #tpu.dot_dimension_numbers<[1], [0], [0], [1], [0, 0, 1, 1], [], []>} : vector<32x32xf32>, vector<32x32xf32>, vector<32x32xf32> -> vector<32x32xf32>
    %c259 = arith.constant 259 : index
    %c0_14 = arith.constant 0 : index
    %32 = vector.load %arg2[%c259, %c0_14] : memref<788x32xf32, #tpu.memory_space<vmem>>, vector<1x32xf32>
    %33 = vector.broadcast %32 : vector<1x32xf32> to vector<32x32xf32>
    %34 = arith.addf %31, %33 : vector<32x32xf32>
    %c325 = arith.constant 325 : index
    %c0_15 = arith.constant 0 : index
    %35 = vector.load %arg2[%c325, %c0_15] : memref<788x32xf32, #tpu.memory_space<vmem>>, vector<32x32xf32>
    %c260 = arith.constant 260 : index
    %c0_16 = arith.constant 0 : index
    %36 = vector.load %arg2[%c260, %c0_16] : memref<788x32xf32, #tpu.memory_space<vmem>>, vector<64x32xf32>
    %c324 = arith.constant 324 : index
    %c0_17 = arith.constant 0 : index
    %37 = vector.load %arg2[%c324, %c0_17] : memref<788x32xf32, #tpu.memory_space<vmem>>, vector<1x32xf32>
    %cst_18 = arith.constant dense<0.000000e+00> : vector<1x32xf32>
    %38 = tpu.matmul %37, %35, %cst_18 {dimension_numbers = #tpu.dot_dimension_numbers<[1], [0], [0], [1], [0, 0, 1, 1], [], []>} : vector<1x32xf32>, vector<32x32xf32>, vector<1x32xf32> -> vector<1x32xf32>
    %c357 = arith.constant 357 : index
    %c0_19 = arith.constant 0 : index
    %39 = vector.load %arg2[%c357, %c0_19] : memref<788x32xf32, #tpu.memory_space<vmem>>, vector<1x32xf32>
    %40 = arith.addf %38, %39 : vector<1x32xf32>
    %41 = vector.extract_strided_slice %34 {offsets = [0, 0], sizes = [32, 8], strides = [1, 1]} : vector<32x32xf32> to vector<32x8xf32>
    %42 = vector.extract_strided_slice %34 {offsets = [0, 8], sizes = [32, 8], strides = [1, 1]} : vector<32x32xf32> to vector<32x8xf32>
    %43 = vector.extract_strided_slice %34 {offsets = [0, 16], sizes = [32, 8], strides = [1, 1]} : vector<32x32xf32> to vector<32x8xf32>
    %44 = vector.extract_strided_slice %34 {offsets = [0, 24], sizes = [32, 8], strides = [1, 1]} : vector<32x32xf32> to vector<32x8xf32>
    %45 = vector.extract_strided_slice %29 {offsets = [0, 0], sizes = [16, 32], strides = [1, 1]} : vector<32x32xf32> to vector<16x32xf32>
    %46 = tpu.transpose %45, [1, 0] : vector<16x32xf32> -> vector<32x16xf32>
    %cst_20 = arith.constant dense<0.000000e+00> : vector<64x16xf32>
    %47 = tpu.matmul %36, %46, %cst_20 {dimension_numbers = #tpu.dot_dimension_numbers<[1], [0], [0], [1], [0, 0, 1, 1], [], []>} : vector<64x32xf32>, vector<32x16xf32>, vector<64x16xf32> -> vector<64x16xf32>
    %48 = vector.extract_strided_slice %41 {offsets = [0, 0], sizes = [16, 8], strides = [1, 1]} : vector<32x8xf32> to vector<16x8xf32>
    %49 = vector.extract_strided_slice %47 {offsets = [0, 0], sizes = [8, 16], strides = [1, 1]} : vector<64x16xf32> to vector<8x16xf32>
    %50 = vector.extract_strided_slice %47 {offsets = [32, 0], sizes = [8, 16], strides = [1, 1]} : vector<64x16xf32> to vector<8x16xf32>
    %cst_21 = arith.constant dense<0.000000e+00> : vector<16x16xf32>
    %51 = tpu.matmul %48, %49, %cst_21 {dimension_numbers = #tpu.dot_dimension_numbers<[1], [0], [0], [1], [0, 0, 1, 1], [], []>} : vector<16x8xf32>, vector<8x16xf32>, vector<16x16xf32> -> vector<16x16xf32>
    %cst_22 = arith.constant 0.353553385 : f32
    %52 = vector.broadcast %cst_22 : f32 to vector<16x16xf32>
    %53 = arith.mulf %51, %52 : vector<16x16xf32>
    %cst_23 = arith.constant dense<0xFF800000> : vector<16xf32>
    %54 = vector.multi_reduction <maximumf>, %53, %cst_23 [1] : vector<16x16xf32> to vector<16xf32>
    %55 = vector.shape_cast %54 : vector<16xf32> to vector<16x1xf32>
    %56 = vector.broadcast %55 : vector<16x1xf32> to vector<16x16xf32>
    %57 = arith.subf %53, %56 : vector<16x16xf32>
    %58 = math.exp %57 : vector<16x16xf32>
    %cst_24 = arith.constant dense<0.000000e+00> : vector<16xf32>
    %59 = vector.multi_reduction <add>, %58, %cst_24 [1] : vector<16x16xf32> to vector<16xf32>
    %60 = vector.shape_cast %59 : vector<16xf32> to vector<16x1xf32>
    %61 = vector.broadcast %60 : vector<16x1xf32> to vector<16x16xf32>
    %62 = arith.divf %58, %61 : vector<16x16xf32>
    %cst_25 = arith.constant dense<0.000000e+00> : vector<16x8xf32>
    %63 = tpu.matmul %62, %50, %cst_25 {dimension_numbers = #tpu.dot_dimension_numbers<[1], [1], [0], [0], [0, 0, 1, 0], [], []>} : vector<16x16xf32>, vector<8x16xf32>, vector<16x8xf32> -> vector<16x8xf32>
    %64 = vector.extract_strided_slice %35 {offsets = [0, 0], sizes = [8, 32], strides = [1, 1]} : vector<32x32xf32> to vector<8x32xf32>
    %cst_26 = arith.constant dense<0.000000e+00> : vector<16x32xf32>
    %65 = tpu.matmul %63, %64, %cst_26 {dimension_numbers = #tpu.dot_dimension_numbers<[1], [0], [0], [1], [0, 0, 1, 1], [], []>} : vector<16x8xf32>, vector<8x32xf32>, vector<16x32xf32> -> vector<16x32xf32>
    %66 = vector.broadcast %40 : vector<1x32xf32> to vector<16x32xf32>
    %67 = arith.addf %66, %65 : vector<16x32xf32>
    %68 = vector.extract_strided_slice %42 {offsets = [0, 0], sizes = [16, 8], strides = [1, 1]} : vector<32x8xf32> to vector<16x8xf32>
    %69 = vector.extract_strided_slice %47 {offsets = [8, 0], sizes = [8, 16], strides = [1, 1]} : vector<64x16xf32> to vector<8x16xf32>
    %70 = vector.extract_strided_slice %47 {offsets = [40, 0], sizes = [8, 16], strides = [1, 1]} : vector<64x16xf32> to vector<8x16xf32>
    %cst_27 = arith.constant dense<0.000000e+00> : vector<16x16xf32>
    %71 = tpu.matmul %68, %69, %cst_27 {dimension_numbers = #tpu.dot_dimension_numbers<[1], [0], [0], [1], [0, 0, 1, 1], [], []>} : vector<16x8xf32>, vector<8x16xf32>, vector<16x16xf32> -> vector<16x16xf32>
    %cst_28 = arith.constant 0.353553385 : f32
    %72 = vector.broadcast %cst_28 : f32 to vector<16x16xf32>
    %73 = arith.mulf %71, %72 : vector<16x16xf32>
    %cst_29 = arith.constant dense<0xFF800000> : vector<16xf32>
    %74 = vector.multi_reduction <maximumf>, %73, %cst_29 [1] : vector<16x16xf32> to vector<16xf32>
    %75 = vector.shape_cast %74 : vector<16xf32> to vector<16x1xf32>
    %76 = vector.broadcast %75 : vector<16x1xf32> to vector<16x16xf32>
    %77 = arith.subf %73, %76 : vector<16x16xf32>
    %78 = math.exp %77 : vector<16x16xf32>
    %cst_30 = arith.constant dense<0.000000e+00> : vector<16xf32>
    %79 = vector.multi_reduction <add>, %78, %cst_30 [1] : vector<16x16xf32> to vector<16xf32>
    %80 = vector.shape_cast %79 : vector<16xf32> to vector<16x1xf32>
    %81 = vector.broadcast %80 : vector<16x1xf32> to vector<16x16xf32>
    %82 = arith.divf %78, %81 : vector<16x16xf32>
    %cst_31 = arith.constant dense<0.000000e+00> : vector<16x8xf32>
    %83 = tpu.matmul %82, %70, %cst_31 {dimension_numbers = #tpu.dot_dimension_numbers<[1], [1], [0], [0], [0, 0, 1, 0], [], []>} : vector<16x16xf32>, vector<8x16xf32>, vector<16x8xf32> -> vector<16x8xf32>
    %84 = vector.extract_strided_slice %35 {offsets = [8, 0], sizes = [8, 32], strides = [1, 1]} : vector<32x32xf32> to vector<8x32xf32>
    %cst_32 = arith.constant dense<0.000000e+00> : vector<16x32xf32>
    %85 = tpu.matmul %83, %84, %cst_32 {dimension_numbers = #tpu.dot_dimension_numbers<[1], [0], [0], [1], [0, 0, 1, 1], [], []>} : vector<16x8xf32>, vector<8x32xf32>, vector<16x32xf32> -> vector<16x32xf32>
    %86 = arith.addf %67, %85 : vector<16x32xf32>
    %87 = vector.extract_strided_slice %43 {offsets = [0, 0], sizes = [16, 8], strides = [1, 1]} : vector<32x8xf32> to vector<16x8xf32>
    %88 = vector.extract_strided_slice %47 {offsets = [16, 0], sizes = [8, 16], strides = [1, 1]} : vector<64x16xf32> to vector<8x16xf32>
    %89 = vector.extract_strided_slice %47 {offsets = [48, 0], sizes = [8, 16], strides = [1, 1]} : vector<64x16xf32> to vector<8x16xf32>
    %cst_33 = arith.constant dense<0.000000e+00> : vector<16x16xf32>
    %90 = tpu.matmul %87, %88, %cst_33 {dimension_numbers = #tpu.dot_dimension_numbers<[1], [0], [0], [1], [0, 0, 1, 1], [], []>} : vector<16x8xf32>, vector<8x16xf32>, vector<16x16xf32> -> vector<16x16xf32>
    %cst_34 = arith.constant 0.353553385 : f32
    %91 = vector.broadcast %cst_34 : f32 to vector<16x16xf32>
    %92 = arith.mulf %90, %91 : vector<16x16xf32>
    %cst_35 = arith.constant dense<0xFF800000> : vector<16xf32>
    %93 = vector.multi_reduction <maximumf>, %92, %cst_35 [1] : vector<16x16xf32> to vector<16xf32>
    %94 = vector.shape_cast %93 : vector<16xf32> to vector<16x1xf32>
    %95 = vector.broadcast %94 : vector<16x1xf32> to vector<16x16xf32>
    %96 = arith.subf %92, %95 : vector<16x16xf32>
    %97 = math.exp %96 : vector<16x16xf32>
    %cst_36 = arith.constant dense<0.000000e+00> : vector<16xf32>
    %98 = vector.multi_reduction <add>, %97, %cst_36 [1] : vector<16x16xf32> to vector<16xf32>
    %99 = vector.shape_cast %98 : vector<16xf32> to vector<16x1xf32>
    %100 = vector.broadcast %99 : vector<16x1xf32> to vector<16x16xf32>
    %101 = arith.divf %97, %100 : vector<16x16xf32>
    %cst_37 = arith.constant dense<0.000000e+00> : vector<16x8xf32>
    %102 = tpu.matmul %101, %89, %cst_37 {dimension_numbers = #tpu.dot_dimension_numbers<[1], [1], [0], [0], [0, 0, 1, 0], [], []>} : vector<16x16xf32>, vector<8x16xf32>, vector<16x8xf32> -> vector<16x8xf32>
    %103 = vector.extract_strided_slice %35 {offsets = [16, 0], sizes = [8, 32], strides = [1, 1]} : vector<32x32xf32> to vector<8x32xf32>
    %cst_38 = arith.constant dense<0.000000e+00> : vector<16x32xf32>
    %104 = tpu.matmul %102, %103, %cst_38 {dimension_numbers = #tpu.dot_dimension_numbers<[1], [0], [0], [1], [0, 0, 1, 1], [], []>} : vector<16x8xf32>, vector<8x32xf32>, vector<16x32xf32> -> vector<16x32xf32>
    %105 = arith.addf %86, %104 : vector<16x32xf32>
    %106 = vector.extract_strided_slice %44 {offsets = [0, 0], sizes = [16, 8], strides = [1, 1]} : vector<32x8xf32> to vector<16x8xf32>
    %107 = vector.extract_strided_slice %47 {offsets = [24, 0], sizes = [8, 16], strides = [1, 1]} : vector<64x16xf32> to vector<8x16xf32>
    %108 = vector.extract_strided_slice %47 {offsets = [56, 0], sizes = [8, 16], strides = [1, 1]} : vector<64x16xf32> to vector<8x16xf32>
    %cst_39 = arith.constant dense<0.000000e+00> : vector<16x16xf32>
    %109 = tpu.matmul %106, %107, %cst_39 {dimension_numbers = #tpu.dot_dimension_numbers<[1], [0], [0], [1], [0, 0, 1, 1], [], []>} : vector<16x8xf32>, vector<8x16xf32>, vector<16x16xf32> -> vector<16x16xf32>
    %cst_40 = arith.constant 0.353553385 : f32
    %110 = vector.broadcast %cst_40 : f32 to vector<16x16xf32>
    %111 = arith.mulf %109, %110 : vector<16x16xf32>
    %cst_41 = arith.constant dense<0xFF800000> : vector<16xf32>
    %112 = vector.multi_reduction <maximumf>, %111, %cst_41 [1] : vector<16x16xf32> to vector<16xf32>
    %113 = vector.shape_cast %112 : vector<16xf32> to vector<16x1xf32>
    %114 = vector.broadcast %113 : vector<16x1xf32> to vector<16x16xf32>
    %115 = arith.subf %111, %114 : vector<16x16xf32>
    %116 = math.exp %115 : vector<16x16xf32>
    %cst_42 = arith.constant dense<0.000000e+00> : vector<16xf32>
    %117 = vector.multi_reduction <add>, %116, %cst_42 [1] : vector<16x16xf32> to vector<16xf32>
    %118 = vector.shape_cast %117 : vector<16xf32> to vector<16x1xf32>
    %119 = vector.broadcast %118 : vector<16x1xf32> to vector<16x16xf32>
    %120 = arith.divf %116, %119 : vector<16x16xf32>
    %cst_43 = arith.constant dense<0.000000e+00> : vector<16x8xf32>
    %121 = tpu.matmul %120, %108, %cst_43 {dimension_numbers = #tpu.dot_dimension_numbers<[1], [1], [0], [0], [0, 0, 1, 0], [], []>} : vector<16x16xf32>, vector<8x16xf32>, vector<16x8xf32> -> vector<16x8xf32>
    %122 = vector.extract_strided_slice %35 {offsets = [24, 0], sizes = [8, 32], strides = [1, 1]} : vector<32x32xf32> to vector<8x32xf32>
    %cst_44 = arith.constant dense<0.000000e+00> : vector<16x32xf32>
    %123 = tpu.matmul %121, %122, %cst_44 {dimension_numbers = #tpu.dot_dimension_numbers<[1], [0], [0], [1], [0, 0, 1, 1], [], []>} : vector<16x8xf32>, vector<8x32xf32>, vector<16x32xf32> -> vector<16x32xf32>
    %124 = arith.addf %105, %123 : vector<16x32xf32>
    %125 = vector.extract_strided_slice %7 {offsets = [0, 0], sizes = [16, 32], strides = [1, 1]} : vector<32x32xf32> to vector<16x32xf32>
    %126 = arith.addf %125, %124 : vector<16x32xf32>
    %127 = vector.extract_strided_slice %29 {offsets = [16, 0], sizes = [16, 32], strides = [1, 1]} : vector<32x32xf32> to vector<16x32xf32>
    %128 = tpu.transpose %127, [1, 0] : vector<16x32xf32> -> vector<32x16xf32>
    %cst_45 = arith.constant dense<0.000000e+00> : vector<64x16xf32>
    %129 = tpu.matmul %36, %128, %cst_45 {dimension_numbers = #tpu.dot_dimension_numbers<[1], [0], [0], [1], [0, 0, 1, 1], [], []>} : vector<64x32xf32>, vector<32x16xf32>, vector<64x16xf32> -> vector<64x16xf32>
    %130 = vector.extract_strided_slice %41 {offsets = [16, 0], sizes = [16, 8], strides = [1, 1]} : vector<32x8xf32> to vector<16x8xf32>
    %131 = vector.extract_strided_slice %129 {offsets = [0, 0], sizes = [8, 16], strides = [1, 1]} : vector<64x16xf32> to vector<8x16xf32>
    %132 = vector.extract_strided_slice %129 {offsets = [32, 0], sizes = [8, 16], strides = [1, 1]} : vector<64x16xf32> to vector<8x16xf32>
    %cst_46 = arith.constant dense<0.000000e+00> : vector<16x16xf32>
    %133 = tpu.matmul %130, %131, %cst_46 {dimension_numbers = #tpu.dot_dimension_numbers<[1], [0], [0], [1], [0, 0, 1, 1], [], []>} : vector<16x8xf32>, vector<8x16xf32>, vector<16x16xf32> -> vector<16x16xf32>
    %cst_47 = arith.constant 0.353553385 : f32
    %134 = vector.broadcast %cst_47 : f32 to vector<16x16xf32>
    %135 = arith.mulf %133, %134 : vector<16x16xf32>
    %cst_48 = arith.constant dense<0xFF800000> : vector<16xf32>
    %136 = vector.multi_reduction <maximumf>, %135, %cst_48 [1] : vector<16x16xf32> to vector<16xf32>
    %137 = vector.shape_cast %136 : vector<16xf32> to vector<16x1xf32>
    %138 = vector.broadcast %137 : vector<16x1xf32> to vector<16x16xf32>
    %139 = arith.subf %135, %138 : vector<16x16xf32>
    %140 = math.exp %139 : vector<16x16xf32>
    %cst_49 = arith.constant dense<0.000000e+00> : vector<16xf32>
    %141 = vector.multi_reduction <add>, %140, %cst_49 [1] : vector<16x16xf32> to vector<16xf32>
    %142 = vector.shape_cast %141 : vector<16xf32> to vector<16x1xf32>
    %143 = vector.broadcast %142 : vector<16x1xf32> to vector<16x16xf32>
    %144 = arith.divf %140, %143 : vector<16x16xf32>
    %cst_50 = arith.constant dense<0.000000e+00> : vector<16x8xf32>
    %145 = tpu.matmul %144, %132, %cst_50 {dimension_numbers = #tpu.dot_dimension_numbers<[1], [1], [0], [0], [0, 0, 1, 0], [], []>} : vector<16x16xf32>, vector<8x16xf32>, vector<16x8xf32> -> vector<16x8xf32>
    %146 = vector.extract_strided_slice %35 {offsets = [0, 0], sizes = [8, 32], strides = [1, 1]} : vector<32x32xf32> to vector<8x32xf32>
    %cst_51 = arith.constant dense<0.000000e+00> : vector<16x32xf32>
    %147 = tpu.matmul %145, %146, %cst_51 {dimension_numbers = #tpu.dot_dimension_numbers<[1], [0], [0], [1], [0, 0, 1, 1], [], []>} : vector<16x8xf32>, vector<8x32xf32>, vector<16x32xf32> -> vector<16x32xf32>
    %148 = vector.broadcast %40 : vector<1x32xf32> to vector<16x32xf32>
    %149 = arith.addf %148, %147 : vector<16x32xf32>
    %150 = vector.extract_strided_slice %42 {offsets = [16, 0], sizes = [16, 8], strides = [1, 1]} : vector<32x8xf32> to vector<16x8xf32>
    %151 = vector.extract_strided_slice %129 {offsets = [8, 0], sizes = [8, 16], strides = [1, 1]} : vector<64x16xf32> to vector<8x16xf32>
    %152 = vector.extract_strided_slice %129 {offsets = [40, 0], sizes = [8, 16], strides = [1, 1]} : vector<64x16xf32> to vector<8x16xf32>
    %cst_52 = arith.constant dense<0.000000e+00> : vector<16x16xf32>
    %153 = tpu.matmul %150, %151, %cst_52 {dimension_numbers = #tpu.dot_dimension_numbers<[1], [0], [0], [1], [0, 0, 1, 1], [], []>} : vector<16x8xf32>, vector<8x16xf32>, vector<16x16xf32> -> vector<16x16xf32>
    %cst_53 = arith.constant 0.353553385 : f32
    %154 = vector.broadcast %cst_53 : f32 to vector<16x16xf32>
    %155 = arith.mulf %153, %154 : vector<16x16xf32>
    %cst_54 = arith.constant dense<0xFF800000> : vector<16xf32>
    %156 = vector.multi_reduction <maximumf>, %155, %cst_54 [1] : vector<16x16xf32> to vector<16xf32>
    %157 = vector.shape_cast %156 : vector<16xf32> to vector<16x1xf32>
    %158 = vector.broadcast %157 : vector<16x1xf32> to vector<16x16xf32>
    %159 = arith.subf %155, %158 : vector<16x16xf32>
    %160 = math.exp %159 : vector<16x16xf32>
    %cst_55 = arith.constant dense<0.000000e+00> : vector<16xf32>
    %161 = vector.multi_reduction <add>, %160, %cst_55 [1] : vector<16x16xf32> to vector<16xf32>
    %162 = vector.shape_cast %161 : vector<16xf32> to vector<16x1xf32>
    %163 = vector.broadcast %162 : vector<16x1xf32> to vector<16x16xf32>
    %164 = arith.divf %160, %163 : vector<16x16xf32>
    %cst_56 = arith.constant dense<0.000000e+00> : vector<16x8xf32>
    %165 = tpu.matmul %164, %152, %cst_56 {dimension_numbers = #tpu.dot_dimension_numbers<[1], [1], [0], [0], [0, 0, 1, 0], [], []>} : vector<16x16xf32>, vector<8x16xf32>, vector<16x8xf32> -> vector<16x8xf32>
    %166 = vector.extract_strided_slice %35 {offsets = [8, 0], sizes = [8, 32], strides = [1, 1]} : vector<32x32xf32> to vector<8x32xf32>
    %cst_57 = arith.constant dense<0.000000e+00> : vector<16x32xf32>
    %167 = tpu.matmul %165, %166, %cst_57 {dimension_numbers = #tpu.dot_dimension_numbers<[1], [0], [0], [1], [0, 0, 1, 1], [], []>} : vector<16x8xf32>, vector<8x32xf32>, vector<16x32xf32> -> vector<16x32xf32>
    %168 = arith.addf %149, %167 : vector<16x32xf32>
    %169 = vector.extract_strided_slice %43 {offsets = [16, 0], sizes = [16, 8], strides = [1, 1]} : vector<32x8xf32> to vector<16x8xf32>
    %170 = vector.extract_strided_slice %129 {offsets = [16, 0], sizes = [8, 16], strides = [1, 1]} : vector<64x16xf32> to vector<8x16xf32>
    %171 = vector.extract_strided_slice %129 {offsets = [48, 0], sizes = [8, 16], strides = [1, 1]} : vector<64x16xf32> to vector<8x16xf32>
    %cst_58 = arith.constant dense<0.000000e+00> : vector<16x16xf32>
    %172 = tpu.matmul %169, %170, %cst_58 {dimension_numbers = #tpu.dot_dimension_numbers<[1], [0], [0], [1], [0, 0, 1, 1], [], []>} : vector<16x8xf32>, vector<8x16xf32>, vector<16x16xf32> -> vector<16x16xf32>
    %cst_59 = arith.constant 0.353553385 : f32
    %173 = vector.broadcast %cst_59 : f32 to vector<16x16xf32>
    %174 = arith.mulf %172, %173 : vector<16x16xf32>
    %cst_60 = arith.constant dense<0xFF800000> : vector<16xf32>
    %175 = vector.multi_reduction <maximumf>, %174, %cst_60 [1] : vector<16x16xf32> to vector<16xf32>
    %176 = vector.shape_cast %175 : vector<16xf32> to vector<16x1xf32>
    %177 = vector.broadcast %176 : vector<16x1xf32> to vector<16x16xf32>
    %178 = arith.subf %174, %177 : vector<16x16xf32>
    %179 = math.exp %178 : vector<16x16xf32>
    %cst_61 = arith.constant dense<0.000000e+00> : vector<16xf32>
    %180 = vector.multi_reduction <add>, %179, %cst_61 [1] : vector<16x16xf32> to vector<16xf32>
    %181 = vector.shape_cast %180 : vector<16xf32> to vector<16x1xf32>
    %182 = vector.broadcast %181 : vector<16x1xf32> to vector<16x16xf32>
    %183 = arith.divf %179, %182 : vector<16x16xf32>
    %cst_62 = arith.constant dense<0.000000e+00> : vector<16x8xf32>
    %184 = tpu.matmul %183, %171, %cst_62 {dimension_numbers = #tpu.dot_dimension_numbers<[1], [1], [0], [0], [0, 0, 1, 0], [], []>} : vector<16x16xf32>, vector<8x16xf32>, vector<16x8xf32> -> vector<16x8xf32>
    %185 = vector.extract_strided_slice %35 {offsets = [16, 0], sizes = [8, 32], strides = [1, 1]} : vector<32x32xf32> to vector<8x32xf32>
    %cst_63 = arith.constant dense<0.000000e+00> : vector<16x32xf32>
    %186 = tpu.matmul %184, %185, %cst_63 {dimension_numbers = #tpu.dot_dimension_numbers<[1], [0], [0], [1], [0, 0, 1, 1], [], []>} : vector<16x8xf32>, vector<8x32xf32>, vector<16x32xf32> -> vector<16x32xf32>
    %187 = arith.addf %168, %186 : vector<16x32xf32>
    %188 = vector.extract_strided_slice %44 {offsets = [16, 0], sizes = [16, 8], strides = [1, 1]} : vector<32x8xf32> to vector<16x8xf32>
    %189 = vector.extract_strided_slice %129 {offsets = [24, 0], sizes = [8, 16], strides = [1, 1]} : vector<64x16xf32> to vector<8x16xf32>
    %190 = vector.extract_strided_slice %129 {offsets = [56, 0], sizes = [8, 16], strides = [1, 1]} : vector<64x16xf32> to vector<8x16xf32>
    %cst_64 = arith.constant dense<0.000000e+00> : vector<16x16xf32>
    %191 = tpu.matmul %188, %189, %cst_64 {dimension_numbers = #tpu.dot_dimension_numbers<[1], [0], [0], [1], [0, 0, 1, 1], [], []>} : vector<16x8xf32>, vector<8x16xf32>, vector<16x16xf32> -> vector<16x16xf32>
    %cst_65 = arith.constant 0.353553385 : f32
    %192 = vector.broadcast %cst_65 : f32 to vector<16x16xf32>
    %193 = arith.mulf %191, %192 : vector<16x16xf32>
    %cst_66 = arith.constant dense<0xFF800000> : vector<16xf32>
    %194 = vector.multi_reduction <maximumf>, %193, %cst_66 [1] : vector<16x16xf32> to vector<16xf32>
    %195 = vector.shape_cast %194 : vector<16xf32> to vector<16x1xf32>
    %196 = vector.broadcast %195 : vector<16x1xf32> to vector<16x16xf32>
    %197 = arith.subf %193, %196 : vector<16x16xf32>
    %198 = math.exp %197 : vector<16x16xf32>
    %cst_67 = arith.constant dense<0.000000e+00> : vector<16xf32>
    %199 = vector.multi_reduction <add>, %198, %cst_67 [1] : vector<16x16xf32> to vector<16xf32>
    %200 = vector.shape_cast %199 : vector<16xf32> to vector<16x1xf32>
    %201 = vector.broadcast %200 : vector<16x1xf32> to vector<16x16xf32>
    %202 = arith.divf %198, %201 : vector<16x16xf32>
    %cst_68 = arith.constant dense<0.000000e+00> : vector<16x8xf32>
    %203 = tpu.matmul %202, %190, %cst_68 {dimension_numbers = #tpu.dot_dimension_numbers<[1], [1], [0], [0], [0, 0, 1, 0], [], []>} : vector<16x16xf32>, vector<8x16xf32>, vector<16x8xf32> -> vector<16x8xf32>
    %204 = vector.extract_strided_slice %35 {offsets = [24, 0], sizes = [8, 32], strides = [1, 1]} : vector<32x32xf32> to vector<8x32xf32>
    %cst_69 = arith.constant dense<0.000000e+00> : vector<16x32xf32>
    %205 = tpu.matmul %203, %204, %cst_69 {dimension_numbers = #tpu.dot_dimension_numbers<[1], [0], [0], [1], [0, 0, 1, 1], [], []>} : vector<16x8xf32>, vector<8x32xf32>, vector<16x32xf32> -> vector<16x32xf32>
    %206 = arith.addf %187, %205 : vector<16x32xf32>
    %207 = vector.extract_strided_slice %7 {offsets = [16, 0], sizes = [16, 32], strides = [1, 1]} : vector<32x32xf32> to vector<16x32xf32>
    %208 = arith.addf %207, %206 : vector<16x32xf32>
    %209 = tpu.concatenate %126, %208 in 0 : vector<16x32xf32>, vector<16x32xf32> -> vector<32x32xf32>
    %c358 = arith.constant 358 : index
    %c0_70 = arith.constant 0 : index
    %210 = vector.load %arg2[%c358, %c0_70] : memref<788x32xf32, #tpu.memory_space<vmem>>, vector<1x32xf32>
    %c359 = arith.constant 359 : index
    %c0_71 = arith.constant 0 : index
    %211 = vector.load %arg2[%c359, %c0_71] : memref<788x32xf32, #tpu.memory_space<vmem>>, vector<1x32xf32>
    %cst_72 = arith.constant dense<0.000000e+00> : vector<32xf32>
    %212 = vector.multi_reduction <add>, %209, %cst_72 [1] : vector<32x32xf32> to vector<32xf32>
    %213 = vector.shape_cast %212 : vector<32xf32> to vector<32x1xf32>
    %cst_73 = arith.constant 3.200000e+01 : f32
    %214 = vector.broadcast %cst_73 : f32 to vector<32x1xf32>
    %215 = arith.divf %213, %214 : vector<32x1xf32>
    %216 = vector.broadcast %215 : vector<32x1xf32> to vector<32x32xf32>
    %217 = arith.subf %209, %216 : vector<32x32xf32>
    %218 = arith.mulf %217, %217 : vector<32x32xf32>
    %cst_74 = arith.constant dense<0.000000e+00> : vector<32xf32>
    %219 = vector.multi_reduction <add>, %218, %cst_74 [1] : vector<32x32xf32> to vector<32xf32>
    %220 = vector.shape_cast %219 : vector<32xf32> to vector<32x1xf32>
    %cst_75 = arith.constant 3.200000e+01 : f32
    %221 = vector.broadcast %cst_75 : f32 to vector<32x1xf32>
    %222 = arith.divf %220, %221 : vector<32x1xf32>
    %cst_76 = arith.constant 9.99999997E-7 : f32
    %223 = vector.broadcast %cst_76 : f32 to vector<32x1xf32>
    %224 = arith.addf %222, %223 : vector<32x1xf32>
    %225 = math.rsqrt %224 : vector<32x1xf32>
    %226 = vector.broadcast %225 : vector<32x1xf32> to vector<32x32xf32>
    %227 = arith.mulf %217, %226 : vector<32x32xf32>
    %228 = vector.broadcast %210 : vector<1x32xf32> to vector<32x32xf32>
    %229 = arith.mulf %227, %228 : vector<32x32xf32>
    %230 = vector.broadcast %211 : vector<1x32xf32> to vector<32x32xf32>
    %231 = arith.addf %229, %230 : vector<32x32xf32>
    %c0_77 = arith.constant 0 : index
    %c0_78 = arith.constant 0 : index
    %232 = vector.load %arg3[%c0_77, %c0_78] : memref<66x128xf32, #tpu.memory_space<vmem>>, vector<32x128xf32>
    %cst_79 = arith.constant dense<0.000000e+00> : vector<32x128xf32>
    %233 = tpu.matmul %231, %232, %cst_79 {dimension_numbers = #tpu.dot_dimension_numbers<[1], [0], [0], [1], [0, 0, 1, 1], [], []>} : vector<32x32xf32>, vector<32x128xf32>, vector<32x128xf32> -> vector<32x128xf32>
    %c32 = arith.constant 32 : index
    %c0_80 = arith.constant 0 : index
    %234 = vector.load %arg3[%c32, %c0_80] : memref<66x128xf32, #tpu.memory_space<vmem>>, vector<1x128xf32>
    %235 = vector.broadcast %234 : vector<1x128xf32> to vector<32x128xf32>
    %236 = arith.addf %233, %235 : vector<32x128xf32>
    %cst_81 = arith.constant 5.000000e-01 : f32
    %237 = vector.broadcast %cst_81 : f32 to vector<32x128xf32>
    %238 = arith.mulf %237, %236 : vector<32x128xf32>
    %cst_82 = arith.constant 4.471500e-02 : f32
    %239 = vector.broadcast %cst_82 : f32 to vector<32x128xf32>
    %240 = arith.mulf %239, %236 : vector<32x128xf32>
    %241 = arith.mulf %240, %236 : vector<32x128xf32>
    %242 = arith.mulf %241, %236 : vector<32x128xf32>
    %243 = arith.addf %236, %242 : vector<32x128xf32>
    %cst_83 = arith.constant 0.797884583 : f32
    %244 = vector.broadcast %cst_83 : f32 to vector<32x128xf32>
    %245 = arith.mulf %244, %243 : vector<32x128xf32>
    %246 = math.tanh %245 : vector<32x128xf32>
    %cst_84 = arith.constant 1.000000e+00 : f32
    %247 = vector.broadcast %cst_84 : f32 to vector<32x128xf32>
    %248 = arith.addf %247, %246 : vector<32x128xf32>
    %249 = arith.mulf %238, %248 : vector<32x128xf32>
    %c360 = arith.constant 360 : index
    %c0_85 = arith.constant 0 : index
    %250 = vector.load %arg2[%c360, %c0_85] : memref<788x32xf32, #tpu.memory_space<vmem>>, vector<128x32xf32>
    %cst_86 = arith.constant dense<0.000000e+00> : vector<32x32xf32>
    %251 = tpu.matmul %249, %250, %cst_86 {dimension_numbers = #tpu.dot_dimension_numbers<[1], [0], [0], [1], [0, 0, 1, 1], [], []>} : vector<32x128xf32>, vector<128x32xf32>, vector<32x32xf32> -> vector<32x32xf32>
    %252 = arith.addf %209, %251 : vector<32x32xf32>
    %c488 = arith.constant 488 : index
    %c0_87 = arith.constant 0 : index
    %253 = vector.load %arg2[%c488, %c0_87] : memref<788x32xf32, #tpu.memory_space<vmem>>, vector<1x32xf32>
    %254 = vector.broadcast %253 : vector<1x32xf32> to vector<32x32xf32>
    %255 = arith.addf %252, %254 : vector<32x32xf32>
    %c489 = arith.constant 489 : index
    %c0_88 = arith.constant 0 : index
    %256 = vector.load %arg2[%c489, %c0_88] : memref<788x32xf32, #tpu.memory_space<vmem>>, vector<1x32xf32>
    %c490 = arith.constant 490 : index
    %c0_89 = arith.constant 0 : index
    %257 = vector.load %arg2[%c490, %c0_89] : memref<788x32xf32, #tpu.memory_space<vmem>>, vector<1x32xf32>
    %cst_90 = arith.constant dense<0.000000e+00> : vector<32xf32>
    %258 = vector.multi_reduction <add>, %255, %cst_90 [1] : vector<32x32xf32> to vector<32xf32>
    %259 = vector.shape_cast %258 : vector<32xf32> to vector<32x1xf32>
    %cst_91 = arith.constant 3.200000e+01 : f32
    %260 = vector.broadcast %cst_91 : f32 to vector<32x1xf32>
    %261 = arith.divf %259, %260 : vector<32x1xf32>
    %262 = vector.broadcast %261 : vector<32x1xf32> to vector<32x32xf32>
    %263 = arith.subf %255, %262 : vector<32x32xf32>
    %264 = arith.mulf %263, %263 : vector<32x32xf32>
    %cst_92 = arith.constant dense<0.000000e+00> : vector<32xf32>
    %265 = vector.multi_reduction <add>, %264, %cst_92 [1] : vector<32x32xf32> to vector<32xf32>
    %266 = vector.shape_cast %265 : vector<32xf32> to vector<32x1xf32>
    %cst_93 = arith.constant 3.200000e+01 : f32
    %267 = vector.broadcast %cst_93 : f32 to vector<32x1xf32>
    %268 = arith.divf %266, %267 : vector<32x1xf32>
    %cst_94 = arith.constant 9.99999997E-7 : f32
    %269 = vector.broadcast %cst_94 : f32 to vector<32x1xf32>
    %270 = arith.addf %268, %269 : vector<32x1xf32>
    %271 = math.rsqrt %270 : vector<32x1xf32>
    %272 = vector.broadcast %271 : vector<32x1xf32> to vector<32x32xf32>
    %273 = arith.mulf %263, %272 : vector<32x32xf32>
    %274 = vector.broadcast %256 : vector<1x32xf32> to vector<32x32xf32>
    %275 = arith.mulf %273, %274 : vector<32x32xf32>
    %276 = vector.broadcast %257 : vector<1x32xf32> to vector<32x32xf32>
    %277 = arith.addf %275, %276 : vector<32x32xf32>
    %c491 = arith.constant 491 : index
    %c0_95 = arith.constant 0 : index
    %278 = vector.load %arg2[%c491, %c0_95] : memref<788x32xf32, #tpu.memory_space<vmem>>, vector<32x32xf32>
    %cst_96 = arith.constant dense<0.000000e+00> : vector<32x32xf32>
    %279 = tpu.matmul %277, %278, %cst_96 {dimension_numbers = #tpu.dot_dimension_numbers<[1], [0], [0], [1], [0, 0, 1, 1], [], []>} : vector<32x32xf32>, vector<32x32xf32>, vector<32x32xf32> -> vector<32x32xf32>
    %c523 = arith.constant 523 : index
    %c0_97 = arith.constant 0 : index
    %280 = vector.load %arg2[%c523, %c0_97] : memref<788x32xf32, #tpu.memory_space<vmem>>, vector<1x32xf32>
    %281 = vector.broadcast %280 : vector<1x32xf32> to vector<32x32xf32>
    %282 = arith.addf %279, %281 : vector<32x32xf32>
    %c589 = arith.constant 589 : index
    %c0_98 = arith.constant 0 : index
    %283 = vector.load %arg2[%c589, %c0_98] : memref<788x32xf32, #tpu.memory_space<vmem>>, vector<32x32xf32>
    %c524 = arith.constant 524 : index
    %c0_99 = arith.constant 0 : index
    %284 = vector.load %arg2[%c524, %c0_99] : memref<788x32xf32, #tpu.memory_space<vmem>>, vector<64x32xf32>
    %c588 = arith.constant 588 : index
    %c0_100 = arith.constant 0 : index
    %285 = vector.load %arg2[%c588, %c0_100] : memref<788x32xf32, #tpu.memory_space<vmem>>, vector<1x32xf32>
    %cst_101 = arith.constant dense<0.000000e+00> : vector<1x32xf32>
    %286 = tpu.matmul %285, %283, %cst_101 {dimension_numbers = #tpu.dot_dimension_numbers<[1], [0], [0], [1], [0, 0, 1, 1], [], []>} : vector<1x32xf32>, vector<32x32xf32>, vector<1x32xf32> -> vector<1x32xf32>
    %c621 = arith.constant 621 : index
    %c0_102 = arith.constant 0 : index
    %287 = vector.load %arg2[%c621, %c0_102] : memref<788x32xf32, #tpu.memory_space<vmem>>, vector<1x32xf32>
    %288 = arith.addf %286, %287 : vector<1x32xf32>
    %289 = vector.extract_strided_slice %282 {offsets = [0, 0], sizes = [32, 8], strides = [1, 1]} : vector<32x32xf32> to vector<32x8xf32>
    %290 = vector.extract_strided_slice %282 {offsets = [0, 8], sizes = [32, 8], strides = [1, 1]} : vector<32x32xf32> to vector<32x8xf32>
    %291 = vector.extract_strided_slice %282 {offsets = [0, 16], sizes = [32, 8], strides = [1, 1]} : vector<32x32xf32> to vector<32x8xf32>
    %292 = vector.extract_strided_slice %282 {offsets = [0, 24], sizes = [32, 8], strides = [1, 1]} : vector<32x32xf32> to vector<32x8xf32>
    %293 = vector.extract_strided_slice %277 {offsets = [0, 0], sizes = [16, 32], strides = [1, 1]} : vector<32x32xf32> to vector<16x32xf32>
    %294 = tpu.transpose %293, [1, 0] : vector<16x32xf32> -> vector<32x16xf32>
    %cst_103 = arith.constant dense<0.000000e+00> : vector<64x16xf32>
    %295 = tpu.matmul %284, %294, %cst_103 {dimension_numbers = #tpu.dot_dimension_numbers<[1], [0], [0], [1], [0, 0, 1, 1], [], []>} : vector<64x32xf32>, vector<32x16xf32>, vector<64x16xf32> -> vector<64x16xf32>
    %296 = vector.extract_strided_slice %289 {offsets = [0, 0], sizes = [16, 8], strides = [1, 1]} : vector<32x8xf32> to vector<16x8xf32>
    %297 = vector.extract_strided_slice %295 {offsets = [0, 0], sizes = [8, 16], strides = [1, 1]} : vector<64x16xf32> to vector<8x16xf32>
    %298 = vector.extract_strided_slice %295 {offsets = [32, 0], sizes = [8, 16], strides = [1, 1]} : vector<64x16xf32> to vector<8x16xf32>
    %cst_104 = arith.constant dense<0.000000e+00> : vector<16x16xf32>
    %299 = tpu.matmul %296, %297, %cst_104 {dimension_numbers = #tpu.dot_dimension_numbers<[1], [0], [0], [1], [0, 0, 1, 1], [], []>} : vector<16x8xf32>, vector<8x16xf32>, vector<16x16xf32> -> vector<16x16xf32>
    %cst_105 = arith.constant 0.353553385 : f32
    %300 = vector.broadcast %cst_105 : f32 to vector<16x16xf32>
    %301 = arith.mulf %299, %300 : vector<16x16xf32>
    %cst_106 = arith.constant dense<0xFF800000> : vector<16xf32>
    %302 = vector.multi_reduction <maximumf>, %301, %cst_106 [1] : vector<16x16xf32> to vector<16xf32>
    %303 = vector.shape_cast %302 : vector<16xf32> to vector<16x1xf32>
    %304 = vector.broadcast %303 : vector<16x1xf32> to vector<16x16xf32>
    %305 = arith.subf %301, %304 : vector<16x16xf32>
    %306 = math.exp %305 : vector<16x16xf32>
    %cst_107 = arith.constant dense<0.000000e+00> : vector<16xf32>
    %307 = vector.multi_reduction <add>, %306, %cst_107 [1] : vector<16x16xf32> to vector<16xf32>
    %308 = vector.shape_cast %307 : vector<16xf32> to vector<16x1xf32>
    %309 = vector.broadcast %308 : vector<16x1xf32> to vector<16x16xf32>
    %310 = arith.divf %306, %309 : vector<16x16xf32>
    %cst_108 = arith.constant dense<0.000000e+00> : vector<16x8xf32>
    %311 = tpu.matmul %310, %298, %cst_108 {dimension_numbers = #tpu.dot_dimension_numbers<[1], [1], [0], [0], [0, 0, 1, 0], [], []>} : vector<16x16xf32>, vector<8x16xf32>, vector<16x8xf32> -> vector<16x8xf32>
    %312 = vector.extract_strided_slice %283 {offsets = [0, 0], sizes = [8, 32], strides = [1, 1]} : vector<32x32xf32> to vector<8x32xf32>
    %cst_109 = arith.constant dense<0.000000e+00> : vector<16x32xf32>
    %313 = tpu.matmul %311, %312, %cst_109 {dimension_numbers = #tpu.dot_dimension_numbers<[1], [0], [0], [1], [0, 0, 1, 1], [], []>} : vector<16x8xf32>, vector<8x32xf32>, vector<16x32xf32> -> vector<16x32xf32>
    %314 = vector.broadcast %288 : vector<1x32xf32> to vector<16x32xf32>
    %315 = arith.addf %314, %313 : vector<16x32xf32>
    %316 = vector.extract_strided_slice %290 {offsets = [0, 0], sizes = [16, 8], strides = [1, 1]} : vector<32x8xf32> to vector<16x8xf32>
    %317 = vector.extract_strided_slice %295 {offsets = [8, 0], sizes = [8, 16], strides = [1, 1]} : vector<64x16xf32> to vector<8x16xf32>
    %318 = vector.extract_strided_slice %295 {offsets = [40, 0], sizes = [8, 16], strides = [1, 1]} : vector<64x16xf32> to vector<8x16xf32>
    %cst_110 = arith.constant dense<0.000000e+00> : vector<16x16xf32>
    %319 = tpu.matmul %316, %317, %cst_110 {dimension_numbers = #tpu.dot_dimension_numbers<[1], [0], [0], [1], [0, 0, 1, 1], [], []>} : vector<16x8xf32>, vector<8x16xf32>, vector<16x16xf32> -> vector<16x16xf32>
    %cst_111 = arith.constant 0.353553385 : f32
    %320 = vector.broadcast %cst_111 : f32 to vector<16x16xf32>
    %321 = arith.mulf %319, %320 : vector<16x16xf32>
    %cst_112 = arith.constant dense<0xFF800000> : vector<16xf32>
    %322 = vector.multi_reduction <maximumf>, %321, %cst_112 [1] : vector<16x16xf32> to vector<16xf32>
    %323 = vector.shape_cast %322 : vector<16xf32> to vector<16x1xf32>
    %324 = vector.broadcast %323 : vector<16x1xf32> to vector<16x16xf32>
    %325 = arith.subf %321, %324 : vector<16x16xf32>
    %326 = math.exp %325 : vector<16x16xf32>
    %cst_113 = arith.constant dense<0.000000e+00> : vector<16xf32>
    %327 = vector.multi_reduction <add>, %326, %cst_113 [1] : vector<16x16xf32> to vector<16xf32>
    %328 = vector.shape_cast %327 : vector<16xf32> to vector<16x1xf32>
    %329 = vector.broadcast %328 : vector<16x1xf32> to vector<16x16xf32>
    %330 = arith.divf %326, %329 : vector<16x16xf32>
    %cst_114 = arith.constant dense<0.000000e+00> : vector<16x8xf32>
    %331 = tpu.matmul %330, %318, %cst_114 {dimension_numbers = #tpu.dot_dimension_numbers<[1], [1], [0], [0], [0, 0, 1, 0], [], []>} : vector<16x16xf32>, vector<8x16xf32>, vector<16x8xf32> -> vector<16x8xf32>
    %332 = vector.extract_strided_slice %283 {offsets = [8, 0], sizes = [8, 32], strides = [1, 1]} : vector<32x32xf32> to vector<8x32xf32>
    %cst_115 = arith.constant dense<0.000000e+00> : vector<16x32xf32>
    %333 = tpu.matmul %331, %332, %cst_115 {dimension_numbers = #tpu.dot_dimension_numbers<[1], [0], [0], [1], [0, 0, 1, 1], [], []>} : vector<16x8xf32>, vector<8x32xf32>, vector<16x32xf32> -> vector<16x32xf32>
    %334 = arith.addf %315, %333 : vector<16x32xf32>
    %335 = vector.extract_strided_slice %291 {offsets = [0, 0], sizes = [16, 8], strides = [1, 1]} : vector<32x8xf32> to vector<16x8xf32>
    %336 = vector.extract_strided_slice %295 {offsets = [16, 0], sizes = [8, 16], strides = [1, 1]} : vector<64x16xf32> to vector<8x16xf32>
    %337 = vector.extract_strided_slice %295 {offsets = [48, 0], sizes = [8, 16], strides = [1, 1]} : vector<64x16xf32> to vector<8x16xf32>
    %cst_116 = arith.constant dense<0.000000e+00> : vector<16x16xf32>
    %338 = tpu.matmul %335, %336, %cst_116 {dimension_numbers = #tpu.dot_dimension_numbers<[1], [0], [0], [1], [0, 0, 1, 1], [], []>} : vector<16x8xf32>, vector<8x16xf32>, vector<16x16xf32> -> vector<16x16xf32>
    %cst_117 = arith.constant 0.353553385 : f32
    %339 = vector.broadcast %cst_117 : f32 to vector<16x16xf32>
    %340 = arith.mulf %338, %339 : vector<16x16xf32>
    %cst_118 = arith.constant dense<0xFF800000> : vector<16xf32>
    %341 = vector.multi_reduction <maximumf>, %340, %cst_118 [1] : vector<16x16xf32> to vector<16xf32>
    %342 = vector.shape_cast %341 : vector<16xf32> to vector<16x1xf32>
    %343 = vector.broadcast %342 : vector<16x1xf32> to vector<16x16xf32>
    %344 = arith.subf %340, %343 : vector<16x16xf32>
    %345 = math.exp %344 : vector<16x16xf32>
    %cst_119 = arith.constant dense<0.000000e+00> : vector<16xf32>
    %346 = vector.multi_reduction <add>, %345, %cst_119 [1] : vector<16x16xf32> to vector<16xf32>
    %347 = vector.shape_cast %346 : vector<16xf32> to vector<16x1xf32>
    %348 = vector.broadcast %347 : vector<16x1xf32> to vector<16x16xf32>
    %349 = arith.divf %345, %348 : vector<16x16xf32>
    %cst_120 = arith.constant dense<0.000000e+00> : vector<16x8xf32>
    %350 = tpu.matmul %349, %337, %cst_120 {dimension_numbers = #tpu.dot_dimension_numbers<[1], [1], [0], [0], [0, 0, 1, 0], [], []>} : vector<16x16xf32>, vector<8x16xf32>, vector<16x8xf32> -> vector<16x8xf32>
    %351 = vector.extract_strided_slice %283 {offsets = [16, 0], sizes = [8, 32], strides = [1, 1]} : vector<32x32xf32> to vector<8x32xf32>
    %cst_121 = arith.constant dense<0.000000e+00> : vector<16x32xf32>
    %352 = tpu.matmul %350, %351, %cst_121 {dimension_numbers = #tpu.dot_dimension_numbers<[1], [0], [0], [1], [0, 0, 1, 1], [], []>} : vector<16x8xf32>, vector<8x32xf32>, vector<16x32xf32> -> vector<16x32xf32>
    %353 = arith.addf %334, %352 : vector<16x32xf32>
    %354 = vector.extract_strided_slice %292 {offsets = [0, 0], sizes = [16, 8], strides = [1, 1]} : vector<32x8xf32> to vector<16x8xf32>
    %355 = vector.extract_strided_slice %295 {offsets = [24, 0], sizes = [8, 16], strides = [1, 1]} : vector<64x16xf32> to vector<8x16xf32>
    %356 = vector.extract_strided_slice %295 {offsets = [56, 0], sizes = [8, 16], strides = [1, 1]} : vector<64x16xf32> to vector<8x16xf32>
    %cst_122 = arith.constant dense<0.000000e+00> : vector<16x16xf32>
    %357 = tpu.matmul %354, %355, %cst_122 {dimension_numbers = #tpu.dot_dimension_numbers<[1], [0], [0], [1], [0, 0, 1, 1], [], []>} : vector<16x8xf32>, vector<8x16xf32>, vector<16x16xf32> -> vector<16x16xf32>
    %cst_123 = arith.constant 0.353553385 : f32
    %358 = vector.broadcast %cst_123 : f32 to vector<16x16xf32>
    %359 = arith.mulf %357, %358 : vector<16x16xf32>
    %cst_124 = arith.constant dense<0xFF800000> : vector<16xf32>
    %360 = vector.multi_reduction <maximumf>, %359, %cst_124 [1] : vector<16x16xf32> to vector<16xf32>
    %361 = vector.shape_cast %360 : vector<16xf32> to vector<16x1xf32>
    %362 = vector.broadcast %361 : vector<16x1xf32> to vector<16x16xf32>
    %363 = arith.subf %359, %362 : vector<16x16xf32>
    %364 = math.exp %363 : vector<16x16xf32>
    %cst_125 = arith.constant dense<0.000000e+00> : vector<16xf32>
    %365 = vector.multi_reduction <add>, %364, %cst_125 [1] : vector<16x16xf32> to vector<16xf32>
    %366 = vector.shape_cast %365 : vector<16xf32> to vector<16x1xf32>
    %367 = vector.broadcast %366 : vector<16x1xf32> to vector<16x16xf32>
    %368 = arith.divf %364, %367 : vector<16x16xf32>
    %cst_126 = arith.constant dense<0.000000e+00> : vector<16x8xf32>
    %369 = tpu.matmul %368, %356, %cst_126 {dimension_numbers = #tpu.dot_dimension_numbers<[1], [1], [0], [0], [0, 0, 1, 0], [], []>} : vector<16x16xf32>, vector<8x16xf32>, vector<16x8xf32> -> vector<16x8xf32>
    %370 = vector.extract_strided_slice %283 {offsets = [24, 0], sizes = [8, 32], strides = [1, 1]} : vector<32x32xf32> to vector<8x32xf32>
    %cst_127 = arith.constant dense<0.000000e+00> : vector<16x32xf32>
    %371 = tpu.matmul %369, %370, %cst_127 {dimension_numbers = #tpu.dot_dimension_numbers<[1], [0], [0], [1], [0, 0, 1, 1], [], []>} : vector<16x8xf32>, vector<8x32xf32>, vector<16x32xf32> -> vector<16x32xf32>
    %372 = arith.addf %353, %371 : vector<16x32xf32>
    %373 = vector.extract_strided_slice %255 {offsets = [0, 0], sizes = [16, 32], strides = [1, 1]} : vector<32x32xf32> to vector<16x32xf32>
    %374 = arith.addf %373, %372 : vector<16x32xf32>
    %375 = vector.extract_strided_slice %277 {offsets = [16, 0], sizes = [16, 32], strides = [1, 1]} : vector<32x32xf32> to vector<16x32xf32>
    %376 = tpu.transpose %375, [1, 0] : vector<16x32xf32> -> vector<32x16xf32>
    %cst_128 = arith.constant dense<0.000000e+00> : vector<64x16xf32>
    %377 = tpu.matmul %284, %376, %cst_128 {dimension_numbers = #tpu.dot_dimension_numbers<[1], [0], [0], [1], [0, 0, 1, 1], [], []>} : vector<64x32xf32>, vector<32x16xf32>, vector<64x16xf32> -> vector<64x16xf32>
    %378 = vector.extract_strided_slice %289 {offsets = [16, 0], sizes = [16, 8], strides = [1, 1]} : vector<32x8xf32> to vector<16x8xf32>
    %379 = vector.extract_strided_slice %377 {offsets = [0, 0], sizes = [8, 16], strides = [1, 1]} : vector<64x16xf32> to vector<8x16xf32>
    %380 = vector.extract_strided_slice %377 {offsets = [32, 0], sizes = [8, 16], strides = [1, 1]} : vector<64x16xf32> to vector<8x16xf32>
    %cst_129 = arith.constant dense<0.000000e+00> : vector<16x16xf32>
    %381 = tpu.matmul %378, %379, %cst_129 {dimension_numbers = #tpu.dot_dimension_numbers<[1], [0], [0], [1], [0, 0, 1, 1], [], []>} : vector<16x8xf32>, vector<8x16xf32>, vector<16x16xf32> -> vector<16x16xf32>
    %cst_130 = arith.constant 0.353553385 : f32
    %382 = vector.broadcast %cst_130 : f32 to vector<16x16xf32>
    %383 = arith.mulf %381, %382 : vector<16x16xf32>
    %cst_131 = arith.constant dense<0xFF800000> : vector<16xf32>
    %384 = vector.multi_reduction <maximumf>, %383, %cst_131 [1] : vector<16x16xf32> to vector<16xf32>
    %385 = vector.shape_cast %384 : vector<16xf32> to vector<16x1xf32>
    %386 = vector.broadcast %385 : vector<16x1xf32> to vector<16x16xf32>
    %387 = arith.subf %383, %386 : vector<16x16xf32>
    %388 = math.exp %387 : vector<16x16xf32>
    %cst_132 = arith.constant dense<0.000000e+00> : vector<16xf32>
    %389 = vector.multi_reduction <add>, %388, %cst_132 [1] : vector<16x16xf32> to vector<16xf32>
    %390 = vector.shape_cast %389 : vector<16xf32> to vector<16x1xf32>
    %391 = vector.broadcast %390 : vector<16x1xf32> to vector<16x16xf32>
    %392 = arith.divf %388, %391 : vector<16x16xf32>
    %cst_133 = arith.constant dense<0.000000e+00> : vector<16x8xf32>
    %393 = tpu.matmul %392, %380, %cst_133 {dimension_numbers = #tpu.dot_dimension_numbers<[1], [1], [0], [0], [0, 0, 1, 0], [], []>} : vector<16x16xf32>, vector<8x16xf32>, vector<16x8xf32> -> vector<16x8xf32>
    %394 = vector.extract_strided_slice %283 {offsets = [0, 0], sizes = [8, 32], strides = [1, 1]} : vector<32x32xf32> to vector<8x32xf32>
    %cst_134 = arith.constant dense<0.000000e+00> : vector<16x32xf32>
    %395 = tpu.matmul %393, %394, %cst_134 {dimension_numbers = #tpu.dot_dimension_numbers<[1], [0], [0], [1], [0, 0, 1, 1], [], []>} : vector<16x8xf32>, vector<8x32xf32>, vector<16x32xf32> -> vector<16x32xf32>
    %396 = vector.broadcast %288 : vector<1x32xf32> to vector<16x32xf32>
    %397 = arith.addf %396, %395 : vector<16x32xf32>
    %398 = vector.extract_strided_slice %290 {offsets = [16, 0], sizes = [16, 8], strides = [1, 1]} : vector<32x8xf32> to vector<16x8xf32>
    %399 = vector.extract_strided_slice %377 {offsets = [8, 0], sizes = [8, 16], strides = [1, 1]} : vector<64x16xf32> to vector<8x16xf32>
    %400 = vector.extract_strided_slice %377 {offsets = [40, 0], sizes = [8, 16], strides = [1, 1]} : vector<64x16xf32> to vector<8x16xf32>
    %cst_135 = arith.constant dense<0.000000e+00> : vector<16x16xf32>
    %401 = tpu.matmul %398, %399, %cst_135 {dimension_numbers = #tpu.dot_dimension_numbers<[1], [0], [0], [1], [0, 0, 1, 1], [], []>} : vector<16x8xf32>, vector<8x16xf32>, vector<16x16xf32> -> vector<16x16xf32>
    %cst_136 = arith.constant 0.353553385 : f32
    %402 = vector.broadcast %cst_136 : f32 to vector<16x16xf32>
    %403 = arith.mulf %401, %402 : vector<16x16xf32>
    %cst_137 = arith.constant dense<0xFF800000> : vector<16xf32>
    %404 = vector.multi_reduction <maximumf>, %403, %cst_137 [1] : vector<16x16xf32> to vector<16xf32>
    %405 = vector.shape_cast %404 : vector<16xf32> to vector<16x1xf32>
    %406 = vector.broadcast %405 : vector<16x1xf32> to vector<16x16xf32>
    %407 = arith.subf %403, %406 : vector<16x16xf32>
    %408 = math.exp %407 : vector<16x16xf32>
    %cst_138 = arith.constant dense<0.000000e+00> : vector<16xf32>
    %409 = vector.multi_reduction <add>, %408, %cst_138 [1] : vector<16x16xf32> to vector<16xf32>
    %410 = vector.shape_cast %409 : vector<16xf32> to vector<16x1xf32>
    %411 = vector.broadcast %410 : vector<16x1xf32> to vector<16x16xf32>
    %412 = arith.divf %408, %411 : vector<16x16xf32>
    %cst_139 = arith.constant dense<0.000000e+00> : vector<16x8xf32>
    %413 = tpu.matmul %412, %400, %cst_139 {dimension_numbers = #tpu.dot_dimension_numbers<[1], [1], [0], [0], [0, 0, 1, 0], [], []>} : vector<16x16xf32>, vector<8x16xf32>, vector<16x8xf32> -> vector<16x8xf32>
    %414 = vector.extract_strided_slice %283 {offsets = [8, 0], sizes = [8, 32], strides = [1, 1]} : vector<32x32xf32> to vector<8x32xf32>
    %cst_140 = arith.constant dense<0.000000e+00> : vector<16x32xf32>
    %415 = tpu.matmul %413, %414, %cst_140 {dimension_numbers = #tpu.dot_dimension_numbers<[1], [0], [0], [1], [0, 0, 1, 1], [], []>} : vector<16x8xf32>, vector<8x32xf32>, vector<16x32xf32> -> vector<16x32xf32>
    %416 = arith.addf %397, %415 : vector<16x32xf32>
    %417 = vector.extract_strided_slice %291 {offsets = [16, 0], sizes = [16, 8], strides = [1, 1]} : vector<32x8xf32> to vector<16x8xf32>
    %418 = vector.extract_strided_slice %377 {offsets = [16, 0], sizes = [8, 16], strides = [1, 1]} : vector<64x16xf32> to vector<8x16xf32>
    %419 = vector.extract_strided_slice %377 {offsets = [48, 0], sizes = [8, 16], strides = [1, 1]} : vector<64x16xf32> to vector<8x16xf32>
    %cst_141 = arith.constant dense<0.000000e+00> : vector<16x16xf32>
    %420 = tpu.matmul %417, %418, %cst_141 {dimension_numbers = #tpu.dot_dimension_numbers<[1], [0], [0], [1], [0, 0, 1, 1], [], []>} : vector<16x8xf32>, vector<8x16xf32>, vector<16x16xf32> -> vector<16x16xf32>
    %cst_142 = arith.constant 0.353553385 : f32
    %421 = vector.broadcast %cst_142 : f32 to vector<16x16xf32>
    %422 = arith.mulf %420, %421 : vector<16x16xf32>
    %cst_143 = arith.constant dense<0xFF800000> : vector<16xf32>
    %423 = vector.multi_reduction <maximumf>, %422, %cst_143 [1] : vector<16x16xf32> to vector<16xf32>
    %424 = vector.shape_cast %423 : vector<16xf32> to vector<16x1xf32>
    %425 = vector.broadcast %424 : vector<16x1xf32> to vector<16x16xf32>
    %426 = arith.subf %422, %425 : vector<16x16xf32>
    %427 = math.exp %426 : vector<16x16xf32>
    %cst_144 = arith.constant dense<0.000000e+00> : vector<16xf32>
    %428 = vector.multi_reduction <add>, %427, %cst_144 [1] : vector<16x16xf32> to vector<16xf32>
    %429 = vector.shape_cast %428 : vector<16xf32> to vector<16x1xf32>
    %430 = vector.broadcast %429 : vector<16x1xf32> to vector<16x16xf32>
    %431 = arith.divf %427, %430 : vector<16x16xf32>
    %cst_145 = arith.constant dense<0.000000e+00> : vector<16x8xf32>
    %432 = tpu.matmul %431, %419, %cst_145 {dimension_numbers = #tpu.dot_dimension_numbers<[1], [1], [0], [0], [0, 0, 1, 0], [], []>} : vector<16x16xf32>, vector<8x16xf32>, vector<16x8xf32> -> vector<16x8xf32>
    %433 = vector.extract_strided_slice %283 {offsets = [16, 0], sizes = [8, 32], strides = [1, 1]} : vector<32x32xf32> to vector<8x32xf32>
    %cst_146 = arith.constant dense<0.000000e+00> : vector<16x32xf32>
    %434 = tpu.matmul %432, %433, %cst_146 {dimension_numbers = #tpu.dot_dimension_numbers<[1], [0], [0], [1], [0, 0, 1, 1], [], []>} : vector<16x8xf32>, vector<8x32xf32>, vector<16x32xf32> -> vector<16x32xf32>
    %435 = arith.addf %416, %434 : vector<16x32xf32>
    %436 = vector.extract_strided_slice %292 {offsets = [16, 0], sizes = [16, 8], strides = [1, 1]} : vector<32x8xf32> to vector<16x8xf32>
    %437 = vector.extract_strided_slice %377 {offsets = [24, 0], sizes = [8, 16], strides = [1, 1]} : vector<64x16xf32> to vector<8x16xf32>
    %438 = vector.extract_strided_slice %377 {offsets = [56, 0], sizes = [8, 16], strides = [1, 1]} : vector<64x16xf32> to vector<8x16xf32>
    %cst_147 = arith.constant dense<0.000000e+00> : vector<16x16xf32>
    %439 = tpu.matmul %436, %437, %cst_147 {dimension_numbers = #tpu.dot_dimension_numbers<[1], [0], [0], [1], [0, 0, 1, 1], [], []>} : vector<16x8xf32>, vector<8x16xf32>, vector<16x16xf32> -> vector<16x16xf32>
    %cst_148 = arith.constant 0.353553385 : f32
    %440 = vector.broadcast %cst_148 : f32 to vector<16x16xf32>
    %441 = arith.mulf %439, %440 : vector<16x16xf32>
    %cst_149 = arith.constant dense<0xFF800000> : vector<16xf32>
    %442 = vector.multi_reduction <maximumf>, %441, %cst_149 [1] : vector<16x16xf32> to vector<16xf32>
    %443 = vector.shape_cast %442 : vector<16xf32> to vector<16x1xf32>
    %444 = vector.broadcast %443 : vector<16x1xf32> to vector<16x16xf32>
    %445 = arith.subf %441, %444 : vector<16x16xf32>
    %446 = math.exp %445 : vector<16x16xf32>
    %cst_150 = arith.constant dense<0.000000e+00> : vector<16xf32>
    %447 = vector.multi_reduction <add>, %446, %cst_150 [1] : vector<16x16xf32> to vector<16xf32>
    %448 = vector.shape_cast %447 : vector<16xf32> to vector<16x1xf32>
    %449 = vector.broadcast %448 : vector<16x1xf32> to vector<16x16xf32>
    %450 = arith.divf %446, %449 : vector<16x16xf32>
    %cst_151 = arith.constant dense<0.000000e+00> : vector<16x8xf32>
    %451 = tpu.matmul %450, %438, %cst_151 {dimension_numbers = #tpu.dot_dimension_numbers<[1], [1], [0], [0], [0, 0, 1, 0], [], []>} : vector<16x16xf32>, vector<8x16xf32>, vector<16x8xf32> -> vector<16x8xf32>
    %452 = vector.extract_strided_slice %283 {offsets = [24, 0], sizes = [8, 32], strides = [1, 1]} : vector<32x32xf32> to vector<8x32xf32>
    %cst_152 = arith.constant dense<0.000000e+00> : vector<16x32xf32>
    %453 = tpu.matmul %451, %452, %cst_152 {dimension_numbers = #tpu.dot_dimension_numbers<[1], [0], [0], [1], [0, 0, 1, 1], [], []>} : vector<16x8xf32>, vector<8x32xf32>, vector<16x32xf32> -> vector<16x32xf32>
    %454 = arith.addf %435, %453 : vector<16x32xf32>
    %455 = vector.extract_strided_slice %255 {offsets = [16, 0], sizes = [16, 32], strides = [1, 1]} : vector<32x32xf32> to vector<16x32xf32>
    %456 = arith.addf %455, %454 : vector<16x32xf32>
    %457 = tpu.concatenate %374, %456 in 0 : vector<16x32xf32>, vector<16x32xf32> -> vector<32x32xf32>
    %c622 = arith.constant 622 : index
    %c0_153 = arith.constant 0 : index
    %458 = vector.load %arg2[%c622, %c0_153] : memref<788x32xf32, #tpu.memory_space<vmem>>, vector<1x32xf32>
    %c623 = arith.constant 623 : index
    %c0_154 = arith.constant 0 : index
    %459 = vector.load %arg2[%c623, %c0_154] : memref<788x32xf32, #tpu.memory_space<vmem>>, vector<1x32xf32>
    %cst_155 = arith.constant dense<0.000000e+00> : vector<32xf32>
    %460 = vector.multi_reduction <add>, %457, %cst_155 [1] : vector<32x32xf32> to vector<32xf32>
    %461 = vector.shape_cast %460 : vector<32xf32> to vector<32x1xf32>
    %cst_156 = arith.constant 3.200000e+01 : f32
    %462 = vector.broadcast %cst_156 : f32 to vector<32x1xf32>
    %463 = arith.divf %461, %462 : vector<32x1xf32>
    %464 = vector.broadcast %463 : vector<32x1xf32> to vector<32x32xf32>
    %465 = arith.subf %457, %464 : vector<32x32xf32>
    %466 = arith.mulf %465, %465 : vector<32x32xf32>
    %cst_157 = arith.constant dense<0.000000e+00> : vector<32xf32>
    %467 = vector.multi_reduction <add>, %466, %cst_157 [1] : vector<32x32xf32> to vector<32xf32>
    %468 = vector.shape_cast %467 : vector<32xf32> to vector<32x1xf32>
    %cst_158 = arith.constant 3.200000e+01 : f32
    %469 = vector.broadcast %cst_158 : f32 to vector<32x1xf32>
    %470 = arith.divf %468, %469 : vector<32x1xf32>
    %cst_159 = arith.constant 9.99999997E-7 : f32
    %471 = vector.broadcast %cst_159 : f32 to vector<32x1xf32>
    %472 = arith.addf %470, %471 : vector<32x1xf32>
    %473 = math.rsqrt %472 : vector<32x1xf32>
    %474 = vector.broadcast %473 : vector<32x1xf32> to vector<32x32xf32>
    %475 = arith.mulf %465, %474 : vector<32x32xf32>
    %476 = vector.broadcast %458 : vector<1x32xf32> to vector<32x32xf32>
    %477 = arith.mulf %475, %476 : vector<32x32xf32>
    %478 = vector.broadcast %459 : vector<1x32xf32> to vector<32x32xf32>
    %479 = arith.addf %477, %478 : vector<32x32xf32>
    %c33 = arith.constant 33 : index
    %c0_160 = arith.constant 0 : index
    %480 = vector.load %arg3[%c33, %c0_160] : memref<66x128xf32, #tpu.memory_space<vmem>>, vector<32x128xf32>
    %cst_161 = arith.constant dense<0.000000e+00> : vector<32x128xf32>
    %481 = tpu.matmul %479, %480, %cst_161 {dimension_numbers = #tpu.dot_dimension_numbers<[1], [0], [0], [1], [0, 0, 1, 1], [], []>} : vector<32x32xf32>, vector<32x128xf32>, vector<32x128xf32> -> vector<32x128xf32>
    %c65 = arith.constant 65 : index
    %c0_162 = arith.constant 0 : index
    %482 = vector.load %arg3[%c65, %c0_162] : memref<66x128xf32, #tpu.memory_space<vmem>>, vector<1x128xf32>
    %483 = vector.broadcast %482 : vector<1x128xf32> to vector<32x128xf32>
    %484 = arith.addf %481, %483 : vector<32x128xf32>
    %cst_163 = arith.constant 5.000000e-01 : f32
    %485 = vector.broadcast %cst_163 : f32 to vector<32x128xf32>
    %486 = arith.mulf %485, %484 : vector<32x128xf32>
    %cst_164 = arith.constant 4.471500e-02 : f32
    %487 = vector.broadcast %cst_164 : f32 to vector<32x128xf32>
    %488 = arith.mulf %487, %484 : vector<32x128xf32>
    %489 = arith.mulf %488, %484 : vector<32x128xf32>
    %490 = arith.mulf %489, %484 : vector<32x128xf32>
    %491 = arith.addf %484, %490 : vector<32x128xf32>
    %cst_165 = arith.constant 0.797884583 : f32
    %492 = vector.broadcast %cst_165 : f32 to vector<32x128xf32>
    %493 = arith.mulf %492, %491 : vector<32x128xf32>
    %494 = math.tanh %493 : vector<32x128xf32>
    %cst_166 = arith.constant 1.000000e+00 : f32
    %495 = vector.broadcast %cst_166 : f32 to vector<32x128xf32>
    %496 = arith.addf %495, %494 : vector<32x128xf32>
    %497 = arith.mulf %486, %496 : vector<32x128xf32>
    %c624 = arith.constant 624 : index
    %c0_167 = arith.constant 0 : index
    %498 = vector.load %arg2[%c624, %c0_167] : memref<788x32xf32, #tpu.memory_space<vmem>>, vector<128x32xf32>
    %cst_168 = arith.constant dense<0.000000e+00> : vector<32x32xf32>
    %499 = tpu.matmul %497, %498, %cst_168 {dimension_numbers = #tpu.dot_dimension_numbers<[1], [0], [0], [1], [0, 0, 1, 1], [], []>} : vector<32x128xf32>, vector<128x32xf32>, vector<32x32xf32> -> vector<32x32xf32>
    %500 = arith.addf %457, %499 : vector<32x32xf32>
    %c752 = arith.constant 752 : index
    %c0_169 = arith.constant 0 : index
    %501 = vector.load %arg2[%c752, %c0_169] : memref<788x32xf32, #tpu.memory_space<vmem>>, vector<1x32xf32>
    %502 = vector.broadcast %501 : vector<1x32xf32> to vector<32x32xf32>
    %503 = arith.addf %500, %502 : vector<32x32xf32>
    %c753 = arith.constant 753 : index
    %c0_170 = arith.constant 0 : index
    %504 = vector.load %arg2[%c753, %c0_170] : memref<788x32xf32, #tpu.memory_space<vmem>>, vector<1x32xf32>
    %c754 = arith.constant 754 : index
    %c0_171 = arith.constant 0 : index
    %505 = vector.load %arg2[%c754, %c0_171] : memref<788x32xf32, #tpu.memory_space<vmem>>, vector<1x32xf32>
    %cst_172 = arith.constant dense<0.000000e+00> : vector<32xf32>
    %506 = vector.multi_reduction <add>, %503, %cst_172 [1] : vector<32x32xf32> to vector<32xf32>
    %507 = vector.shape_cast %506 : vector<32xf32> to vector<32x1xf32>
    %cst_173 = arith.constant 3.200000e+01 : f32
    %508 = vector.broadcast %cst_173 : f32 to vector<32x1xf32>
    %509 = arith.divf %507, %508 : vector<32x1xf32>
    %510 = vector.broadcast %509 : vector<32x1xf32> to vector<32x32xf32>
    %511 = arith.subf %503, %510 : vector<32x32xf32>
    %512 = arith.mulf %511, %511 : vector<32x32xf32>
    %cst_174 = arith.constant dense<0.000000e+00> : vector<32xf32>
    %513 = vector.multi_reduction <add>, %512, %cst_174 [1] : vector<32x32xf32> to vector<32xf32>
    %514 = vector.shape_cast %513 : vector<32xf32> to vector<32x1xf32>
    %cst_175 = arith.constant 3.200000e+01 : f32
    %515 = vector.broadcast %cst_175 : f32 to vector<32x1xf32>
    %516 = arith.divf %514, %515 : vector<32x1xf32>
    %cst_176 = arith.constant 9.99999997E-7 : f32
    %517 = vector.broadcast %cst_176 : f32 to vector<32x1xf32>
    %518 = arith.addf %516, %517 : vector<32x1xf32>
    %519 = math.rsqrt %518 : vector<32x1xf32>
    %520 = vector.broadcast %519 : vector<32x1xf32> to vector<32x32xf32>
    %521 = arith.mulf %511, %520 : vector<32x32xf32>
    %522 = vector.broadcast %504 : vector<1x32xf32> to vector<32x32xf32>
    %523 = arith.mulf %521, %522 : vector<32x32xf32>
    %524 = vector.broadcast %505 : vector<1x32xf32> to vector<32x32xf32>
    %525 = arith.addf %523, %524 : vector<32x32xf32>
    %c755 = arith.constant 755 : index
    %c0_177 = arith.constant 0 : index
    %526 = vector.load %arg2[%c755, %c0_177] : memref<788x32xf32, #tpu.memory_space<vmem>>, vector<32x4xf32>
    %c787 = arith.constant 787 : index
    %c0_178 = arith.constant 0 : index
    %527 = vector.load %arg2[%c787, %c0_178] : memref<788x32xf32, #tpu.memory_space<vmem>>, vector<1x4xf32>
    %cst_179 = arith.constant dense<0.000000e+00> : vector<32x4xf32>
    %528 = tpu.matmul %525, %526, %cst_179 {dimension_numbers = #tpu.dot_dimension_numbers<[1], [0], [0], [1], [0, 0, 1, 1], [], []>} : vector<32x32xf32>, vector<32x4xf32>, vector<32x4xf32> -> vector<32x4xf32>
    %529 = vector.broadcast %527 : vector<1x4xf32> to vector<32x4xf32>
    %530 = arith.addf %528, %529 : vector<32x4xf32>
    %c0_180 = arith.constant 0 : index
    %c0_181 = arith.constant 0 : index
    %531 = vector.load %arg4[%c0_180, %c0_181] : memref<16x1024xf32, #tpu.memory_space<vmem>>, vector<16x1024xf32>
    %532 = vector.extract_strided_slice %530 {offsets = [0, 0], sizes = [16, 4], strides = [1, 1]} : vector<32x4xf32> to vector<16x4xf32>
    %533 = tpu.transpose %532, [1, 0] : vector<16x4xf32> -> vector<4x16xf32>
    %cst_182 = arith.constant dense<0.000000e+00> : vector<4x1024xf32>
    %534 = tpu.matmul %533, %531, %cst_182 {dimension_numbers = #tpu.dot_dimension_numbers<[1], [0], [0], [1], [0, 0, 1, 1], [], []>} : vector<4x16xf32>, vector<16x1024xf32>, vector<4x1024xf32> -> vector<4x1024xf32>
    %535 = vector.extract_strided_slice %530 {offsets = [16, 0], sizes = [16, 4], strides = [1, 1]} : vector<32x4xf32> to vector<16x4xf32>
    %536 = tpu.transpose %535, [1, 0] : vector<16x4xf32> -> vector<4x16xf32>
    %cst_183 = arith.constant dense<0.000000e+00> : vector<4x1024xf32>
    %537 = tpu.matmul %536, %531, %cst_183 {dimension_numbers = #tpu.dot_dimension_numbers<[1], [0], [0], [1], [0, 0, 1, 1], [], []>} : vector<4x16xf32>, vector<16x1024xf32>, vector<4x1024xf32> -> vector<4x1024xf32>
    %538 = tpu.concatenate %534, %537 in 0 : vector<4x1024xf32>, vector<4x1024xf32> -> vector<8x1024xf32>
    %c0_184 = arith.constant 0 : index
    %c0_185 = arith.constant 0 : index
    %539 = vector.load %arg5[%c0_184, %c0_185] : memref<8x1024xf32, #tpu.memory_space<vmem>>, vector<8x1024xf32>
    tpu.vector_store %arg5[%c0_184, %c0_185], %538 {strides = array<i32>} : memref<8x1024xf32, #tpu.memory_space<vmem>>, vector<8x1024xf32>,
    return
  }
  func.func @transform_0(%arg0: i32) -> (i32, i32) {
    %c0_i32 = arith.constant 0 : i32
    %c0_i32_0 = arith.constant 0 : i32
    %c0_i32_1 = arith.constant 0 : i32
    return %c0_i32, %c0_i32_0 : i32, i32
  }
  func.func @transform_1(%arg0: i32) -> (i32, i32) {
    %c0_i32 = arith.constant 0 : i32
    %c0_i32_0 = arith.constant 0 : i32
    %c0_i32_1 = arith.constant 0 : i32
    return %c0_i32, %c0_i32_0 : i32, i32
  }
  func.func @transform_2(%arg0: i32) -> (i32, i32) {
    %c0_i32 = arith.constant 0 : i32
    %c0_i32_0 = arith.constant 0 : i32
    %c0_i32_1 = arith.constant 0 : i32
    return %c0_i32, %c0_i32_0 : i32, i32
  }
  func.func @transform_3(%arg0: i32) -> (i32, i32) {
    %c0_i32 = arith.constant 0 : i32
    %c0_i32_0 = arith.constant 0 : i32
    %c0_i32_1 = arith.constant 0 : i32
    return %c0_i32, %c0_i32_0 : i32, i32
  }
  func.func @transform_4(%arg0: i32) -> (i32, i32) {
    %c0_i32 = arith.constant 0 : i32
    %c0_i32_0 = arith.constant 0 : i32
    %c0_i32_1 = arith.constant 0 : i32
    return %c0_i32, %c0_i32_0 : i32, i32
  }
}

</mosaic_0001>

<bundles_post_ra>
// kernel: cae_v2_seg_forward.1
= control target key start
LH: loop header
LB: loop body
LE: loop exit
PB: predicated region body
PF: predicated region fallthrough
CT: control target
= control target key end

     0   :  { %v8457_v0 = vmov 0.0|0.0   ;;  %vm54_vm0 = vcmask 523264   ;;  %vm162_vm1 = vcmask 261120   ;;  %vm8458_vm3 = vmmov 0   ;;  %s8460_s23 = smov 120   ;;  %s8461_s24 = smov 112   ;;  %s9707_s1 = inlined_call_operand.vmem [shape: f32[788,32], index: 1, kind: input, shape index: {}]   ;;  %s9708_s0 = inlined_call_operand.vmem [shape: f32[32,192], index: 0, kind: input, shape index: {}]   ;;  %s9709_s2 = inlined_call_operand.vmem [shape: f32[66,128], index: 2, kind: input, shape index: {}]   ;;  %s9710_s3 = inlined_call_operand.vmem [shape: f32[16,1024], index: 3, kind: input, shape index: {}]   ;;  %s9711_s4 = inlined_call_operand.vmem [shape: f32[8,1024], index: 4, kind: output, shape index: {}]  }
   0x1   :  { %8027 = vmatprep.subr.bf16.mxu0 %v8457_v0  ;;  %v25_v1 = vld [vmem:[%s9707_s1] sm:$0xff]  ;;  %v26_v2 = vld [vmem:[%s9707_s1 + $0x8] sm:$0xff]  ;;  %v27_v3 = vld [vmem:[%s9707_s1 + $0x10] sm:$0xff]  ;;  %vm554_vm4 = vcmask 64512   ;;  %vm638_vm5 = vcmask 130048   ;;  %s8462_s25 = smov 104  }
   0x2   :  { %v8028_v4 = vpack.c.bf16 %v26_v2, %v25_v1  ;;  %v28_v5 = vld [vmem:[%s9707_s1 + $0x18] sm:$0xff]  ;;  %v29_v7 = vld [vmem:[%s9707_s1 + $0x20] sm:$0xff]  ;;  %v30_v8 = vld [vmem:[%s9707_s1 + $0x28] sm:$0xff]  ;;  %vm7056_vm6 = vcmask 1043456  }
   0x3   :  { %v8031_v6 = vpack.c.bf16 %v28_v5, %v27_v3  ;;  %v8034_v9 = vpack.c.bf16 %v30_v8, %v29_v7  ;;  %v31_v10 = vld [vmem:[%s9707_s1 + $0x30] sm:$0xff]  ;;  %v32_v11 = vld [vmem:[%s9707_s1 + $0x38] sm:$0xff]  ;;  %v18_v12 = vld [vmem:[%s9708_s0 + $0x8] sm:$0xff] }
   0x4   :  { %8029 = vmatpush1.bf16.msra.mxu0 %v8028_v4  ;;  %7078 = vmatprep.mubr.msk.f32.mxu0 %vm54_vm0, %v18_v12  ;;  %v8037_v13 = vpack.c.bf16 %v32_v11, %v31_v10  ;;  %v33_v14 = vld [vmem:[%s9707_s1 + $0x40] sm:$0xff]  ;;  %v34_v15 = vld [vmem:[%s9707_s1 + $0x48] sm:$0xff]  ;;  %v35_v17 = vld [vmem:[%s9707_s1 + $0x50] sm:$0xff] }
   0x5   :  { %8030 = vmatprep.subr.bf16.mxu0 %v8457_v0  ;;  %v8040_v16 = vpack.c.bf16 %v34_v15, %v33_v14  ;;  %v36_v18 = vld [vmem:[%s9707_s1 + $0x58] sm:$0xff]  ;;  %v37_v20 = vld [vmem:[%s9707_s1 + $0x60] sm:$0xff]  ;;  %v38_v21 = vld [vmem:[%s9707_s1 + $0x68] sm:$0xff] }
   0x6   :  { %v8043_v19 = vpack.c.bf16 %v36_v18, %v35_v17  ;;  %v8046_v22 = vpack.c.bf16 %v38_v21, %v37_v20  ;;  %v39_v23 = vld [vmem:[%s9707_s1 + $0x70] sm:$0xff]  ;;  %v40_v24 = vld [vmem:[%s9707_s1 + $0x78] sm:$0xff]  ;;  %v41_v26 = vld [vmem:[%s9707_s1 + $0x80] sm:$0xff] }
   0x7   :  { %v8049_v25 = vpack.c.bf16 %v40_v24, %v39_v23  ;;  %v42_v27 = vld [vmem:[%s9707_s1 + $0x88] sm:$0xff]  ;;  %v43_v29 = vld [vmem:[%s9707_s1 + $0x90] sm:$0xff]  ;;  %v44_v30 = vld [vmem:[%s9707_s1 + $0x98] sm:$0xff] }
   0x8   :  { %8032 = vmatpush1.bf16.msra.mxu0 %v8031_v6  ;;  %v8052_v28 = vpack.c.bf16 %v42_v27, %v41_v26  ;;  %v8055_v31 = vpack.c.bf16 %v44_v30, %v43_v29  ;;  %v45_v32 = vld [vmem:[%s9707_s1 + $0xa0] sm:$0xff]  ;;  %v46_v33 = vld [vmem:[%s9707_s1 + $0xa8] sm:$0xff]  ;;  %v47_v35 = vld [vmem:[%s9707_s1 + $0xb0] sm:$0xff] }
   0x9   :  { %8033 = vmatprep.subr.bf16.mxu0 %v8457_v0  ;;  %v8058_v34 = vpack.c.bf16 %v46_v33, %v45_v32  ;;  %v48_v36 = vld [vmem:[%s9707_s1 + $0xb8] sm:$0xff]  ;;  %v17_v38 = vld [vmem:[%s9708_s0] sm:$0xff]  ;;  %v19_v40 = vld [vmem:[%s9708_s0 + $0x10] sm:$0xff] }
   0xa   :  { %v8061_v37 = vpack.c.bf16 %v48_v36, %v47_v35  ;;  %v20_v39 = vld [vmem:[%s9708_s0 + $0x18] sm:$0xff]  ;;  %v22_v41 = vld [vmem:[%s9708_s0 + $0x28] sm:$0xff]  ;;  %v21_v42 = vld [vmem:[%s9708_s0 + $0x20] sm:$0xff] }
   0xb   :  { %v24_v43 = vld [vmem:[%s9708_s0 + $0x38] sm:$0xff]  ;;  %v23_v44 = vld [vmem:[%s9708_s0 + $0x30] sm:$0xff]  ;;  %v7077_v45 = vld [vmem:[%s9707_s1 + $0xc0] ss:$0 sm:$0xff] }
   0xc   :  { %8035 = vmatpush1.bf16.msra.mxu0 %v8034_v9  ;;  %v152_v47 = vld [vmem:[%s9707_s1 + $0xc1] sm:$0xff]  ;;  %v153_v52 = vld [vmem:[%s9707_s1 + $0xc9] sm:$0xff]  ;;  %v154_v58 = vld [vmem:[%s9707_s1 + $0xd1] sm:$0xff] }
   0xd   :  { %8036 = vmatprep.subr.bf16.mxu0 %v8457_v0  ;;  %v155_v1 = vld [vmem:[%s9707_s1 + $0xd9] sm:$0xff]  ;;  %v232_v27 = vld [vmem:[%s9707_s1 + $0xe3] sm:$0xff]  ;;  %vm8687_vm2 = vmpackc.low %vm162_vm1, %vm162_vm1 }
   0xe   :  { %v234_v30 = vld [vmem:[%s9707_s1 + $0xf3] sm:$0xff] }
  0x10   :  { %8038 = vmatpush1.bf16.msra.mxu0 %v8037_v13 }
  0x11   :  { %8039 = vmatprep.subr.bf16.mxu0 %v8457_v0 }
  0x14   :  { %8041 = vmatpush1.bf16.msra.mxu0 %v8040_v16 }
  0x15   :  { %8042 = vmatprep.subr.bf16.mxu0 %v8457_v0 }
  0x18   :  { %8044 = vmatpush1.bf16.msra.mxu0 %v8043_v19 }
  0x19   :  { %8045 = vmatprep.subr.bf16.mxu0 %v8457_v0 }
  0x1c   :  { %8047 = vmatpush1.bf16.msra.mxu0 %v8046_v22 }
  0x1d   :  { %8048 = vmatprep.subr.bf16.mxu0 %v8457_v0 }
  0x20   :  { %8050 = vmatpush1.bf16.msra.mxu0 %v8049_v25 }
  0x21   :  { %8051 = vmatprep.subr.bf16.mxu0 %v8457_v0 }
  0x24   :  { %8053 = vmatpush1.bf16.msra.mxu0 %v8052_v28  ;;  %v233_v28 = vld [vmem:[%s9707_s1 + $0xeb] sm:$0xff] }
  0x25   :  { %8054 = vmatprep.subr.bf16.mxu0 %v8457_v0  ;;  %v8063_v29 = vpack.c.bf16 %v233_v28, %v232_v27 }
  0x27   :  { %8064 = vmatprep.subr.bf16.mxu1 %v8063_v29 }
  0x28   :  { %8056 = vmatpush1.bf16.msra.mxu0 %v8055_v31  ;;  %v235_v31 = vld [vmem:[%s9707_s1 + $0xfb] sm:$0xff]  ;;  %8066 = vmatpush3.bf16.msra.mxu1 %v8063_v29 }
  0x29   :  { %8057 = vmatprep.subr.bf16.mxu0 %v8457_v0  ;;  %v8067_v32 = vpack.c.bf16 %v235_v31, %v234_v30 }
  0x2b   :  { %8068 = vmatprep.subr.bf16.mxu1 %v8067_v32 }
  0x2c   :  { %8059 = vmatpush1.bf16.msra.mxu0 %v8058_v34  ;;  %8070 = vmatpush3.bf16.msra.mxu1 %v8067_v32 }
  0x2d   :  { %8060 = vmatprep.subr.bf16.mxu0 %v8457_v0  ;;  %8071 = vmatprep.subr.bf16.mxu1 %v8457_v0 }
  0x30   :  { %8062 = vmatpush1.bf16.msra.mxu0 %v8061_v37 }
  0x33   :  { %132 = vmatmul.mubr.f32.vlgmr.msra.gmra.mrb[0].mxu0 %v17_v38 }
  0x34   :  { %7079 = vmatprep.mubr.msk.f32.mxu0 %vm54_vm0, %v20_v39 }
  0x37   :  { %137 = vmatmul.mubr.f32.gmra.mrb[2].mxu0 %v19_v40 }
  0x38   :  { %7080 = vmatprep.mubr.msk.f32.mxu0 %vm54_vm0, %v22_v41 }
  0x3b   :  { %142 = vmatmul.mubr.f32.gmra.mrb[4].mxu0 %v21_v42 }
  0x3c   :  { %7081 = vmatprep.mubr.msk.f32.mxu0 %vm54_vm0, %v24_v43 }
  0x3f   :  { %147 = vmatmul.mubr.f32.gmra.mrb[6].mxu0 %v23_v44 }
 0x106   :  { %v133_v46 = vpop.f32.mrb[0].mxu0 }
 0x107   :  { %v134_v48 = vadd.f32 %v7077_v45, %v133_v46  ;;  %v135_v49 = vpop.f32.mrb[1].mxu0  ;;  %v7082_v46 = vld [vmem:[%s9707_s1 + $0xe1] ss:$0 sm:$0xff] }
 0x109   :  { %v8606_v50 = vadd.f32 %v152_v47, %v134_v48  ;;  %v7083_v48 = vld [vmem:[%s9707_s1 + $0xe2] ss:$0 sm:$0xff] }
 0x10a   :  { %v138_v51 = vpop.f32.mrb[2].mxu0 }
 0x10b   :  { %v139_v53 = vadd.f32 %v7077_v45, %v138_v51  ;;  %v140_v54 = vpop.f32.mrb[3].mxu0  ;;  %v163_v55 = vsel %vm162_vm1, %v8606_v50, 0.0 }
 0x10c   :  { %164 = vadd.xlane.f32.xlu0 %v163_v55  ;;  %v8661_v54 = vld [vmem:[%s9707_s1 + $0x145] sm:$0xff]  ;;  %v8666_v55 = vld [vmem:[%s9707_s1 + $0x14d] sm:$0xff] }
 0x10d   :  { %v8613_v56 = vadd.f32 %v153_v52, %v139_v53 }
 0x10e   :  { %v143_v57 = vpop.f32.mrb[4].mxu0 }
 0x10f   :  { %v144_v59 = vadd.f32 %v7077_v45, %v143_v57  ;;  %v145_v60 = vpop.f32.mrb[5].mxu0  ;;  %v166_v61 = vsel %vm162_vm1, %v8613_v56, 0.0 }
 0x110   :  { %167 = vadd.xlane.f32.xlu0 %v166_v61 }
 0x111   :  { %v8620_v62 = vadd.f32 %v154_v58, %v144_v59  ;;  %v8072_v59 = vpack.c.bf16 %v8666_v55, %v8661_v54 }
 0x112   :  { %v148_v63 = vpop.f32.mrb[6].mxu0 }
 0x113   :  { %v149_v2 = vadd.f32 %v7077_v45, %v148_v63  ;;  %v150_v3 = vpop.f32.mrb[7].mxu0  ;;  %v169_v4 = vsel %vm162_vm1, %v8620_v62, 0.0  ;;  %v8674_v63 = vld [vmem:[%s9707_s1 + $0x155] sm:$0xff] }
 0x114   :  { %170 = vadd.xlane.f32.xlu1 %v169_v4 }
 0x115   :  { %v8627_v5 = vadd.f32 %v155_v1, %v149_v2  ;;  %v8679_v1 = vld [vmem:[%s9707_s1 + $0x15d] sm:$0xff] }
 0x116   :  { %v8075_v4 = vpack.c.bf16 %v8679_v1, %v8674_v63 }
 0x117   :  { %v172_v6 = vsel %vm162_vm1, %v8627_v5, 0.0 }
 0x118   :  { %173 = vadd.xlane.f32.xlu1 %v172_v6 }
 0x199   :  { %v165_v7 = vpop.xlane.xlu0 %164 }
 0x19a   :  { %v176_v8 = vmul.f32 0.03125, %v165_v7 }
 0x19c   :  { %v180_v9 = vsub.f32 %v8606_v50, %v176_v8 }
 0x19d   :  { %v168_v10 = vpop.xlane.xlu0 %167 }
 0x19e   :  { %v177_v11 = vmul.f32 0.03125, %v168_v10  ;;  %v184_v12 = vmul.f32 %v180_v9, %v180_v9 }
 0x1a0   :  { %v181_v13 = vsub.f32 %v8613_v56, %v177_v11  ;;  %v188_v14 = vsel %vm162_vm1, %v184_v12, 0.0 }
 0x1a1   :  { %v171_v15 = vpop.xlane.xlu1 %170  ;;  %189 = vadd.xlane.f32.xlu0 %v188_v14  ;;  %v350_v14 = vld [vmem:[%s9707_s1 + $0x144] sm:$0x1] }
 0x1a2   :  { %v178_v16 = vmul.f32 0.03125, %v171_v15  ;;  %v185_v17 = vmul.f32 %v181_v13, %v181_v13  ;;  %v8705_v15 = vld [vmem:[%s9707_s1 + $0x104] sm:$0xff] }
 0x1a4   :  { %v182_v18 = vsub.f32 %v8620_v62, %v178_v16  ;;  %v191_v19 = vsel %vm162_vm1, %v185_v17, 0.0  ;;  %v8715_v16 = vld [vmem:[%s9707_s1 + $0x10c] sm:$0xff]  ;;  %v8720_v17 = vld [vmem:[%s9707_s1 + $0x114] sm:$0xff] }
 0x1a5   :  { %v174_v20 = vpop.xlane.xlu1 %173  ;;  %192 = vadd.xlane.f32.xlu1 %v191_v19  ;;  %v8734_v19 = vld [vmem:[%s9707_s1 + $0x124] sm:$0xff] }
 0x1a6   :  { %v179_v21 = vmul.f32 0.03125, %v174_v20  ;;  %v186_v22 = vmul.f32 %v182_v18, %v182_v18  ;;  %v8743_v20 = vld [vmem:[%s9707_s1 + $0x12c] sm:$0xff] }
 0x1a8   :  { %v183_v23 = vsub.f32 %v8627_v5, %v179_v21  ;;  %v194_v24 = vsel %vm162_vm1, %v186_v22, 0.0  ;;  %v8750_v21 = vld [vmem:[%s9707_s1 + $0x134] sm:$0xff]  ;;  %v8755_v22 = vld [vmem:[%s9707_s1 + $0x13c] sm:$0xff] }
 0x1a9   :  { %195 = vadd.xlane.f32.xlu0 %v194_v24 }
 0x1aa   :  { %v187_v25 = vmul.f32 %v183_v23, %v183_v23 }
 0x1ac   :  { %v197_v26 = vsel %vm162_vm1, %v187_v25, 0.0 }
 0x1ad   :  { %198 = vadd.xlane.f32.xlu1 %v197_v26 }
 0x22e   :  { %v190_v33 = vpop.xlane.xlu0 %189 }
 0x22f   :  { %v200_v34 = vmul.f32 0.03125, %v190_v33 }
 0x231   :  { %v204_v35 = vadd.f32 1e-06, %v200_v34 }
 0x232   :  { %v193_v36 = vpop.xlane.xlu1 %192 }
 0x233   :  { %8273 = vrsqrt.f32 %v204_v35  ;;  %v201_v37 = vmul.f32 0.03125, %v193_v36 }
 0x235   :  { %v205_v38 = vadd.f32 1e-06, %v201_v37 }
 0x236   :  { %v196_v39 = vpop.xlane.xlu0 %195 }
 0x237   :  { %8275 = vrsqrt.f32 %v205_v38  ;;  %v202_v40 = vmul.f32 0.03125, %v196_v39 }
 0x239   :  { %v206_v41 = vadd.f32 1e-06, %v202_v40 }
 0x23a   :  { %v199_v42 = vpop.xlane.xlu1 %198 }
 0x23b   :  { %8277 = vrsqrt.f32 %v206_v41  ;;  %v203_v43 = vmul.f32 0.03125, %v199_v42 }
 0x23d   :  { %v8274_v44 = vpop.eup %8273  ;;  %v207_v45 = vadd.f32 1e-06, %v203_v43 }
 0x23e   :  { %v212_v47 = vmul.f32 %v8274_v44, %v180_v9 }
 0x23f   :  { %8279 = vrsqrt.f32 %v207_v45 }
 0x240   :  { %v220_v49 = vmul.f32 %v7082_v46, %v212_v47 }
 0x241   :  { %v8276_v51 = vpop.eup %8275 }
 0x242   :  { %v213_v52 = vmul.f32 %v8276_v51, %v181_v13  ;;  %v228_v53 = vadd.f32 %v7083_v48, %v220_v49  ;;  %v8459_v13 = vmov 0.0  }
 0x244   :  { %v221_v57 = vmul.f32 %v7082_v46, %v213_v52  ;;  %7563 = vmatprep.mubr.msk.f32.mxu1 %vm162_vm1, %v228_v53 }
 0x245   :  { %v8278_v58 = vpop.eup %8277 }
 0x246   :  { %v229_v60 = vadd.f32 %v7083_v48, %v221_v57  ;;  %v214_v61 = vmul.f32 %v8278_v58, %v182_v18  ;;  %v8729_v18 = vld [vmem:[%s9707_s1 + $0x11c] sm:$0xff] }
 0x248   :  { %7564 = vmatmul.mubr.msk.f32.vlgmr.msra.gmra.mrb[0].mxu1 %vm162_vm1, %v229_v60  ;;  %v222_v2 = vmul.f32 %v7082_v46, %v214_v61  ;;  %v8077_v9 = vpack.c.bf16 %v229_v60, %v228_v53 }
 0x249   :  { %v8280_v3 = vpop.eup %8279  ;;  %8073 = vmatpush3.bf16.msra.mxu1 %v8072_v59 }
 0x24a   :  { %8074 = vmatprep.subr.bf16.mxu1 %v8457_v0  ;;  %v230_v6 = vadd.f32 %v7083_v48, %v222_v2  ;;  %v215_v7 = vmul.f32 %v8280_v3, %v183_v23  ;;  %v7084_v23 = vld [vmem:[%s9707_s1 + $0x103] ss:$0 sm:$0xff] }
 0x24c   :  { %7566 = vmatprep.mubr.msk.f32.mxu1 %vm162_vm1, %v230_v6  ;;  %v223_v10 = vmul.f32 %v7082_v46, %v215_v7 }
 0x24d   :  { %8076 = vmatpush3.bf16.msra.mxu1 %v8075_v4 }
 0x24e   :  { %8079 = vmatprep.subr.msk.bf16.mxu1 %vm8687_vm2, %v8077_v9  ;;  %v231_v11 = vadd.f32 %v7083_v48, %v223_v10 }
 0x250   :  { %7567 = vmatmul.mubr.msk.f32.gmra.mrb[2].mxu1 %vm162_vm1, %v231_v11  ;;  %v8695_v12 = vpack.c.bf16 %v231_v11, %v230_v6 }
 0x251   :  { %7577 = vmatprep.mubr.msk.f32.mxu1 %vm8458_vm3, %v8459_v13 }
 0x254   :  { %7578 = vmatmul.mubr.msk.f32.vlgmr.msra.gmra.mrb[4].mxu1 %vm162_vm1, %v350_v14 }
 0x255   :  { %7584 = vmatprep.mubr.msk.f32.mxu1 %vm162_vm1, %v8705_v15 }
 0x256   :  { %8082 = vmatpush3.bf16.xpose.msk.msra.mxu1 %vm8687_vm2, %v8077_v9 }
 0x25d   :  { %7585 = vmatmul.mubr.msk.f32.vlgmr.msra.gmra.mrb[6].mxu1 %vm162_vm1, %v8715_v16 }
 0x25e   :  { %7587 = vmatprep.mubr.msk.f32.mxu1 %vm162_vm1, %v8720_v17 }
 0x261   :  { %7588 = vmatmul.mubr.msk.f32.gmra.mrb[8].mxu1 %vm162_vm1, %v8729_v18 }
 0x262   :  { %7590 = vmatprep.mubr.msk.f32.mxu1 %vm162_vm1, %v8734_v19 }
 0x265   :  { %7591 = vmatmul.mubr.msk.f32.gmra.mrb[10].mxu1 %vm162_vm1, %v8743_v20 }
 0x266   :  { %7593 = vmatprep.mubr.msk.f32.mxu1 %vm162_vm1, %v8750_v21 }
 0x269   :  { %7594 = vmatmul.mubr.msk.f32.gmra.mrb[12].mxu1 %vm162_vm1, %v8755_v22 }
 0x31b   :  { %v7565_v24 = vpop.f32.mrb[0].mxu1 }
 0x31c   :  { %v319_v25 = vpop.f32.mrb[1].mxu1  ;;  %v325_v35 = vadd.f32 %v7565_v24, %v7084_v23 }
 0x31d   :  { %v320_v26 = vadd.f32 %v7084_v23, %v319_v25 }
 0x31f   :  { %7598 = vmatprep.mubr.msk.f32.mxu1 %vm554_vm4, %v320_v26 }
 0x323   :  { %v7568_v27 = vpop.f32.mrb[2].mxu1 }
 0x324   :  { %v8765_v28 = vadd.f32 %v7568_v27, %v7084_v23  ;;  %v329_v29 = vpop.f32.mrb[3].mxu1 }
 0x325   :  { %v8767_v30 = vadd.f32 %v7084_v23, %v329_v29 }
 0x327   :  { %v8769_v31 = vpop.f32.mrb[4].mxu1 }
 0x328   :  { %v7579_v32 = vpop.f32.mrb[5].mxu1 }
 0x330   :  { %v8771_v33 = vpop.f32.mrb[6].mxu1 }
 0x331   :  { %v515_v34 = vpop.f32.mrb[7].mxu1 }
 0x332   :  { %7596 = vmatprep.subr.mxu1 %v515_v34 }
 0x333   :  { %7597 = vmatpush3.msra.mxu1 %v515_v34 }
 0x334   :  { %7599 = vmatmul.mubr.msk.f32.vlgmr.msra.gmra.mrb[14].mxu1 %vm554_vm4, %v325_v35  ;;  %v7589_v36 = vpop.f32.mrb[8].mxu1 }
 0x335   :  { %v525_v37 = vpop.f32.mrb[9].mxu1 }
 0x336   :  { %7626 = vmatprep.subr.mxu0 %v525_v37 }
 0x337   :  { %7627 = vmatpush3.msra.mxu0 %v525_v37 }
 0x338   :  { %v8774_v38 = vpop.f32.mrb[10].mxu1  ;;  %7641 = vmatprep.subr.mxu0 %v7589_v36 }
 0x339   :  { %v535_v39 = vpop.f32.mrb[11].mxu1 }
 0x33a   :  { %7601 = vmatprep.subr.msk.mxu1 %vm638_vm5, %v535_v39 }
 0x33b   :  { %7602 = vmatpush3.xpose.msk.msra.mxu1 %vm638_vm5, %v535_v39 }
 0x33c   :  { %v7595_v40 = vpop.f32.mrb[12].mxu1  ;;  %7606 = vmatprep.subr.mxu1 %v8661_v54 }
 0x33d   :  { %v8776_v41 = vpop.f32.mrb[13].mxu1 }
 0x407   :  { %v7600_v42 = vpop.f32.mrb[14].mxu1 }
 0x408   :  { %v637_v43 = vmul.f32 0.35355338, %v7600_v42  ;;  %v627_v44 = vpop.f32.mrb[15].mxu1 }
 0x409   :  { %v636_v45 = vmul.f32 0.35355338, %v627_v44 }
 0x40a   :  { %v642_v46 = vsel %vm638_vm5, %v637_v43, -inf }
 0x40b   :  { %643 = vmax.xlane.f32.xlu1 %v642_v46  ;;  %v639_v47 = vsel %vm638_vm5, %v636_v45, -inf }
 0x40c   :  { %640 = vmax.xlane.f32.xlu0 %v639_v47 }
 0x498   :  { %v644_v48 = vpop.xlane.xlu1 %643 }
 0x499   :  { %v646_v49 = vsub.f32 %v637_v43, %v644_v48  ;;  %v641_v51 = vpop.xlane.xlu0 %640 }
 0x49a   :  { %v645_v52 = vsub.f32 %v636_v45, %v641_v51 }
 0x49b   :  { %v649_v53 = vmul.f32 1.442695, %v646_v49 }
 0x49c   :  { %v647_v57 = vmul.f32 1.442695, %v645_v52 }
 0x49d   :  { %8281 = vpow2.f32 %v649_v53 }
 0x49e   :  { %8283 = vpow2.f32 %v647_v57 }
 0x4a7   :  { %v8282_v58 = vpop.eup %8281 }
 0x4a8   :  { %v8284_v59 = vpop.eup %8283  ;;  %v654_v60 = vsel %vm638_vm5, %v8282_v58, 0.0 }
 0x4a9   :  { %655 = vadd.xlane.f32.xlu1 %v654_v60  ;;  %v651_v61 = vsel %vm638_vm5, %v8284_v59, 0.0 }
 0x4aa   :  { %652 = vadd.xlane.f32.xlu0 %v651_v61 }
 0x4ba   :  { %834 = vrot.lane.b32.xlu1 %v325_v35, %s8460_s23 }
 0x4be   :  { %1106 = vrot.lane.b32.xlu1 %v320_v26, %s8461_s24 }
 0x4c0   :  { %832 = vrot.lane.b32.xlu0 %v320_v26, %s8460_s23 }
 0x4c2   :  { %1108 = vrot.lane.b32.xlu1 %v325_v35, %s8461_s24 }
 0x4c4   :  { %1380 = vrot.lane.b32.xlu0 %v320_v26, %s8462_s25 }
 0x4c6   :  { %1382 = vrot.lane.b32.xlu1 %v325_v35, %s8462_s25 }
 0x536   :  { %v656_v2 = vpop.xlane.xlu1 %655 }
 0x537   :  { %8285 = vrcp.f32 %v656_v2  ;;  %v653_v3 = vpop.xlane.xlu0 %652 }
 0x538   :  { %8287 = vrcp.f32 %v653_v3 }
 0x53a   :  { %v835_v4 = vpop.permute.xlu1 %834 }
 0x53b   :  { %v833_v6 = vpop.permute.xlu0 %832 }
 0x53e   :  { %v1107_v7 = vpop.permute.xlu1 %1106 }
 0x53f   :  { %7628 = vmatprep.mubr.msk.f32.mxu0 %vm554_vm4, %v1107_v7  ;;  %v1381_v14 = vpop.permute.xlu0 %1380 }
 0x541   :  { %v8286_v9 = vpop.eup %8285 }
 0x542   :  { %v8288_v10 = vpop.eup %8287  ;;  %v1109_v11 = vpop.permute.xlu1 %1108  ;;  %v660_v24 = vmul.f32 %v8286_v9, %v8282_v58 }
 0x543   :  { %7629 = vmatmul.mubr.msk.f32.vlgmr.msra.gmra.mrb[8].mxu0 %vm554_vm4, %v1109_v11  ;;  %v658_v23 = vmul.f32 %v8288_v10, %v8284_v59 }
 0x544   :  { %7642 = vmatpush3.msra.mxu0 %v7589_v36  ;;  %7643 = vmatprep.mubr.msk.f32.mxu0 %vm554_vm4, %v1381_v14 }
 0x545   :  { %7646 = vmatprep.subr.msk.mxu0 %vm638_vm5, %v7595_v40  ;;  %7603 = vmatprep.mubr.msk.f32.mxu1 %vm638_vm5, %v658_v23 }
 0x546   :  { %v1383_v25 = vpop.permute.xlu1 %1382  ;;  %7604 = vmatmul.mubr.msk.f32.vlgmr.msra.gmra.mrb[16].mxu1 %vm638_vm5, %v660_v24 }
 0x547   :  { %7607 = vmatpush3.msra.mxu1 %v8661_v54  ;;  %7644 = vmatmul.mubr.msk.f32.vlgmr.msra.gmra.mrb[10].mxu0 %vm554_vm4, %v1383_v25 }
 0x548   :  { %7611 = vmatprep.subr.mxu1 %v8771_v33 }
 0x54b   :  { %7647 = vmatpush3.xpose.msk.msra.mxu0 %vm638_vm5, %v7595_v40 }
 0x54c   :  { %8085 = vmatprep.subr.msk.bf16.mxu0 %vm8687_vm2, %v8695_v12 }
 0x616   :  { %v7630_v26 = vpop.f32.mrb[8].mxu0 }
 0x617   :  { %v1180_v27 = vpop.f32.mrb[9].mxu0  ;;  %v1190_v42 = vmul.f32 0.35355338, %v7630_v26 }
 0x618   :  { %v1189_v9 = vmul.f32 0.35355338, %v1180_v27 }
 0x619   :  { %v7605_v29 = vpop.f32.mrb[16].mxu1  ;;  %v1194_v45 = vsel %vm638_vm5, %v1190_v42, -inf }
 0x61a   :  { %v736_v32 = vpop.f32.mrb[17].mxu1  ;;  %v7645_v34 = vpop.f32.mrb[10].mxu0  ;;  %v1191_v24 = vsel %vm638_vm5, %v1189_v9, -inf }
 0x61b   :  { %7608 = vmatprep.mubr.msk.f32.mxu1 %vm554_vm4, %v736_v32  ;;  %v1454_v35 = vpop.f32.mrb[11].mxu0  ;;  %v1464_v44 = vmul.f32 0.35355338, %v7645_v34 }
 0x61c   :  { %7609 = vmatmul.mubr.msk.f32.vlgmr.msra.gmra.mrb[18].mxu1 %vm554_vm4, %v7605_v29  ;;  %v1463_v23 = vmul.f32 0.35355338, %v1454_v35 }
 0x61d   :  { %7612 = vmatpush3.msra.mxu1 %v8771_v33  ;;  %7613 = vmatprep.mubr.msk.f32.mxu1 %vm554_vm4, %v833_v6  ;;  %v1468_v46 = vsel %vm638_vm5, %v1464_v44, -inf }
 0x61e   :  { %7616 = vmatprep.subr.msk.mxu1 %vm638_vm5, %v8774_v38  ;;  %v1465_v25 = vsel %vm638_vm5, %v1463_v23, -inf }
 0x620   :  { %7614 = vmatmul.mubr.msk.f32.vlgmr.msra.gmra.mrb[20].mxu1 %vm554_vm4, %v835_v4 }
 0x624   :  { %7617 = vmatpush3.xpose.msk.msra.mxu1 %vm638_vm5, %v8774_v38 }
 0x625   :  { %7621 = vmatprep.subr.mxu1 %v8666_v55 }
 0x6f3   :  { %v7615_v36 = vpop.f32.mrb[20].mxu1 }
 0x6f4   :  { %v916_v37 = vmul.f32 0.35355338, %v7615_v36  ;;  %v906_v39 = vpop.f32.mrb[21].mxu1 }
 0x6f5   :  { %v915_v40 = vmul.f32 0.35355338, %v906_v39 }
 0x6f6   :  { %v920_v43 = vsel %vm638_vm5, %v916_v37, -inf }
 0x6f7   :  { %921 = vmax.xlane.f32.xlu1 %v920_v43  ;;  %v917_v33 = vsel %vm638_vm5, %v915_v40, -inf }
 0x6f8   :  { %918 = vmax.xlane.f32.xlu0 %v917_v33 }
 0x6fb   :  { %1195 = vmax.xlane.f32.xlu1 %v1194_v45 }
 0x6ff   :  { %1469 = vmax.xlane.f32.xlu1 %v1468_v46 }
 0x784   :  { %v922_v38 = vpop.xlane.xlu1 %921 }
 0x785   :  { %v924_v47 = vsub.f32 %v916_v37, %v922_v38  ;;  %v919_v48 = vpop.xlane.xlu0 %918 }
 0x786   :  { %v923_v49 = vsub.f32 %v915_v40, %v919_v48 }
 0x787   :  { %v927_v51 = vmul.f32 1.442695, %v924_v47 }
 0x788   :  { %v925_v52 = vmul.f32 1.442695, %v923_v49  ;;  %v1196_v53 = vpop.xlane.xlu1 %1195 }
 0x789   :  { %v1198_v57 = vsub.f32 %v1190_v42, %v1196_v53 }
 0x78a   :  { %8289 = vpow2.f32 %v925_v52 }
 0x78b   :  { %v1201_v58 = vmul.f32 1.442695, %v1198_v57  ;;  %8291 = vpow2.f32 %v927_v51 }
 0x78c   :  { %v1470_v59 = vpop.xlane.xlu1 %1469 }
 0x78d   :  { %8293 = vpow2.f32 %v1201_v58  ;;  %v1472_v60 = vsub.f32 %v1464_v44, %v1470_v59 }
 0x78f   :  { %v1475_v61 = vmul.f32 1.442695, %v1472_v60 }
 0x791   :  { %8295 = vpow2.f32 %v1475_v61 }
 0x794   :  { %v8290_v2 = vpop.eup %8289 }
 0x795   :  { %v929_v3 = vsel %vm638_vm5, %v8290_v2, 0.0  ;;  %v8292_v4 = vpop.eup %8291 }
 0x796   :  { %930 = vadd.xlane.f32.xlu0 %v929_v3  ;;  %v932_v10 = vsel %vm638_vm5, %v8292_v4, 0.0 }
 0x797   :  { %v8819_v6 = vpop.eup %8293 }
 0x798   :  { %v1206_v7 = vsel %vm638_vm5, %v8819_v6, 0.0 }
 0x799   :  { %1207 = vadd.xlane.f32.xlu1 %v1206_v7 }
 0x79a   :  { %933 = vadd.xlane.f32.xlu0 %v932_v10 }
 0x79b   :  { %v8296_v11 = vpop.eup %8295 }
 0x79c   :  { %v1480_v14 = vsel %vm638_vm5, %v8296_v11, 0.0 }
 0x79d   :  { %1481 = vadd.xlane.f32.xlu1 %v1480_v14 }
 0x79e   :  { %1192 = vmax.xlane.f32.xlu0 %v1191_v24 }
 0x7a2   :  { %1466 = vmax.xlane.f32.xlu0 %v1465_v25 }
 0x823   :  { %v931_v26 = vpop.xlane.xlu0 %930 }
 0x824   :  { %8297 = vrcp.f32 %v931_v26 }
 0x826   :  { %v1208_v38 = vpop.xlane.xlu1 %1207 }
 0x827   :  { %v934_v29 = vpop.xlane.xlu0 %933 }
 0x828   :  { %8299 = vrcp.f32 %v934_v29 }
 0x82a   :  { %v1482_v48 = vpop.xlane.xlu1 %1481 }
 0x82b   :  { %v1193_v27 = vpop.xlane.xlu0 %1192 }
 0x82c   :  { %v1197_v32 = vsub.f32 %v1189_v9, %v1193_v27 }
 0x82e   :  { %v8298_v34 = vpop.eup %8297  ;;  %v1199_v36 = vmul.f32 1.442695, %v1197_v32 }
 0x82f   :  { %v1467_v37 = vpop.xlane.xlu0 %1466  ;;  %v936_v39 = vmul.f32 %v8298_v34, %v8290_v2 }
 0x830   :  { %8301 = vpow2.f32 %v1199_v36  ;;  %v1471_v40 = vsub.f32 %v1463_v23, %v1467_v37 }
 0x831   :  { %7618 = vmatprep.mubr.msk.f32.mxu1 %vm638_vm5, %v936_v39 }
 0x832   :  { %v8300_v35 = vpop.eup %8299  ;;  %v1473_v42 = vmul.f32 1.442695, %v1471_v40 }
 0x833   :  { %v938_v43 = vmul.f32 %v8300_v35, %v8292_v4 }
 0x834   :  { %8303 = vpow2.f32 %v1473_v42 }
 0x835   :  { %7619 = vmatmul.mubr.msk.f32.vlgmr.msra.gmra.mrb[22].mxu1 %vm638_vm5, %v938_v43  ;;  %8305 = vrcp.f32 %v1482_v48 }
 0x836   :  { %7622 = vmatpush3.msra.mxu1 %v8666_v55 }
 0x837   :  { %7631 = vmatprep.subr.msk.mxu1 %vm638_vm5, %v8776_v41 }
 0x83a   :  { %v8302_v33 = vpop.eup %8301 }
 0x83b   :  { %v1203_v44 = vsel %vm638_vm5, %v8302_v33, 0.0 }
 0x83c   :  { %1204 = vadd.xlane.f32.xlu0 %v1203_v44 }
 0x83e   :  { %v8304_v45 = vpop.eup %8303 }
 0x83f   :  { %v1477_v46 = vsel %vm638_vm5, %v8304_v45, 0.0  ;;  %v8306_v51 = vpop.eup %8305 }
 0x840   :  { %1478 = vadd.xlane.f32.xlu0 %v1477_v46  ;;  %v1486_v57 = vmul.f32 %v8306_v51, %v8296_v11 }
 0x8c9   :  { %v1205_v47 = vpop.xlane.xlu0 %1204 }
 0x8cd   :  { %v1479_v49 = vpop.xlane.xlu0 %1478 }
 0x8ce   :  { %8307 = vrcp.f32 %v1479_v49 }
 0x8cf   :  { %8309 = vrcp.f32 %v1205_v47 }
 0x8d0   :  { %8311 = vrcp.f32 %v1208_v38 }
 0x8d8   :  { %v8308_v52 = vpop.eup %8307 }
 0x8d9   :  { %v1484_v53 = vmul.f32 %v8308_v52, %v8304_v45 }
 0x8db   :  { %7648 = vmatprep.mubr.msk.f32.mxu0 %vm638_vm5, %v1484_v53 }
 0x8dc   :  { %7649 = vmatmul.mubr.msk.f32.vlgmr.msra.gmra.mrb[12].mxu0 %vm638_vm5, %v1486_v57 }
 0x8dd   :  { %8088 = vmatpush3.bf16.xpose.msk.msra.mxu0 %vm8687_vm2, %v8695_v12  ;;  %7660 = vmatprep.mubr.msk.f32.mxu0 %vm162_vm1, %v8705_v15  ;;  %v8310_v12 = vpop.eup %8309 }
 0x8e4   :  { %7661 = vmatmul.mubr.msk.f32.vlgmr.msra.gmra.mrb[14].mxu0 %vm162_vm1, %v8715_v16 }
 0x8e5   :  { %7663 = vmatprep.mubr.msk.f32.mxu0 %vm162_vm1, %v8720_v17  ;;  %v8312_v17 = vpop.eup %8311 }
 0x8e8   :  { %7664 = vmatmul.mubr.msk.f32.gmra.mrb[16].mxu0 %vm162_vm1, %v8729_v18  ;;  %v1210_v18 = vmul.f32 %v8310_v12, %v8302_v33 }
 0x8e9   :  { %7666 = vmatprep.mubr.msk.f32.mxu0 %vm162_vm1, %v8734_v19  ;;  %v1212_v19 = vmul.f32 %v8312_v17, %v8819_v6 }
 0x8ec   :  { %7667 = vmatmul.mubr.msk.f32.gmra.mrb[18].mxu0 %vm162_vm1, %v8743_v20 }
 0x8ed   :  { %7669 = vmatprep.mubr.msk.f32.mxu0 %vm162_vm1, %v8750_v21 }
 0x8f0   :  { %7670 = vmatmul.mubr.msk.f32.gmra.mrb[20].mxu0 %vm162_vm1, %v8755_v22 }
 0x908   :  { %v7620_v15 = vpop.f32.mrb[22].mxu1 }
 0x909   :  { %v1014_v16 = vpop.f32.mrb[23].mxu1 }
 0x90a   :  { %7623 = vmatprep.mubr.msk.f32.mxu1 %vm554_vm4, %v1014_v16 }
 0x90b   :  { %7624 = vmatmul.mubr.msk.f32.vlgmr.msra.gmra.mrb[18].mxu1 %vm554_vm4, %v7620_v15 }
 0x90c   :  { %7632 = vmatpush3.xpose.msk.msra.mxu1 %vm638_vm5, %v8776_v41  ;;  %7633 = vmatprep.mubr.msk.f32.mxu1 %vm638_vm5, %v1210_v18 }
 0x90d   :  { %7636 = vmatprep.subr.mxu1 %v8674_v63 }
 0x90f   :  { %7634 = vmatmul.mubr.msk.f32.vlgmr.msra.gmra.mrb[24].mxu1 %vm638_vm5, %v1212_v19 }
 0x910   :  { %7637 = vmatpush3.msra.mxu1 %v8674_v63 }
 0x911   :  { %7651 = vmatprep.subr.mxu1 %v8679_v1 }
 0x9af   :  { %v7650_v20 = vpop.f32.mrb[12].mxu0 }
 0x9b0   :  { %v1562_v21 = vpop.f32.mrb[13].mxu0 }
 0x9b7   :  { %v8865_v22 = vpop.f32.mrb[14].mxu0 }
 0x9b8   :  { %v1722_v58 = vpop.f32.mrb[15].mxu0 }
 0x9bb   :  { %v8882_v10 = vpop.f32.mrb[16].mxu0 }
 0x9bc   :  { %v1732_v11 = vpop.f32.mrb[17].mxu0 }
 0x9bd   :  { %7702 = vmatprep.subr.mxu0 %v1732_v11 }
 0x9be   :  { %7703 = vmatpush3.msra.mxu0 %v1732_v11 }
 0x9bf   :  { %v7668_v37 = vpop.f32.mrb[18].mxu0 }
 0x9c0   :  { %v1742_v39 = vpop.f32.mrb[19].mxu0 }
 0x9c3   :  { %v8888_v40 = vpop.f32.mrb[20].mxu0 }
 0x9c4   :  { %v1752_v35 = vpop.f32.mrb[21].mxu0 }
 0x9c5   :  { %7707 = vmatprep.subr.msk.mxu0 %vm638_vm5, %v1752_v35 }
 0x9e2   :  { %v7635_v59 = vpop.f32.mrb[24].mxu1 }
 0x9e3   :  { %v1288_v60 = vpop.f32.mrb[25].mxu1 }
 0x9e4   :  { %7638 = vmatprep.mubr.msk.f32.mxu1 %vm554_vm4, %v1288_v60 }
 0x9e5   :  { %7639 = vmatmul.mubr.msk.f32.vlgmr.msra.gmra.mrb[18].mxu1 %vm554_vm4, %v7635_v59 }
 0x9e6   :  { %7653 = vmatprep.mubr.msk.f32.mxu1 %vm554_vm4, %v1562_v21  ;;  %7652 = vmatpush3.msra.mxu1 %v8679_v1 }
 0x9e7   :  { %7672 = vmatprep.subr.mxu1 %v1722_v58 }
 0x9ed   :  { %7654 = vmatmul.mubr.msk.f32.vlgmr.msra.gmra.mrb[18].mxu1 %vm554_vm4, %v7650_v20 }
 0x9ee   :  { %7674 = vmatprep.mubr.msk.f32.mxu1 %vm554_vm4, %v8767_v30  ;;  %7673 = vmatpush3.msra.mxu1 %v1722_v58 }
 0x9ef   :  { %7677 = vmatprep.subr.msk.mxu1 %vm638_vm5, %v1742_v39 }
 0x9f1   :  { %7675 = vmatmul.mubr.msk.f32.vlgmr.msra.gmra.mrb[26].mxu1 %vm554_vm4, %v8765_v28 }
 0x9f5   :  { %7678 = vmatpush3.xpose.msk.msra.mxu1 %vm638_vm5, %v1742_v39 }
 0x9f6   :  { %7682 = vmatprep.subr.mxu1 %v8661_v54 }
 0xac0   :  { %v8876_v41 = vpop.f32.mrb[18].mxu1 }
 0xac1   :  { %v8878_v61 = vpop.f32.mrb[19].mxu1 }
 0xac4   :  { %v7676_v2 = vpop.f32.mrb[26].mxu1 }
 0xac5   :  { %v1843_v3 = vmul.f32 0.35355338, %v7676_v2  ;;  %v1833_v4 = vpop.f32.mrb[27].mxu1 }
 0xac6   :  { %v1842_v6 = vmul.f32 0.35355338, %v1833_v4 }
 0xac7   :  { %v1847_v7 = vsel %vm638_vm5, %v1843_v3, -inf }
 0xac8   :  { %1848 = vmax.xlane.f32.xlu1 %v1847_v7  ;;  %v1844_v9 = vsel %vm638_vm5, %v1842_v6, -inf }
 0xac9   :  { %1845 = vmax.xlane.f32.xlu0 %v1844_v9 }
 0xb55   :  { %v1849_v14 = vpop.xlane.xlu1 %1848 }
 0xb56   :  { %v1851_v23 = vsub.f32 %v1843_v3, %v1849_v14  ;;  %v1846_v24 = vpop.xlane.xlu0 %1845 }
 0xb57   :  { %v1850_v25 = vsub.f32 %v1842_v6, %v1846_v24 }
 0xb58   :  { %v1854_v26 = vmul.f32 1.442695, %v1851_v23 }
 0xb59   :  { %v1852_v29 = vmul.f32 1.442695, %v1850_v25 }
 0xb5a   :  { %8313 = vpow2.f32 %v1854_v26 }
 0xb5b   :  { %8315 = vpow2.f32 %v1852_v29 }
 0xb64   :  { %v8314_v27 = vpop.eup %8313 }
 0xb65   :  { %v8316_v32 = vpop.eup %8315  ;;  %v1859_v34 = vsel %vm638_vm5, %v8314_v27, 0.0 }
 0xb66   :  { %1860 = vadd.xlane.f32.xlu1 %v1859_v34  ;;  %v1856_v36 = vsel %vm638_vm5, %v8316_v32, 0.0 }
 0xb67   :  { %1857 = vadd.xlane.f32.xlu0 %v1856_v36 }
 0xb77   :  { %2309 = vrot.lane.b32.xlu1 %v8765_v28, %s8461_s24 }
 0xb7b   :  { %2033 = vrot.lane.b32.xlu1 %v8767_v30, %s8460_s23 }
 0xb7d   :  { %2307 = vrot.lane.b32.xlu0 %v8767_v30, %s8461_s24 }
 0xb7f   :  { %2035 = vrot.lane.b32.xlu1 %v8765_v28, %s8460_s23 }
 0xbf3   :  { %v1861_v42 = vpop.xlane.xlu1 %1860 }
 0xbf4   :  { %8317 = vrcp.f32 %v1861_v42  ;;  %v1858_v43 = vpop.xlane.xlu0 %1857 }
 0xbf5   :  { %8319 = vrcp.f32 %v1858_v43 }
 0xbf7   :  { %v2310_v44 = vpop.permute.xlu1 %2309 }
 0xbf8   :  { %v2308_v33 = vpop.permute.xlu0 %2307 }
 0xbf9   :  { %7704 = vmatprep.mubr.msk.f32.mxu0 %vm554_vm4, %v2308_v33 }
 0xbfa   :  { %7705 = vmatmul.mubr.msk.f32.vlgmr.msra.gmra.mrb[22].mxu0 %vm554_vm4, %v2310_v44 }
 0xbfb   :  { %7708 = vmatpush3.xpose.msk.msra.mxu0 %vm638_vm5, %v1752_v35  ;;  %v2034_v12 = vpop.permute.xlu1 %2033 }
 0xbfc   :  { %7717 = vmatprep.subr.mxu0 %v8882_v10 }
 0xbfe   :  { %v8318_v45 = vpop.eup %8317 }
 0xbff   :  { %v8320_v46 = vpop.eup %8319  ;;  %v1865_v47 = vmul.f32 %v8318_v45, %v8314_v27 }
 0xc00   :  { %v1863_v38 = vmul.f32 %v8320_v46, %v8316_v32 }
 0xc02   :  { %7679 = vmatprep.mubr.msk.f32.mxu1 %vm638_vm5, %v1863_v38 }
 0xc03   :  { %7680 = vmatmul.mubr.msk.f32.vlgmr.msra.gmra.mrb[28].mxu1 %vm638_vm5, %v1865_v47 }
 0xc04   :  { %7683 = vmatpush3.msra.mxu1 %v8661_v54  ;;  %v2036_v54 = vpop.permute.xlu1 %2035 }
 0xc05   :  { %7687 = vmatprep.subr.mxu1 %v8865_v22 }
 0xccd   :  { %v7706_v48 = vpop.f32.mrb[22].mxu0 }
 0xcce   :  { %v2391_v49 = vmul.f32 0.35355338, %v7706_v48  ;;  %v2381_v51 = vpop.f32.mrb[23].mxu0 }
 0xccf   :  { %v2390_v52 = vmul.f32 0.35355338, %v2381_v51 }
 0xcd0   :  { %v2395_v53 = vsel %vm638_vm5, %v2391_v49, -inf }
 0xcd1   :  { %2396 = vmax.xlane.f32.xlu1 %v2395_v53  ;;  %v2392_v57 = vsel %vm638_vm5, %v2390_v52, -inf }
 0xcd2   :  { %2393 = vmax.xlane.f32.xlu0 %v2392_v57 }
 0xcd6   :  { %v7681_v15 = vpop.f32.mrb[28].mxu1 }
 0xcd7   :  { %v1941_v16 = vpop.f32.mrb[29].mxu1 }
 0xcd8   :  { %7684 = vmatprep.mubr.msk.f32.mxu1 %vm554_vm4, %v1941_v16  ;;  %v826_v16 = vlaneseq }
 0xcd9   :  { %7685 = vmatmul.mubr.msk.f32.vlgmr.msra.gmra.mrb[30].mxu1 %vm554_vm4, %v7681_v15 }
 0xcda   :  { %7688 = vmatpush3.msra.mxu1 %v8865_v22  ;;  %7689 = vmatprep.mubr.msk.f32.mxu1 %vm554_vm4, %v2034_v12 }
 0xcdb   :  { %7692 = vmatprep.subr.msk.mxu1 %vm638_vm5, %v7668_v37 }
 0xcdd   :  { %7690 = vmatmul.mubr.msk.f32.vlgmr.msra.gmra.mrb[32].mxu1 %vm554_vm4, %v2036_v54 }
 0xce1   :  { %7693 = vmatpush3.xpose.msk.msra.mxu1 %vm638_vm5, %v7668_v37 }
 0xce2   :  { %2583 = vrot.lane.b32.xlu1 %v8765_v28, %s8462_s25  ;;  %7697 = vmatprep.subr.mxu1 %v8666_v55 }
 0xd5e   :  { %v2397_v17 = vpop.xlane.xlu1 %2396 }
 0xd5f   :  { %v2399_v18 = vsub.f32 %v2391_v49, %v2397_v17  ;;  %v2394_v19 = vpop.xlane.xlu0 %2393 }
 0xd60   :  { %v2398_v20 = vsub.f32 %v2390_v52, %v2394_v19  ;;  %v8939_v19 = vshrl.u32 %v826_v16, 7 }
 0xd61   :  { %v2402_v21 = vmul.f32 1.442695, %v2399_v18 }
 0xd62   :  { %v2400_v22 = vmul.f32 1.442695, %v2398_v20  ;;  %v2584_v29 = vpop.permute.xlu1 %2583 }
 0xd64   :  { %8321 = vpow2.f32 %v2400_v22 }
 0xd65   :  { %8323 = vpow2.f32 %v2402_v21  ;;  %v351_v21 = vld [vmem:[%s9707_s1 + $0x165] sm:$0x1] }
 0xd6e   :  { %v8322_v58 = vpop.eup %8321 }
 0xd6f   :  { %v2404_v59 = vsel %vm638_vm5, %v8322_v58, 0.0  ;;  %v8324_v60 = vpop.eup %8323 }
 0xd70   :  { %2405 = vadd.xlane.f32.xlu0 %v2404_v59  ;;  %v2407_v2 = vsel %vm638_vm5, %v8324_v60, 0.0  ;;  %v422_v59 = vadd.f32 %v8769_v31, %v351_v21 }
 0xd74   :  { %2408 = vadd.xlane.f32.xlu0 %v2407_v2 }
 0xd8a   :  { %2581 = vrot.lane.b32.xlu0 %v8767_v30, %s8462_s25 }
 0xdb0   :  { %v7691_v28 = vpop.f32.mrb[32].mxu1 }
 0xdb1   :  { %v2117_v3 = vmul.f32 0.35355338, %v7691_v28  ;;  %v2107_v4 = vpop.f32.mrb[33].mxu1 }
 0xdb2   :  { %v2116_v6 = vmul.f32 0.35355338, %v2107_v4 }
 0xdb3   :  { %v2121_v7 = vsel %vm638_vm5, %v2117_v3, -inf }
 0xdb4   :  { %2122 = vmax.xlane.f32.xlu0 %v2121_v7  ;;  %v2118_v9 = vsel %vm638_vm5, %v2116_v6, -inf }
 0xdb5   :  { %2119 = vmax.xlane.f32.xlu1 %v2118_v9 }
 0xdfd   :  { %v2406_v11 = vpop.xlane.xlu0 %2405 }
 0xdfe   :  { %8325 = vrcp.f32 %v2406_v11 }
 0xe01   :  { %v2409_v14 = vpop.xlane.xlu0 %2408 }
 0xe02   :  { %8327 = vrcp.f32 %v2409_v14 }
 0xe05   :  { %v2582_v26 = vpop.permute.xlu0 %2581 }
 0xe08   :  { %v8326_v23 = vpop.eup %8325 }
 0xe09   :  { %v2411_v24 = vmul.f32 %v8326_v23, %v8322_v58 }
 0xe0b   :  { %7709 = vmatprep.mubr.msk.f32.mxu0 %vm638_vm5, %v2411_v24 }
 0xe0c   :  { %v8328_v25 = vpop.eup %8327 }
 0xe0d   :  { %v2413_v30 = vmul.f32 %v8328_v25, %v8324_v60 }
 0xe0f   :  { %7710 = vmatmul.mubr.msk.f32.vlgmr.msra.gmra.mrb[24].mxu0 %vm638_vm5, %v2413_v30 }
 0xe10   :  { %7718 = vmatpush3.msra.mxu0 %v8882_v10  ;;  %7719 = vmatprep.mubr.msk.f32.mxu0 %vm554_vm4, %v2582_v26 }
 0xe13   :  { %7720 = vmatmul.mubr.msk.f32.vlgmr.msra.gmra.mrb[26].mxu0 %vm554_vm4, %v2584_v29 }
 0xe41   :  { %v2123_v27 = vpop.xlane.xlu0 %2122 }
 0xe42   :  { %v2125_v32 = vsub.f32 %v2117_v3, %v2123_v27  ;;  %v2120_v34 = vpop.xlane.xlu1 %2119 }
 0xe43   :  { %v2124_v36 = vsub.f32 %v2116_v6, %v2120_v34 }
 0xe44   :  { %v2128_v37 = vmul.f32 1.442695, %v2125_v32 }
 0xe45   :  { %v2126_v39 = vmul.f32 1.442695, %v2124_v36 }
 0xe46   :  { %8329 = vpow2.f32 %v2128_v37 }
 0xe47   :  { %8331 = vpow2.f32 %v2126_v39 }
 0xe50   :  { %v8330_v35 = vpop.eup %8329 }
 0xe51   :  { %v8332_v42 = vpop.eup %8331  ;;  %v2133_v43 = vsel %vm638_vm5, %v8330_v35, 0.0 }
 0xe52   :  { %2134 = vadd.xlane.f32.xlu1 %v2133_v43  ;;  %v2130_v10 = vsel %vm638_vm5, %v8332_v42, 0.0 }
 0xe53   :  { %2131 = vadd.xlane.f32.xlu0 %v2130_v10 }
 0xedf   :  { %v2135_v33 = vpop.xlane.xlu1 %2134 }
 0xee0   :  { %8333 = vrcp.f32 %v2135_v33  ;;  %v2132_v44 = vpop.xlane.xlu0 %2131 }
 0xee1   :  { %8335 = vrcp.f32 %v2132_v44 }
 0xee2   :  { %v7711_v45 = vpop.f32.mrb[24].mxu0 }
 0xee3   :  { %v2489_v46 = vpop.f32.mrb[25].mxu0 }
 0xee6   :  { %v7721_v38 = vpop.f32.mrb[26].mxu0 }
 0xee7   :  { %v2665_v47 = vmul.f32 0.35355338, %v7721_v38  ;;  %v2655_v48 = vpop.f32.mrb[27].mxu0 }
 0xee8   :  { %v2664_v49 = vmul.f32 0.35355338, %v2655_v48  ;;  %v2929_v48 = vld [vmem:[%s9709_s2 + $0x10] sm:$0xff] }
 0xee9   :  { %v2669_v51 = vsel %vm638_vm5, %v2665_v47, -inf }
 0xeea   :  { %v8334_v52 = vpop.eup %8333  ;;  %2670 = vmax.xlane.f32.xlu1 %v2669_v51  ;;  %v2666_v53 = vsel %vm638_vm5, %v2664_v49, -inf }
 0xeeb   :  { %v8336_v57 = vpop.eup %8335  ;;  %2667 = vmax.xlane.f32.xlu0 %v2666_v53  ;;  %v2139_v15 = vmul.f32 %v8334_v52, %v8330_v35 }
 0xeec   :  { %v2137_v12 = vmul.f32 %v8336_v57, %v8332_v42 }
 0xeee   :  { %7694 = vmatprep.mubr.msk.f32.mxu1 %vm638_vm5, %v2137_v12 }
 0xeef   :  { %7695 = vmatmul.mubr.msk.f32.vlgmr.msra.gmra.mrb[34].mxu1 %vm638_vm5, %v2139_v15 }
 0xef0   :  { %7698 = vmatpush3.msra.mxu1 %v8666_v55  ;;  %v828_v55 = vsub.s32 0, %v8939_v19 }
 0xef1   :  { %7712 = vmatprep.subr.mxu1 %v8674_v63 }
 0xef2   :  { %v829_v60 = vrot.slane %v422_v59, %v828_v55 }
 0xef4   :  { %v8235_v2 = vadd.f32 %v8876_v41, %v829_v60  ;;  %v8236_v28 = vadd.f32 %v8878_v61, %v829_v60 }
 0xef6   :  { %v8951_v6 = vadd.f32 %v8235_v2, %v8613_v56  ;;  %v8955_v9 = vadd.f32 %v8236_v28, %v8606_v50 }
 0xef8   :  { %v2862_v11 = vsel %vm162_vm1, %v8951_v6, 0.0  ;;  %v2859_v41 = vsel %vm162_vm1, %v8955_v9, 0.0 }
 0xf77   :  { %v2671_v54 = vpop.xlane.xlu1 %2670 }
 0xf78   :  { %v2673_v17 = vsub.f32 %v2665_v47, %v2671_v54  ;;  %v2668_v18 = vpop.xlane.xlu0 %2667 }
 0xf79   :  { %v2672_v20 = vsub.f32 %v2664_v49, %v2668_v18  ;;  %v2930_v49 = vld [vmem:[%s9709_s2 + $0x18] sm:$0xff] }
 0xf7a   :  { %v2676_v22 = vmul.f32 1.442695, %v2673_v17  ;;  %v8093_v51 = vpack.c.bf16 %v2930_v49, %v2929_v48 }
 0xf7b   :  { %v2674_v58 = vmul.f32 1.442695, %v2672_v20 }
 0xf7c   :  { %8337 = vpow2.f32 %v2676_v22 }
 0xf7d   :  { %8339 = vpow2.f32 %v2674_v58 }
 0xf86   :  { %v8338_v3 = vpop.eup %8337 }
 0xf87   :  { %v8340_v4 = vpop.eup %8339  ;;  %v2681_v7 = vsel %vm638_vm5, %v8338_v3, 0.0 }
 0xf88   :  { %2682 = vadd.xlane.f32.xlu1 %v2681_v7  ;;  %v2678_v31 = vsel %vm638_vm5, %v8340_v4, 0.0 }
 0xf89   :  { %2679 = vadd.xlane.f32.xlu0 %v2678_v31 }
 0xf8c   :  { %2863 = vadd.xlane.f32.xlu1 %v2862_v11  ;;  %v7167_v11 = vld [vmem:[%s9707_s1 + $0x167] ss:$0 sm:$0xff] }
 0xf8d   :  { %2860 = vadd.xlane.f32.xlu0 %v2859_v41 }
 0xfc2   :  { %v7696_v61 = vpop.f32.mrb[34].mxu1 }
 0xfc3   :  { %v2215_v56 = vpop.f32.mrb[35].mxu1 }
 0xfc4   :  { %7699 = vmatprep.mubr.msk.f32.mxu1 %vm554_vm4, %v2215_v56 }
 0xfc5   :  { %7700 = vmatmul.mubr.msk.f32.vlgmr.msra.gmra.mrb[30].mxu1 %vm554_vm4, %v7696_v61 }
 0xfc6   :  { %7713 = vmatpush3.msra.mxu1 %v8674_v63  ;;  %7714 = vmatprep.mubr.msk.f32.mxu1 %vm554_vm4, %v2489_v46 }
 0xfc7   :  { %7722 = vmatprep.subr.msk.mxu1 %vm638_vm5, %v8888_v40 }
 0xfcd   :  { %7715 = vmatmul.mubr.msk.f32.vlgmr.msra.gmra.mrb[30].mxu1 %vm554_vm4, %v7711_v45 }
 0xfce   :  { %7723 = vmatpush3.xpose.msk.msra.mxu1 %vm638_vm5, %v8888_v40 }
 0xfcf   :  { %7727 = vmatprep.subr.mxu1 %v8679_v1 }
0x1015   :  { %v2683_v50 = vpop.xlane.xlu1 %2682 }
0x1016   :  { %8341 = vrcp.f32 %v2683_v50  ;;  %v2680_v14 = vpop.xlane.xlu0 %2679 }
0x1017   :  { %8343 = vrcp.f32 %v2680_v14  ;;  %v3069_v14 = vld [vmem:[%s9707_s1 + $0x168] sm:$0xff] }
0x1019   :  { %v2864_v40 = vpop.xlane.xlu1 %2863 }
0x101a   :  { %v2861_v29 = vpop.xlane.xlu0 %2860  ;;  %v2872_v27 = vmul.f32 0.03125, %v2864_v40  ;;  %v3074_v40 = vld [vmem:[%s9707_s1 + $0x190] sm:$0xff] }
0x101b   :  { %v2871_v32 = vmul.f32 0.03125, %v2861_v29 }
0x101c   :  { %v2876_v36 = vsub.f32 %v8951_v6, %v2872_v27  ;;  %v3075_v27 = vld [vmem:[%s9707_s1 + $0x198] sm:$0xff] }
0x101d   :  { %v2875_v35 = vsub.f32 %v8955_v9, %v2871_v32  ;;  %v3076_v32 = vld [vmem:[%s9707_s1 + $0x1a0] sm:$0xff] }
0x101e   :  { %v2880_v33 = vmul.f32 %v2876_v36, %v2876_v36 }
0x101f   :  { %v2879_v45 = vmul.f32 %v2875_v35, %v2875_v35 }
0x1020   :  { %v8342_v23 = vpop.eup %8341  ;;  %v2886_v46 = vsel %vm162_vm1, %v2880_v33, 0.0  ;;  %v3081_v33 = vld [vmem:[%s9707_s1 + $0x1c8] sm:$0xff] }
0x1021   :  { %v8344_v24 = vpop.eup %8343  ;;  %v2687_v63 = vmul.f32 %v8342_v23, %v8338_v3  ;;  %v2883_v38 = vsel %vm162_vm1, %v2879_v45, 0.0  ;;  %v9018_v3 = vld [vmem:[%s9707_s1 + $0x166] ss:$0 sm:$0xff]  ;;  %v3070_v23 = vld [vmem:[%s9707_s1 + $0x170] sm:$0xff] }
0x1022   :  { %v2685_v25 = vmul.f32 %v8344_v24, %v8340_v4  ;;  %v8097_v24 = vpack.c.bf16 %v3070_v23, %v3069_v14 }
0x1024   :  { %7724 = vmatprep.mubr.msk.f32.mxu1 %vm638_vm5, %v2685_v25  ;;  %v3071_v25 = vld [vmem:[%s9707_s1 + $0x178] sm:$0xff] }
0x1025   :  { %7725 = vmatmul.mubr.msk.f32.vlgmr.msra.gmra.mrb[36].mxu1 %vm638_vm5, %v2687_v63  ;;  %v3072_v63 = vld [vmem:[%s9707_s1 + $0x180] sm:$0xff] }
0x1026   :  { %7728 = vmatpush3.msra.mxu1 %v8679_v1 }
0x1027   :  { %8098 = vmatprep.subr.bf16.mxu1 %v8097_v24 }
0x10f8   :  { %v7726_v30 = vpop.f32.mrb[36].mxu1 }
0x10f9   :  { %v2763_v26 = vpop.f32.mrb[37].mxu1 }
0x10fa   :  { %7729 = vmatprep.mubr.msk.f32.mxu1 %vm554_vm4, %v2763_v26  ;;  %v3073_v26 = vld [vmem:[%s9707_s1 + $0x188] sm:$0xff] }
0x10fb   :  { %7730 = vmatmul.mubr.msk.f32.vlgmr.msra.gmra.mrb[30].mxu1 %vm554_vm4, %v7726_v30  ;;  %v8101_v30 = vpack.c.bf16 %v3072_v63, %v3071_v25  ;;  %v8105_v29 = vpack.c.bf16 %v3074_v40, %v3073_v26 }
0x10fc   :  { %8100 = vmatpush3.bf16.msra.mxu1 %v8097_v24 }
0x10fd   :  { %8102 = vmatprep.subr.bf16.mxu1 %v8101_v30 }
0x1100   :  { %8104 = vmatpush3.bf16.msra.mxu1 %v8101_v30 }
0x1101   :  { %8106 = vmatprep.subr.bf16.mxu1 %v8105_v29 }
0x1104   :  { %8108 = vmatpush3.bf16.msra.mxu1 %v8105_v29 }
0x11ce   :  { %v7731_v34 = vpop.f32.mrb[30].mxu1 }
0x11cf   :  { %v8237_v37 = vadd.f32 %v7731_v34, %v829_v60  ;;  %v2844_v39 = vpop.f32.mrb[31].mxu1  ;;  %v8109_v34 = vpack.c.bf16 %v3076_v32, %v3075_v27 }
0x11d0   :  { %v8238_v42 = vadd.f32 %v2844_v39, %v829_v60 }
0x11d1   :  { %v8980_v1 = vadd.f32 %v8237_v37, %v8627_v5  ;;  %v2928_v5 = vld [vmem:[%s9709_s2 + $0x8] sm:$0xff]  ;;  %v3078_v37 = vld [vmem:[%s9707_s1 + $0x1b0] sm:$0xff]  ;;  %8110 = vmatprep.subr.bf16.mxu1 %v8109_v34 }
0x11d2   :  { %v8983_v43 = vadd.f32 %v8238_v42, %v8620_v62  ;;  %v2927_v62 = vld [vmem:[%s9709_s2] sm:$0xff]  ;;  %8112 = vmatpush3.bf16.msra.mxu1 %v8109_v34 }
0x11d3   :  { %v2868_v10 = vsel %vm162_vm1, %v8980_v1, 0.0  ;;  %v8089_v47 = vpack.c.bf16 %v2928_v5, %v2927_v62  ;;  %v3080_v42 = vld [vmem:[%s9707_s1 + $0x1c0] sm:$0xff] }
0x11d4   :  { %2869 = vadd.xlane.f32.xlu1 %v2868_v10  ;;  %v2865_v44 = vsel %vm162_vm1, %v8983_v43, 0.0 }
0x11d5   :  { %2866 = vadd.xlane.f32.xlu0 %v2865_v44  ;;  %8090 = vmatprep.subr.bf16.mxu0 %v8089_v47  ;;  %v3082_v44 = vld [vmem:[%s9707_s1 + $0x1d0] sm:$0xff] }
0x11d6   :  { %8092 = vmatpush3.bf16.msra.mxu0 %v8089_v47  ;;  %v8121_v45 = vpack.c.bf16 %v3082_v44, %v3081_v33 }
0x11d7   :  { %8094 = vmatprep.subr.bf16.mxu0 %v8093_v51 }
0x11d8   :  { %2887 = vadd.xlane.f32.xlu1 %v2886_v46  ;;  %v3083_v46 = vld [vmem:[%s9707_s1 + $0x1d8] sm:$0xff] }
0x11d9   :  { %2884 = vadd.xlane.f32.xlu0 %v2883_v38  ;;  %v3084_v38 = vld [vmem:[%s9707_s1 + $0x1e0] sm:$0xff] }
0x11da   :  { %8096 = vmatpush3.bf16.msra.mxu0 %v8093_v51  ;;  %v8125_v62 = vpack.c.bf16 %v3084_v38, %v3083_v46 }
0x1261   :  { %v2870_v52 = vpop.xlane.xlu1 %2869 }
0x1262   :  { %v2874_v53 = vmul.f32 0.03125, %v2870_v52  ;;  %v2867_v57 = vpop.xlane.xlu0 %2866 }
0x1263   :  { %v2873_v12 = vmul.f32 0.03125, %v2867_v57 }
0x1264   :  { %v9004_v15 = vsub.f32 %v8980_v1, %v2874_v53 }
0x1265   :  { %v9007_v16 = vsub.f32 %v8983_v43, %v2873_v12  ;;  %v2888_v54 = vpop.xlane.xlu1 %2887 }
0x1266   :  { %v2896_v17 = vmul.f32 0.03125, %v2888_v54  ;;  %v2885_v18 = vpop.xlane.xlu0 %2884  ;;  %v2882_v20 = vmul.f32 %v9004_v15, %v9004_v15 }
0x1267   :  { %v2895_v21 = vmul.f32 0.03125, %v2885_v18  ;;  %v2881_v22 = vmul.f32 %v9007_v16, %v9007_v16 }
0x1268   :  { %v2900_v58 = vadd.f32 1e-06, %v2896_v17  ;;  %v2892_v59 = vsel %vm162_vm1, %v2882_v20, 0.0 }
0x1269   :  { %v2899_v60 = vadd.f32 1e-06, %v2895_v21  ;;  %2893 = vadd.xlane.f32.xlu1 %v2892_v59  ;;  %v2889_v2 = vsel %vm162_vm1, %v2881_v22, 0.0  ;;  %v7168_v22 = vld [vmem:[%s9709_s2 + $0x20] ss:$0 sm:$0xff] }
0x126a   :  { %8345 = vrsqrt.f32 %v2900_v58  ;;  %2890 = vadd.xlane.f32.xlu0 %v2889_v2 }
0x126b   :  { %8347 = vrsqrt.f32 %v2899_v60 }
0x1274   :  { %v8346_v28 = vpop.eup %8345 }
0x1275   :  { %v8348_v4 = vpop.eup %8347  ;;  %v2908_v7 = vmul.f32 %v8346_v28, %v2876_v36  ;;  %v3077_v36 = vld [vmem:[%s9707_s1 + $0x1a8] sm:$0xff] }
0x1276   :  { %v2907_v31 = vmul.f32 %v8348_v4, %v2875_v35  ;;  %v8113_v39 = vpack.c.bf16 %v3078_v37, %v3077_v36  ;;  %v3079_v35 = vld [vmem:[%s9707_s1 + $0x1b8] sm:$0xff] }
0x1277   :  { %v2916_v41 = vmul.f32 %v9018_v3, %v2908_v7  ;;  %v8117_v10 = vpack.c.bf16 %v3080_v42, %v3079_v35 }
0x1278   :  { %v2915_v61 = vmul.f32 %v9018_v3, %v2907_v31  ;;  %8114 = vmatprep.subr.bf16.mxu1 %v8113_v39 }
0x1279   :  { %v2924_v50 = vadd.f32 %v7167_v11, %v2916_v41  ;;  %8116 = vmatpush3.bf16.msra.mxu1 %v8113_v39 }
0x127a   :  { %v2923_v56 = vadd.f32 %v7167_v11, %v2915_v61  ;;  %8118 = vmatprep.subr.bf16.mxu1 %v8117_v10 }
0x127c   :  { %7740 = vmatprep.mubr.msk.f32.mxu0 %vm162_vm1, %v2923_v56 }
0x127d   :  { %7741 = vmatmul.mubr.msk.f32.vlgmr.msra.gmra.mrb[28].mxu0 %vm162_vm1, %v2924_v50  ;;  %8120 = vmatpush3.bf16.msra.mxu1 %v8117_v10 }
0x127e   :  { %8122 = vmatprep.subr.bf16.mxu1 %v8121_v45 }
0x1281   :  { %8124 = vmatpush3.bf16.msra.mxu1 %v8121_v45 }
0x1282   :  { %8126 = vmatprep.subr.bf16.mxu1 %v8125_v62 }
0x1285   :  { %8128 = vmatpush3.bf16.msra.mxu1 %v8125_v62 }
0x12f6   :  { %v2894_v5 = vpop.xlane.xlu1 %2893 }
0x12f7   :  { %v2898_v47 = vmul.f32 0.03125, %v2894_v5  ;;  %v2891_v48 = vpop.xlane.xlu0 %2890 }
0x12f8   :  { %v2897_v49 = vmul.f32 0.03125, %v2891_v48 }
0x12f9   :  { %v2902_v51 = vadd.f32 1e-06, %v2898_v47 }
0x12fa   :  { %v2901_v52 = vadd.f32 1e-06, %v2897_v49 }
0x12fb   :  { %8349 = vrsqrt.f32 %v2902_v51 }
0x12fc   :  { %8351 = vrsqrt.f32 %v2901_v52  ;;  %v7173_v52 = vld [vmem:[%s9707_s1 + $0x1e8] ss:$0 sm:$0xff] }
0x1305   :  { %v8350_v53 = vpop.eup %8349 }
0x1306   :  { %v8352_v57 = vpop.eup %8351  ;;  %v2910_v12 = vmul.f32 %v8350_v53, %v9004_v15 }
0x1307   :  { %v2909_v54 = vmul.f32 %v8352_v57, %v9007_v16 }
0x1308   :  { %v2918_v17 = vmul.f32 %v9018_v3, %v2910_v12 }
0x1309   :  { %v2917_v18 = vmul.f32 %v9018_v3, %v2909_v54 }
0x130a   :  { %v2926_v21 = vadd.f32 %v7167_v11, %v2918_v17 }
0x130b   :  { %v2925_v20 = vadd.f32 %v7167_v11, %v2917_v18 }
0x130d   :  { %7743 = vmatprep.mubr.msk.f32.mxu0 %vm162_vm1, %v2925_v20 }
0x130e   :  { %7744 = vmatmul.mubr.msk.f32.gmra.mrb[30].mxu0 %vm162_vm1, %v2926_v21 }
0x1350   :  { %v7742_v58 = vpop.f32.mrb[28].mxu0 }
0x1351   :  { %v3020_v59 = vadd.f32 %v7742_v58, %v7168_v22  ;;  %v3014_v60 = vpop.f32.mrb[29].mxu0 }
0x1352   :  { %v3015_v15 = vadd.f32 %v7168_v22, %v3014_v60 }
0x1353   :  { %v3038_v2 = vmul.f32 0.044715, %v3020_v59  ;;  %v3034_v25 = vmul.f32 0.5, %v3020_v59 }
0x1354   :  { %v3037_v16 = vmul.f32 0.044715, %v3015_v15  ;;  %v3033_v23 = vmul.f32 0.5, %v3015_v15 }
0x1355   :  { %v3042_v28 = vmul.f32 %v3038_v2, %v3020_v59 }
0x1356   :  { %v3041_v4 = vmul.f32 %v3037_v16, %v3015_v15 }
0x1357   :  { %v3046_v7 = vmul.f32 %v3042_v28, %v3020_v59 }
0x1358   :  { %v3045_v3 = vmul.f32 %v3041_v4, %v3015_v15 }
0x1359   :  { %v3050_v31 = vadd.f32 %v3046_v7, %v3020_v59 }
0x135a   :  { %v3049_v11 = vadd.f32 %v3045_v3, %v3015_v15 }
0x135b   :  { %v3054_v41 = vmul.f32 0.7978846, %v3050_v31 }
0x135c   :  { %v3053_v61 = vmul.f32 0.7978846, %v3049_v11 }
0x135d   :  { %8353 = vtanh.f32 %v3054_v41  ;;  %v3253_v41 = vld [vmem:[%s9707_s1 + $0x1eb] sm:$0xff] }
0x135e   :  { %8355 = vtanh.f32 %v3053_v61  ;;  %v3254_v61 = vld [vmem:[%s9707_s1 + $0x1f3] sm:$0xff] }
0x1367   :  { %v8354_v56 = vpop.eup %8353 }
0x1368   :  { %v8356_v50 = vpop.eup %8355  ;;  %v3062_v14 = vadd.f32 1.0, %v8354_v56  ;;  %v8129_v56 = vpack.c.bf16 %v3254_v61, %v3253_v41  ;;  %v9185_v41 = vld [vmem:[%s9707_s1 + $0x214] sm:$0xff]  ;;  %v9190_v61 = vld [vmem:[%s9707_s1 + $0x21c] sm:$0xff] }
0x1369   :  { %v3061_v24 = vadd.f32 1.0, %v8356_v50  ;;  %v3255_v50 = vld [vmem:[%s9707_s1 + $0x1fb] sm:$0xff] }
0x136a   :  { %v3066_v30 = vmul.f32 %v3062_v14, %v3034_v25  ;;  %8130 = vmatprep.subr.bf16.mxu0 %v8129_v56  ;;  %v3256_v14 = vld [vmem:[%s9707_s1 + $0x203] sm:$0xff] }
0x136b   :  { %v3065_v63 = vmul.f32 %v3061_v24, %v3033_v23  ;;  %8132 = vmatpush3.bf16.msra.mxu0 %v8129_v56  ;;  %v8133_v23 = vpack.c.bf16 %v3256_v14, %v3255_v50  ;;  %v9199_v56 = vld [vmem:[%s9707_s1 + $0x224] sm:$0xff]  ;;  %v9204_v50 = vld [vmem:[%s9707_s1 + $0x22c] sm:$0xff]  ;;  %v9213_v14 = vld [vmem:[%s9707_s1 + $0x234] sm:$0xff] }
0x136d   :  { %7778 = vmatprep.mubr.f32.mxu1 %v3065_v63  ;;  %8134 = vmatprep.subr.bf16.mxu0 %v8133_v23 }
0x136e   :  { %7779 = vmatmul.mubr.f32.vlgmr.msra.gmra.mrb[38].mxu1 %v3066_v30 }
0x136f   :  { %8136 = vmatpush3.bf16.msra.mxu0 %v8133_v23  ;;  %v9220_v23 = vld [vmem:[%s9707_s1 + $0x20b] ss:$0 sm:$0xff] }
0x1370   :  { %8137 = vmatprep.subr.bf16.mxu0 %v8457_v0 }
0x13e1   :  { %v7745_v26 = vpop.f32.mrb[30].mxu0 }
0x13e2   :  { %v3030_v40 = vadd.f32 %v7745_v26, %v7168_v22  ;;  %v3024_v29 = vpop.f32.mrb[31].mxu0 }
0x13e3   :  { %v3025_v27 = vadd.f32 %v7168_v22, %v3024_v29 }
0x13e4   :  { %v3040_v32 = vmul.f32 0.044715, %v3030_v40  ;;  %v3036_v47 = vmul.f32 0.5, %v3030_v40 }
0x13e5   :  { %v3039_v34 = vmul.f32 0.044715, %v3025_v27  ;;  %v3035_v62 = vmul.f32 0.5, %v3025_v27 }
0x13e6   :  { %v3044_v36 = vmul.f32 %v3040_v32, %v3030_v40 }
0x13e7   :  { %v3043_v37 = vmul.f32 %v3039_v34, %v3025_v27 }
0x13e8   :  { %v3048_v39 = vmul.f32 %v3044_v36, %v3030_v40 }
0x13e9   :  { %v3047_v35 = vmul.f32 %v3043_v37, %v3025_v27 }
0x13ea   :  { %v3052_v42 = vadd.f32 %v3048_v39, %v3030_v40 }
0x13eb   :  { %v3051_v10 = vadd.f32 %v3047_v35, %v3025_v27 }
0x13ec   :  { %v3056_v33 = vmul.f32 0.7978846, %v3052_v42 }
0x13ed   :  { %v3055_v44 = vmul.f32 0.7978846, %v3051_v10 }
0x13ee   :  { %8357 = vtanh.f32 %v3056_v33 }
0x13ef   :  { %8359 = vtanh.f32 %v3055_v44  ;;  %v7174_v44 = vld [vmem:[%s9707_s1 + $0x1e9] ss:$0 sm:$0xff] }
0x13f8   :  { %v8358_v45 = vpop.eup %8357 }
0x13f9   :  { %v8360_v46 = vpop.eup %8359  ;;  %v3064_v38 = vadd.f32 1.0, %v8358_v45 }
0x13fa   :  { %v3063_v5 = vadd.f32 1.0, %v8360_v46 }
0x13fb   :  { %v3068_v49 = vmul.f32 %v3064_v38, %v3036_v47  ;;  %v9137_v47 = vld [vmem:[%s9707_s1 + $0x24d] sm:$0xff] }
0x13fc   :  { %v3067_v48 = vmul.f32 %v3063_v5, %v3035_v62  ;;  %v7175_v62 = vld [vmem:[%s9707_s1 + $0x1ea] ss:$0 sm:$0xff] }
0x13fe   :  { %7781 = vmatprep.mubr.f32.mxu1 %v3067_v48  ;;  %v9142_v48 = vld [vmem:[%s9707_s1 + $0x255] sm:$0xff] }
0x13ff   :  { %7782 = vmatmul.mubr.f32.gmra.mrb[40].mxu1 %v3068_v49 }
0x1441   :  { %v7780_v51 = vpop.f32.mrb[38].mxu1 }
0x1442   :  { %v3171_v53 = vadd.f32 %v7780_v51, %v8951_v6  ;;  %v3151_v57 = vpop.f32.mrb[39].mxu1 }
0x1443   :  { %v3170_v12 = vadd.f32 %v3151_v57, %v8955_v9  ;;  %v9149_v57 = vld [vmem:[%s9707_s1 + $0x25d] sm:$0xff] }
0x1444   :  { %v9089_v54 = vadd.f32 %v7173_v52, %v3171_v53 }
0x1445   :  { %v9091_v17 = vadd.f32 %v7173_v52, %v3170_v12  ;;  %v9154_v12 = vld [vmem:[%s9707_s1 + $0x265] sm:$0xff] }
0x1446   :  { %v3188_v18 = vsel %vm162_vm1, %v9089_v54, 0.0 }
0x1447   :  { %3189 = vadd.xlane.f32.xlu1 %v3188_v18  ;;  %v3185_v20 = vsel %vm162_vm1, %v9091_v17, 0.0  ;;  %v8141_v18 = vpack.c.bf16 %v9154_v12, %v9149_v57 }
0x1448   :  { %3186 = vadd.xlane.f32.xlu0 %v3185_v20 }
0x14d2   :  { %v7783_v21 = vpop.f32.mrb[40].mxu1 }
0x14d3   :  { %v3173_v22 = vadd.f32 %v7783_v21, %v8980_v1  ;;  %v3161_v58 = vpop.f32.mrb[41].mxu1 }
0x14d4   :  { %v3172_v6 = vadd.f32 %v3161_v58, %v8983_v43  ;;  %v3190_v59 = vpop.xlane.xlu1 %3189 }
0x14d5   :  { %v9099_v9 = vadd.f32 %v7173_v52, %v3173_v22  ;;  %v3198_v60 = vmul.f32 0.03125, %v3190_v59  ;;  %v3187_v15 = vpop.xlane.xlu0 %3186 }
0x14d6   :  { %v9101_v2 = vadd.f32 %v7173_v52, %v3172_v6  ;;  %v3197_v16 = vmul.f32 0.03125, %v3187_v15  ;;  %v8138_v52 = vpack.c.bf16 %v9142_v48, %v9137_v47 }
0x14d7   :  { %v3202_v28 = vsub.f32 %v9089_v54, %v3198_v60  ;;  %v3194_v4 = vsel %vm162_vm1, %v9099_v9, 0.0 }
0x14d8   :  { %v3201_v7 = vsub.f32 %v9091_v17, %v3197_v16  ;;  %3195 = vadd.xlane.f32.xlu1 %v3194_v4  ;;  %v3191_v1 = vsel %vm162_vm1, %v9101_v2, 0.0 }
0x14d9   :  { %3192 = vadd.xlane.f32.xlu0 %v3191_v1  ;;  %v3206_v43 = vmul.f32 %v3202_v28, %v3202_v28 }
0x14da   :  { %v3205_v3 = vmul.f32 %v3201_v7, %v3201_v7 }
0x14db   :  { %v3212_v31 = vsel %vm162_vm1, %v3206_v43, 0.0 }
0x14dc   :  { %3213 = vadd.xlane.f32.xlu1 %v3212_v31  ;;  %v3209_v11 = vsel %vm162_vm1, %v3205_v3, 0.0  ;;  %v3371_v31 = vld [vmem:[%s9707_s1 + $0x24c] sm:$0x1] }
0x14dd   :  { %3210 = vadd.xlane.f32.xlu0 %v3209_v11  ;;  %v9175_v11 = vld [vmem:[%s9707_s1 + $0x20c] sm:$0xff] }
0x1565   :  { %v3196_v24 = vpop.xlane.xlu1 %3195 }
0x1566   :  { %v3200_v25 = vmul.f32 0.03125, %v3196_v24  ;;  %v3193_v63 = vpop.xlane.xlu0 %3192 }
0x1567   :  { %v3199_v30 = vmul.f32 0.03125, %v3193_v63 }
0x1568   :  { %v3204_v26 = vsub.f32 %v9099_v9, %v3200_v25 }
0x1569   :  { %v3203_v40 = vsub.f32 %v9101_v2, %v3199_v30  ;;  %v3214_v29 = vpop.xlane.xlu1 %3213 }
0x156a   :  { %v3222_v27 = vmul.f32 0.03125, %v3214_v29  ;;  %v3211_v32 = vpop.xlane.xlu0 %3210  ;;  %v3208_v34 = vmul.f32 %v3204_v26, %v3204_v26 }
0x156b   :  { %v3221_v36 = vmul.f32 0.03125, %v3211_v32  ;;  %v3207_v37 = vmul.f32 %v3203_v40, %v3203_v40 }
0x156c   :  { %v3226_v39 = vadd.f32 1e-06, %v3222_v27  ;;  %v3218_v35 = vsel %vm162_vm1, %v3208_v34, 0.0 }
0x156d   :  { %v3225_v42 = vadd.f32 1e-06, %v3221_v36  ;;  %3219 = vadd.xlane.f32.xlu1 %v3218_v35  ;;  %v3215_v10 = vsel %vm162_vm1, %v3207_v37, 0.0 }
0x156e   :  { %8361 = vrsqrt.f32 %v3226_v39  ;;  %3216 = vadd.xlane.f32.xlu0 %v3215_v10  ;;  %v9256_v10 = vld [vmem:[%s9707_s1 + $0x244] sm:$0xff] }
0x156f   :  { %8363 = vrsqrt.f32 %v3225_v42  ;;  %v9251_v42 = vld [vmem:[%s9707_s1 + $0x23c] sm:$0xff] }
0x1578   :  { %v8362_v33 = vpop.eup %8361 }
0x1579   :  { %v8364_v45 = vpop.eup %8363  ;;  %v3234_v46 = vmul.f32 %v8362_v33, %v3202_v28 }
0x157a   :  { %v3233_v38 = vmul.f32 %v8364_v45, %v3201_v7 }
0x157b   :  { %v3242_v5 = vmul.f32 %v7174_v44, %v3234_v46 }
0x157c   :  { %v3241_v49 = vmul.f32 %v7174_v44, %v3233_v38 }
0x157d   :  { %v3250_v53 = vadd.f32 %v7175_v62, %v3242_v5 }
0x157e   :  { %v3249_v51 = vadd.f32 %v7175_v62, %v3241_v49 }
0x1580   :  { %7792 = vmatprep.mubr.msk.f32.mxu0 %vm162_vm1, %v3249_v51  ;;  %v8143_v20 = vpack.c.bf16 %v3250_v53, %v3249_v51 }
0x1581   :  { %7793 = vmatmul.mubr.msk.f32.vlgmr.msra.gmra.mrb[32].mxu0 %vm162_vm1, %v3250_v53 }
0x1582   :  { %8139 = vmatpush3.bf16.msra.mxu0 %v8138_v52 }
0x1583   :  { %8140 = vmatprep.subr.bf16.mxu0 %v8457_v0 }
0x1586   :  { %8142 = vmatpush3.bf16.msra.mxu0 %v8141_v18 }
0x1587   :  { %8145 = vmatprep.subr.msk.bf16.mxu0 %vm8687_vm2, %v8143_v20 }
0x15fa   :  { %v3220_v21 = vpop.xlane.xlu1 %3219 }
0x15fb   :  { %v3224_v22 = vmul.f32 0.03125, %v3220_v21  ;;  %v3217_v58 = vpop.xlane.xlu0 %3216 }
0x15fc   :  { %v3223_v6 = vmul.f32 0.03125, %v3217_v58 }
0x15fd   :  { %v3228_v59 = vadd.f32 1e-06, %v3224_v22 }
0x15fe   :  { %v3227_v60 = vadd.f32 1e-06, %v3223_v6 }
0x15ff   :  { %8365 = vrsqrt.f32 %v3228_v59 }
0x1600   :  { %8367 = vrsqrt.f32 %v3227_v60 }
0x1609   :  { %v8366_v15 = vpop.eup %8365 }
0x160a   :  { %v8368_v16 = vpop.eup %8367  ;;  %v3236_v28 = vmul.f32 %v8366_v15, %v3204_v26 }
0x160b   :  { %v3235_v4 = vmul.f32 %v8368_v16, %v3203_v40 }
0x160c   :  { %v3244_v7 = vmul.f32 %v7174_v44, %v3236_v28 }
0x160d   :  { %v3243_v1 = vmul.f32 %v7174_v44, %v3235_v4 }
0x160e   :  { %v3252_v0 = vadd.f32 %v7175_v62, %v3244_v7 }
0x160f   :  { %v3251_v43 = vadd.f32 %v7175_v62, %v3243_v1 }
0x1611   :  { %7795 = vmatprep.mubr.msk.f32.mxu0 %vm162_vm1, %v3251_v43  ;;  %v9164_v3 = vpack.c.bf16 %v3252_v0, %v3251_v43 }
0x1612   :  { %7796 = vmatmul.mubr.msk.f32.gmra.mrb[34].mxu0 %vm162_vm1, %v3252_v0 }
0x1613   :  { %7806 = vmatprep.mubr.msk.f32.mxu0 %vm8458_vm3, %v8459_v13 }
0x1616   :  { %7807 = vmatmul.mubr.msk.f32.vlgmr.msra.gmra.mrb[36].mxu0 %vm162_vm1, %v3371_v31 }
0x1617   :  { %8148 = vmatpush3.bf16.xpose.msk.msra.mxu0 %vm8687_vm2, %v8143_v20  ;;  %7813 = vmatprep.mubr.msk.f32.mxu0 %vm162_vm1, %v9175_v11 }
0x161e   :  { %7814 = vmatmul.mubr.msk.f32.vlgmr.msra.gmra.mrb[38].mxu0 %vm162_vm1, %v9185_v41 }
0x161f   :  { %7816 = vmatprep.mubr.msk.f32.mxu0 %vm162_vm1, %v9190_v61 }
0x1622   :  { %7817 = vmatmul.mubr.msk.f32.gmra.mrb[40].mxu0 %vm162_vm1, %v9199_v56 }
0x1623   :  { %7819 = vmatprep.mubr.msk.f32.mxu0 %vm162_vm1, %v9204_v50 }
0x1626   :  { %7820 = vmatmul.mubr.msk.f32.gmra.mrb[42].mxu0 %vm162_vm1, %v9213_v14 }
0x1627   :  { %7822 = vmatprep.mubr.msk.f32.mxu0 %vm162_vm1, %v9251_v42 }
0x162a   :  { %7823 = vmatmul.mubr.msk.f32.gmra.mrb[44].mxu0 %vm162_vm1, %v9256_v10 }
0x1654   :  { %v7794_v24 = vpop.f32.mrb[32].mxu0 }
0x1655   :  { %v3340_v25 = vpop.f32.mrb[33].mxu0  ;;  %v9234_v34 = vadd.f32 %v7794_v24, %v9220_v23 }
0x1656   :  { %v9223_v63 = vadd.f32 %v9220_v23, %v3340_v25 }
0x1658   :  { %7827 = vmatprep.mubr.msk.f32.mxu1 %vm554_vm4, %v9223_v63 }
0x16e5   :  { %v9227_v30 = vpop.f32.mrb[34].mxu0 }
0x16e6   :  { %v9229_v26 = vpop.f32.mrb[35].mxu0 }
0x16e9   :  { %v9231_v40 = vpop.f32.mrb[36].mxu0 }
0x16ea   :  { %v7808_v29 = vpop.f32.mrb[37].mxu0 }
0x16f1   :  { %v7815_v27 = vpop.f32.mrb[38].mxu0 }
0x16f2   :  { %v3536_v32 = vpop.f32.mrb[39].mxu0 }
0x16f3   :  { %7825 = vmatprep.subr.mxu1 %v3536_v32 }
0x16f4   :  { %7826 = vmatpush3.msra.mxu1 %v3536_v32 }
0x16f5   :  { %7828 = vmatmul.mubr.msk.f32.vlgmr.msra.gmra.mrb[42].mxu1 %vm554_vm4, %v9234_v34  ;;  %v9238_v36 = vpop.f32.mrb[40].mxu0  ;;  %7835 = vmatprep.subr.mxu1 %v9137_v47 }
0x16f6   :  { %v3546_v37 = vpop.f32.mrb[41].mxu0  ;;  %7836 = vmatpush3.msra.mxu1 %v9137_v47 }
0x16f9   :  { %v9242_v39 = vpop.f32.mrb[42].mxu0 }
0x16fa   :  { %v3556_v35 = vpop.f32.mrb[43].mxu0  ;;  %7845 = vmatprep.subr.msk.mxu1 %vm638_vm5, %v9242_v39 }
0x16fb   :  { %7830 = vmatprep.subr.msk.mxu0 %vm638_vm5, %v3556_v35 }
0x16fc   :  { %7831 = vmatpush3.xpose.msk.msra.mxu0 %vm638_vm5, %v3556_v35 }
0x16fd   :  { %7840 = vmatprep.subr.mxu0 %v7815_v27  ;;  %v9274_v6 = vpop.f32.mrb[44].mxu0 }
0x16fe   :  { %v3566_v59 = vpop.f32.mrb[45].mxu0 }
0x17c8   :  { %v7829_v33 = vpop.f32.mrb[42].mxu1 }
0x17c9   :  { %v3657_v44 = vmul.f32 0.35355338, %v7829_v33  ;;  %v3647_v45 = vpop.f32.mrb[43].mxu1 }
0x17ca   :  { %v3656_v46 = vmul.f32 0.35355338, %v3647_v45 }
0x17cb   :  { %v3661_v38 = vsel %vm638_vm5, %v3657_v44, -inf }
0x17cc   :  { %3662 = vmax.xlane.f32.xlu1 %v3661_v38  ;;  %v3658_v62 = vsel %vm638_vm5, %v3656_v46, -inf }
0x17cd   :  { %3659 = vmax.xlane.f32.xlu0 %v3658_v62 }
0x1859   :  { %v3663_v5 = vpop.xlane.xlu1 %3662 }
0x185a   :  { %v3665_v49 = vsub.f32 %v3657_v44, %v3663_v5  ;;  %v3660_v51 = vpop.xlane.xlu0 %3659 }
0x185b   :  { %v3664_v52 = vsub.f32 %v3656_v46, %v3660_v51 }
0x185c   :  { %v3668_v53 = vmul.f32 1.442695, %v3665_v49 }
0x185d   :  { %v3666_v18 = vmul.f32 1.442695, %v3664_v52 }
0x185e   :  { %8369 = vpow2.f32 %v3668_v53 }
0x185f   :  { %8371 = vpow2.f32 %v3666_v18 }
0x1868   :  { %v8370_v20 = vpop.eup %8369 }
0x1869   :  { %v8372_v21 = vpop.eup %8371  ;;  %v3673_v22 = vsel %vm638_vm5, %v8370_v20, 0.0 }
0x186a   :  { %3674 = vadd.xlane.f32.xlu1 %v3673_v22  ;;  %v3670_v58 = vsel %vm638_vm5, %v8372_v21, 0.0 }
0x186b   :  { %3671 = vadd.xlane.f32.xlu0 %v3670_v58 }
0x187b   :  { %3853 = vrot.lane.b32.xlu1 %v9234_v34, %s8460_s23 }
0x187f   :  { %4125 = vrot.lane.b32.xlu1 %v9223_v63, %s8461_s24 }
0x1881   :  { %3851 = vrot.lane.b32.xlu0 %v9223_v63, %s8460_s23 }
0x1883   :  { %4127 = vrot.lane.b32.xlu1 %v9234_v34, %s8461_s24 }
0x18f7   :  { %v3675_v60 = vpop.xlane.xlu1 %3674 }
0x18f8   :  { %8373 = vrcp.f32 %v3675_v60  ;;  %v3672_v15 = vpop.xlane.xlu0 %3671 }
0x18f9   :  { %8375 = vrcp.f32 %v3672_v15 }
0x18fb   :  { %v3854_v28 = vpop.permute.xlu1 %3853 }
0x18fc   :  { %v3852_v0 = vpop.permute.xlu0 %3851 }
0x18ff   :  { %v4126_v43 = vpop.permute.xlu1 %4125 }
0x1902   :  { %v8374_v16 = vpop.eup %8373 }
0x1903   :  { %v8376_v4 = vpop.eup %8375  ;;  %v3679_v1 = vmul.f32 %v8374_v16, %v8370_v20  ;;  %v4128_v31 = vpop.permute.xlu1 %4127 }
0x1904   :  { %v3677_v7 = vmul.f32 %v8376_v4, %v8372_v21 }
0x1906   :  { %7832 = vmatprep.mubr.msk.f32.mxu0 %vm638_vm5, %v3677_v7 }
0x1907   :  { %7833 = vmatmul.mubr.msk.f32.vlgmr.msra.gmra.mrb[46].mxu0 %vm638_vm5, %v3679_v1 }
0x1908   :  { %7841 = vmatpush3.msra.mxu0 %v7815_v27  ;;  %7842 = vmatprep.mubr.msk.f32.mxu0 %vm554_vm4, %v3852_v0 }
0x1909   :  { %7855 = vmatprep.subr.mxu0 %v3546_v37 }
0x190b   :  { %7843 = vmatmul.mubr.msk.f32.vlgmr.msra.gmra.mrb[48].mxu0 %vm554_vm4, %v3854_v28 }
0x190c   :  { %7856 = vmatpush3.msra.mxu0 %v3546_v37  ;;  %7857 = vmatprep.mubr.msk.f32.mxu0 %vm554_vm4, %v4126_v43 }
0x190d   :  { %7860 = vmatprep.subr.msk.mxu0 %vm638_vm5, %v3566_v59 }
0x190f   :  { %7858 = vmatmul.mubr.msk.f32.vlgmr.msra.gmra.mrb[50].mxu0 %vm554_vm4, %v4128_v31 }
0x1913   :  { %7861 = vmatpush3.xpose.msk.msra.mxu0 %vm638_vm5, %v3566_v59 }
0x1914   :  { %7870 = vmatprep.subr.mxu0 %v9238_v36 }
0x19da   :  { %v7834_v24 = vpop.f32.mrb[46].mxu0 }
0x19db   :  { %v3755_v25 = vpop.f32.mrb[47].mxu0 }
0x19dc   :  { %7837 = vmatprep.mubr.msk.f32.mxu1 %vm554_vm4, %v3755_v25 }
0x19dd   :  { %7838 = vmatmul.mubr.msk.f32.vlgmr.msra.gmra.mrb[44].mxu1 %vm554_vm4, %v7834_v24 }
0x19de   :  { %7846 = vmatpush3.xpose.msk.msra.mxu1 %vm638_vm5, %v9242_v39  ;;  %v7844_v29 = vpop.f32.mrb[48].mxu0 }
0x19df   :  { %v3925_v27 = vpop.f32.mrb[49].mxu0  ;;  %7850 = vmatprep.subr.mxu1 %v9142_v48  ;;  %v3935_v60 = vmul.f32 0.35355338, %v7844_v29 }
0x19e0   :  { %v3934_v46 = vmul.f32 0.35355338, %v3925_v27 }
0x19e1   :  { %v3939_v15 = vsel %vm638_vm5, %v3935_v60, -inf }
0x19e2   :  { %v7859_v32 = vpop.f32.mrb[50].mxu0  ;;  %v3936_v39 = vsel %vm638_vm5, %v3934_v46, -inf }
0x19e3   :  { %v4209_v37 = vmul.f32 0.35355338, %v7859_v32  ;;  %v4199_v35 = vpop.f32.mrb[51].mxu0 }
0x19e4   :  { %v4208_v33 = vmul.f32 0.35355338, %v4199_v35 }
0x19e5   :  { %v4213_v44 = vsel %vm638_vm5, %v4209_v37, -inf }
0x19e6   :  { %4214 = vmax.xlane.f32.xlu1 %v4213_v44  ;;  %v4210_v45 = vsel %vm638_vm5, %v4208_v33, -inf }
0x19e7   :  { %4211 = vmax.xlane.f32.xlu0 %v4210_v45 }
0x19f7   :  { %4401 = vrot.lane.b32.xlu1 %v9234_v34, %s8462_s25 }
0x1a1b   :  { %3937 = vmax.xlane.f32.xlu1 %v3936_v39 }
0x1a73   :  { %v4215_v38 = vpop.xlane.xlu1 %4214 }
0x1a74   :  { %v4217_v62 = vsub.f32 %v4209_v37, %v4215_v38  ;;  %v4212_v5 = vpop.xlane.xlu0 %4211 }
0x1a75   :  { %v4216_v49 = vsub.f32 %v4208_v33, %v4212_v5 }
0x1a76   :  { %v4220_v51 = vmul.f32 1.442695, %v4217_v62 }
0x1a77   :  { %v4218_v52 = vmul.f32 1.442695, %v4216_v49  ;;  %v4402_v34 = vpop.permute.xlu1 %4401 }
0x1a78   :  { %8377 = vpow2.f32 %v4220_v51 }
0x1a79   :  { %8379 = vpow2.f32 %v4218_v52 }
0x1a82   :  { %v8378_v53 = vpop.eup %8377 }
0x1a83   :  { %v4225_v18 = vsel %vm638_vm5, %v8378_v53, 0.0  ;;  %v8380_v20 = vpop.eup %8379 }
0x1a84   :  { %4226 = vadd.xlane.f32.xlu0 %v4225_v18  ;;  %v4222_v21 = vsel %vm638_vm5, %v8380_v20, 0.0 }
0x1a88   :  { %4223 = vadd.xlane.f32.xlu0 %v4222_v21 }
0x1a9e   :  { %4399 = vrot.lane.b32.xlu0 %v9223_v63, %s8462_s25 }
0x1aa8   :  { %v3938_v22 = vpop.xlane.xlu1 %3937 }
0x1aa9   :  { %v3942_v58 = vsub.f32 %v3934_v46, %v3938_v22 }
0x1aab   :  { %v3944_v59 = vmul.f32 1.442695, %v3942_v58 }
0x1aad   :  { %8381 = vpow2.f32 %v3944_v59 }
0x1ab7   :  { %v8382_v16 = vpop.eup %8381 }
0x1ab8   :  { %v3948_v28 = vsel %vm638_vm5, %v8382_v16, 0.0 }
0x1abd   :  { %3940 = vmax.xlane.f32.xlu0 %v3939_v15 }
0x1ac1   :  { %3949 = vadd.xlane.f32.xlu0 %v3948_v28  ;;  %v9354_v28 = vadd.f32 %v9220_v23, %v9229_v26 }
0x1b11   :  { %v4227_v4 = vpop.xlane.xlu0 %4226 }
0x1b12   :  { %8383 = vrcp.f32 %v4227_v4  ;;  %v9362_v4 = vadd.f32 %v9227_v30, %v9220_v23 }
0x1b15   :  { %v4224_v7 = vpop.xlane.xlu0 %4223 }
0x1b16   :  { %8385 = vrcp.f32 %v4224_v7 }
0x1b19   :  { %v4400_v31 = vpop.permute.xlu0 %4399 }
0x1b1c   :  { %v8384_v1 = vpop.eup %8383 }
0x1b1d   :  { %v4231_v43 = vmul.f32 %v8384_v1, %v8378_v53 }
0x1b20   :  { %v8386_v0 = vpop.eup %8385 }
0x1b21   :  { %v4229_v63 = vmul.f32 %v8386_v0, %v8380_v20 }
0x1b23   :  { %7862 = vmatprep.mubr.msk.f32.mxu0 %vm638_vm5, %v4229_v63 }
0x1b24   :  { %7863 = vmatmul.mubr.msk.f32.vlgmr.msra.gmra.mrb[52].mxu0 %vm638_vm5, %v4231_v43 }
0x1b25   :  { %7871 = vmatpush3.msra.mxu0 %v9238_v36  ;;  %7872 = vmatprep.mubr.msk.f32.mxu0 %vm554_vm4, %v4400_v31 }
0x1b26   :  { %8151 = vmatprep.subr.msk.bf16.mxu0 %vm8687_vm2, %v9164_v3 }
0x1b28   :  { %7873 = vmatmul.mubr.msk.f32.vlgmr.msra.gmra.mrb[54].mxu0 %vm554_vm4, %v4402_v34 }
0x1b29   :  { %7889 = vmatprep.mubr.msk.f32.mxu0 %vm162_vm1, %v9175_v11 }
0x1b2c   :  { %8154 = vmatpush3.bf16.xpose.msk.msra.mxu0 %vm8687_vm2, %v9164_v3 }
0x1b33   :  { %7890 = vmatmul.mubr.msk.f32.vlgmr.msra.gmra.mrb[56].mxu0 %vm162_vm1, %v9185_v41 }
0x1b34   :  { %7892 = vmatprep.mubr.msk.f32.mxu0 %vm162_vm1, %v9190_v61 }
0x1b37   :  { %7893 = vmatmul.mubr.msk.f32.gmra.mrb[58].mxu0 %vm162_vm1, %v9199_v56 }
0x1b38   :  { %7895 = vmatprep.mubr.msk.f32.mxu0 %vm162_vm1, %v9204_v50 }
0x1b3b   :  { %7896 = vmatmul.mubr.msk.f32.gmra.mrb[60].mxu0 %vm162_vm1, %v9213_v14 }
0x1b3c   :  { %7898 = vmatprep.mubr.msk.f32.mxu0 %vm162_vm1, %v9251_v42 }
0x1b3f   :  { %7899 = vmatmul.mubr.msk.f32.gmra.mrb[62].mxu0 %vm162_vm1, %v9256_v10 }
0x1b4a   :  { %v3941_v8 = vpop.xlane.xlu0 %3940 }
0x1b4b   :  { %v3943_v3 = vsub.f32 %v3935_v60, %v3941_v8 }
0x1b4d   :  { %v3946_v11 = vmul.f32 1.442695, %v3943_v3 }
0x1b4e   :  { %v3950_v41 = vpop.xlane.xlu0 %3949 }
0x1b4f   :  { %8387 = vpow2.f32 %v3946_v11 }
0x1b50   :  { %8389 = vrcp.f32 %v3950_v41 }
0x1b59   :  { %v8388_v61 = vpop.eup %8387 }
0x1b5a   :  { %v8390_v56 = vpop.eup %8389  ;;  %v3951_v36 = vsel %vm638_vm5, %v8388_v61, 0.0 }
0x1b5b   :  { %3952 = vadd.xlane.f32.xlu1 %v3951_v36  ;;  %v3955_v50 = vmul.f32 %v8390_v56, %v8382_v16 }
0x1b5d   :  { %7847 = vmatprep.mubr.msk.f32.mxu1 %vm638_vm5, %v3955_v50 }
0x1be8   :  { %v3953_v14 = vpop.xlane.xlu1 %3952 }
0x1be9   :  { %8391 = vrcp.f32 %v3953_v14 }
0x1bf3   :  { %v8392_v42 = vpop.eup %8391 }
0x1bf4   :  { %v3957_v24 = vmul.f32 %v8392_v42, %v8388_v61 }
0x1bf6   :  { %7848 = vmatmul.mubr.msk.f32.vlgmr.msra.gmra.mrb[46].mxu1 %vm638_vm5, %v3957_v24 }
0x1bf7   :  { %v7864_v10 = vpop.f32.mrb[52].mxu0  ;;  %7851 = vmatpush3.msra.mxu1 %v9142_v48 }
0x1bf8   :  { %v4307_v25 = vpop.f32.mrb[53].mxu0  ;;  %7865 = vmatprep.subr.mxu1 %v9149_v57 }
0x1bfb   :  { %v7874_v29 = vpop.f32.mrb[54].mxu0 }
0x1bfc   :  { %v4483_v27 = vmul.f32 0.35355338, %v7874_v29  ;;  %v4473_v32 = vpop.f32.mrb[55].mxu0 }
0x1bfd   :  { %v4482_v37 = vmul.f32 0.35355338, %v4473_v32 }
0x1bfe   :  { %v4487_v35 = vsel %vm638_vm5, %v4483_v27, -inf }
0x1bff   :  { %4488 = vmax.xlane.f32.xlu1 %v4487_v35  ;;  %v4484_v33 = vsel %vm638_vm5, %v4482_v37, -inf }
0x1c00   :  { %4485 = vmax.xlane.f32.xlu0 %v4484_v33 }
0x1c06   :  { %v9350_v60 = vpop.f32.mrb[56].mxu0 }
0x1c07   :  { %v4741_v15 = vpop.f32.mrb[57].mxu0 }
0x1c0a   :  { %v9374_v42 = vpop.f32.mrb[58].mxu0 }
0x1c0b   :  { %v9378_v24 = vpop.f32.mrb[59].mxu0 }
0x1c8c   :  { %v4489_v44 = vpop.xlane.xlu1 %4488 }
0x1c8d   :  { %v4491_v45 = vsub.f32 %v4483_v27, %v4489_v44  ;;  %v4486_v46 = vpop.xlane.xlu0 %4485 }
0x1c8e   :  { %v4490_v39 = vsub.f32 %v4482_v37, %v4486_v46 }
0x1c8f   :  { %v4494_v38 = vmul.f32 1.442695, %v4491_v45 }
0x1c90   :  { %v4492_v62 = vmul.f32 1.442695, %v4490_v39 }
0x1c91   :  { %8393 = vpow2.f32 %v4494_v38 }
0x1c92   :  { %8395 = vpow2.f32 %v4492_v62 }
0x1c9b   :  { %v8394_v5 = vpop.eup %8393 }
0x1c9c   :  { %v8396_v49 = vpop.eup %8395  ;;  %v4499_v51 = vsel %vm638_vm5, %v8394_v5, 0.0 }
0x1c9d   :  { %4500 = vadd.xlane.f32.xlu1 %v4499_v51  ;;  %v4496_v52 = vsel %vm638_vm5, %v8396_v49, 0.0 }
0x1c9e   :  { %4497 = vadd.xlane.f32.xlu0 %v4496_v52 }
0x1cc9   :  { %v7849_v53 = vpop.f32.mrb[46].mxu1 }
0x1cca   :  { %v4033_v18 = vpop.f32.mrb[47].mxu1 }
0x1ccb   :  { %7852 = vmatprep.mubr.msk.f32.mxu1 %vm554_vm4, %v4033_v18 }
0x1ccc   :  { %7853 = vmatmul.mubr.msk.f32.vlgmr.msra.gmra.mrb[44].mxu1 %vm554_vm4, %v7849_v53 }
0x1ccd   :  { %7866 = vmatpush3.msra.mxu1 %v9149_v57  ;;  %7867 = vmatprep.mubr.msk.f32.mxu1 %vm554_vm4, %v4307_v25 }
0x1cce   :  { %7875 = vmatprep.subr.msk.mxu1 %vm638_vm5, %v9274_v6 }
0x1cd4   :  { %7868 = vmatmul.mubr.msk.f32.vlgmr.msra.gmra.mrb[44].mxu1 %vm554_vm4, %v7864_v10  ;;  %v7897_v10 = vpop.f32.mrb[60].mxu0 }
0x1cd5   :  { %7876 = vmatpush3.xpose.msk.msra.mxu1 %vm638_vm5, %v9274_v6  ;;  %7921 = vmatprep.subr.msk.mxu0 %vm638_vm5, %v7897_v10  ;;  %v4761_v25 = vpop.f32.mrb[61].mxu0 }
0x1cd6   :  { %7880 = vmatprep.subr.mxu1 %v9154_v12  ;;  %7922 = vmatpush3.xpose.msk.msra.mxu0 %vm638_vm5, %v7897_v10 }
0x1cd7   :  { %7931 = vmatprep.subr.mxu0 %v9378_v24 }
0x1d2a   :  { %v4501_v20 = vpop.xlane.xlu1 %4500 }
0x1d2b   :  { %8397 = vrcp.f32 %v4501_v20  ;;  %v4498_v21 = vpop.xlane.xlu0 %4497 }
0x1d2c   :  { %8399 = vrcp.f32 %v4498_v21 }
0x1d35   :  { %v8398_v34 = vpop.eup %8397 }
0x1d36   :  { %v8400_v22 = vpop.eup %8399  ;;  %v4505_v59 = vmul.f32 %v8398_v34, %v8394_v5 }
0x1d37   :  { %v4503_v58 = vmul.f32 %v8400_v22, %v8396_v49 }
0x1d39   :  { %7877 = vmatprep.mubr.msk.f32.mxu1 %vm638_vm5, %v4503_v58 }
0x1d3a   :  { %7878 = vmatmul.mubr.msk.f32.vlgmr.msra.gmra.mrb[48].mxu1 %vm638_vm5, %v4505_v59 }
0x1d3b   :  { %7881 = vmatpush3.msra.mxu1 %v9154_v12 }
0x1d3c   :  { %7901 = vmatprep.subr.mxu1 %v4741_v15 }
0x1e0d   :  { %v7879_v6 = vpop.f32.mrb[48].mxu1 }
0x1e0e   :  { %v4581_v16 = vpop.f32.mrb[49].mxu1 }
0x1e0f   :  { %7882 = vmatprep.mubr.msk.f32.mxu1 %vm554_vm4, %v4581_v16 }
0x1e10   :  { %7883 = vmatmul.mubr.msk.f32.vlgmr.msra.gmra.mrb[44].mxu1 %vm554_vm4, %v7879_v6 }
0x1e11   :  { %7903 = vmatprep.mubr.msk.f32.mxu1 %vm554_vm4, %v9354_v28  ;;  %7902 = vmatpush3.msra.mxu1 %v4741_v15 }
0x1e12   :  { %7906 = vmatprep.subr.msk.mxu1 %vm638_vm5, %v4761_v25 }
0x1e14   :  { %7904 = vmatmul.mubr.msk.f32.vlgmr.msra.gmra.mrb[50].mxu1 %vm554_vm4, %v9362_v4 }
0x1e18   :  { %7907 = vmatpush3.xpose.msk.msra.mxu1 %vm638_vm5, %v4761_v25 }
0x1e19   :  { %7911 = vmatprep.subr.mxu1 %v9137_v47 }
0x1ee3   :  { %v9366_v7 = vpop.f32.mrb[44].mxu1 }
0x1ee4   :  { %v9368_v1 = vpop.f32.mrb[45].mxu1 }
0x1ee7   :  { %v7905_v26 = vpop.f32.mrb[50].mxu1 }
0x1ee8   :  { %v4862_v0 = vmul.f32 0.35355338, %v7905_v26  ;;  %v4852_v63 = vpop.f32.mrb[51].mxu1 }
0x1ee9   :  { %v4861_v43 = vmul.f32 0.35355338, %v4852_v63 }
0x1eea   :  { %v4866_v31 = vsel %vm638_vm5, %v4862_v0, -inf }
0x1eeb   :  { %4867 = vmax.xlane.f32.xlu1 %v4866_v31  ;;  %v4863_v8 = vsel %vm638_vm5, %v4861_v43, -inf }
0x1eec   :  { %4864 = vmax.xlane.f32.xlu0 %v4863_v8 }
0x1f78   :  { %v4868_v3 = vpop.xlane.xlu1 %4867 }
0x1f79   :  { %v4870_v23 = vsub.f32 %v4862_v0, %v4868_v3  ;;  %v4865_v30 = vpop.xlane.xlu0 %4864 }
0x1f7a   :  { %v4869_v11 = vsub.f32 %v4861_v43, %v4865_v30 }
0x1f7b   :  { %v4873_v41 = vmul.f32 1.442695, %v4870_v23 }
0x1f7c   :  { %v4871_v61 = vmul.f32 1.442695, %v4869_v11 }
0x1f7d   :  { %8401 = vpow2.f32 %v4873_v41 }
0x1f7e   :  { %8403 = vpow2.f32 %v4871_v61 }
0x1f87   :  { %v8402_v56 = vpop.eup %8401 }
0x1f88   :  { %v8404_v36 = vpop.eup %8403  ;;  %v4878_v50 = vsel %vm638_vm5, %v8402_v56, 0.0 }
0x1f89   :  { %4879 = vadd.xlane.f32.xlu1 %v4878_v50  ;;  %v4875_v14 = vsel %vm638_vm5, %v8404_v36, 0.0 }
0x1f8a   :  { %4876 = vadd.xlane.f32.xlu0 %v4875_v14 }
0x1f9a   :  { %5054 = vrot.lane.b32.xlu1 %v9362_v4, %s8460_s23 }
0x1fa0   :  { %5052 = vrot.lane.b32.xlu0 %v9354_v28, %s8460_s23 }
0x2016   :  { %v4880_v29 = vpop.xlane.xlu1 %4879 }
0x2017   :  { %8405 = vrcp.f32 %v4880_v29  ;;  %v4877_v27 = vpop.xlane.xlu0 %4876 }
0x2018   :  { %8407 = vrcp.f32 %v4877_v27 }
0x201a   :  { %v5055_v39 = vpop.permute.xlu1 %5054 }
0x201b   :  { %v5053_v46 = vpop.permute.xlu0 %5052 }
0x2021   :  { %v8406_v32 = vpop.eup %8405 }
0x2022   :  { %v8408_v37 = vpop.eup %8407  ;;  %v4884_v33 = vmul.f32 %v8406_v32, %v8402_v56 }
0x2023   :  { %v4882_v35 = vmul.f32 %v8408_v37, %v8404_v36 }
0x2025   :  { %7908 = vmatprep.mubr.msk.f32.mxu1 %vm638_vm5, %v4882_v35 }
0x2026   :  { %7909 = vmatmul.mubr.msk.f32.vlgmr.msra.gmra.mrb[52].mxu1 %vm638_vm5, %v4884_v33 }
0x2027   :  { %7912 = vmatpush3.msra.mxu1 %v9137_v47 }
0x2028   :  { %7916 = vmatprep.subr.mxu1 %v9350_v60 }
0x20f9   :  { %v7910_v44 = vpop.f32.mrb[52].mxu1 }
0x20fa   :  { %v4960_v45 = vpop.f32.mrb[53].mxu1 }
0x20fb   :  { %7913 = vmatprep.mubr.msk.f32.mxu1 %vm554_vm4, %v4960_v45 }
0x20fc   :  { %7914 = vmatmul.mubr.msk.f32.vlgmr.msra.gmra.mrb[54].mxu1 %vm554_vm4, %v7910_v44 }
0x20fd   :  { %7917 = vmatpush3.msra.mxu1 %v9350_v60  ;;  %7918 = vmatprep.mubr.msk.f32.mxu1 %vm554_vm4, %v5053_v46  ;;  %v7900_v60 = vpop.f32.mrb[62].mxu0  ;;  %v3372_v46 = vld [vmem:[%s9707_s1 + $0x26d] sm:$0x1] }
0x20fe   :  { %7926 = vmatprep.subr.mxu1 %v9142_v48  ;;  %v4771_v15 = vpop.f32.mrb[63].mxu0 }
0x2100   :  { %7919 = vmatmul.mubr.msk.f32.vlgmr.msra.gmra.mrb[56].mxu1 %vm554_vm4, %v5055_v39 }
0x2101   :  { %7927 = vmatpush3.msra.mxu1 %v9142_v48 }
0x2102   :  { %7936 = vmatprep.subr.msk.mxu1 %vm638_vm5, %v4771_v15 }
0x21d3   :  { %v7920_v47 = vpop.f32.mrb[56].mxu1 }
0x21d4   :  { %v5136_v38 = vmul.f32 0.35355338, %v7920_v47  ;;  %v5126_v62 = vpop.f32.mrb[57].mxu1 }
0x21d5   :  { %v5135_v5 = vmul.f32 0.35355338, %v5126_v62  ;;  %v3443_v62 = vadd.f32 %v9231_v40, %v3372_v46 }
0x21d6   :  { %v5140_v49 = vsel %vm638_vm5, %v5136_v38, -inf }
0x21d7   :  { %5141 = vmax.xlane.f32.xlu0 %v5140_v49  ;;  %v5137_v51 = vsel %vm638_vm5, %v5135_v5, -inf }
0x21d8   :  { %5138 = vmax.xlane.f32.xlu1 %v5137_v51  ;;  %v3848_v51 = vrot.slane %v3443_v62, %v828_v55 }
0x2264   :  { %v5142_v52 = vpop.xlane.xlu0 %5141 }
0x2265   :  { %v5144_v53 = vsub.f32 %v5136_v38, %v5142_v52  ;;  %v5139_v18 = vpop.xlane.xlu1 %5138 }
0x2266   :  { %v5143_v20 = vsub.f32 %v5135_v5, %v5139_v18  ;;  %v8240_v18 = vadd.f32 %v9368_v1, %v3848_v51 }
0x2267   :  { %v5147_v21 = vmul.f32 1.442695, %v5144_v53 }
0x2268   :  { %v5145_v34 = vmul.f32 1.442695, %v5143_v20  ;;  %v9442_v40 = vadd.f32 %v8240_v18, %v9091_v17 }
0x2269   :  { %8409 = vpow2.f32 %v5147_v21 }
0x226a   :  { %8411 = vpow2.f32 %v5145_v34  ;;  %v8239_v34 = vadd.f32 %v9366_v7, %v3848_v51  ;;  %v5878_v1 = vsel %vm162_vm1, %v9442_v40, 0.0 }
0x226c   :  { %v9446_v55 = vadd.f32 %v8239_v34, %v9089_v54 }
0x226e   :  { %v5881_v7 = vsel %vm162_vm1, %v9446_v55, 0.0 }
0x2273   :  { %v8410_v22 = vpop.eup %8409 }
0x2274   :  { %v8412_v48 = vpop.eup %8411  ;;  %v5152_v58 = vsel %vm638_vm5, %v8410_v22, 0.0 }
0x2275   :  { %5153 = vadd.xlane.f32.xlu1 %v5152_v58  ;;  %v5149_v59 = vsel %vm638_vm5, %v8412_v48, 0.0 }
0x2276   :  { %5150 = vadd.xlane.f32.xlu0 %v5149_v59 }
0x2286   :  { %5328 = vrot.lane.b32.xlu1 %v9362_v4, %s8461_s24 }
0x228a   :  { %5600 = vrot.lane.b32.xlu1 %v9354_v28, %s8462_s25 }
0x228c   :  { %5326 = vrot.lane.b32.xlu0 %v9354_v28, %s8461_s24 }
0x228e   :  { %5602 = vrot.lane.b32.xlu1 %v9362_v4, %s8462_s25 }
0x2302   :  { %v5154_v6 = vpop.xlane.xlu1 %5153 }
0x2303   :  { %8413 = vrcp.f32 %v5154_v6  ;;  %v5151_v16 = vpop.xlane.xlu0 %5150 }
0x2304   :  { %8415 = vrcp.f32 %v5151_v16 }
0x2306   :  { %v5329_v0 = vpop.permute.xlu1 %5328 }
0x2307   :  { %v5327_v8 = vpop.permute.xlu0 %5326 }
0x230a   :  { %v5601_v28 = vpop.permute.xlu1 %5600 }
0x230d   :  { %v8414_v26 = vpop.eup %8413 }
0x230e   :  { %v8416_v63 = vpop.eup %8415  ;;  %v5158_v31 = vmul.f32 %v8414_v26, %v8410_v22  ;;  %v5603_v4 = vpop.permute.xlu1 %5602 }
0x230f   :  { %v5156_v43 = vmul.f32 %v8416_v63, %v8412_v48 }
0x2311   :  { %7923 = vmatprep.mubr.msk.f32.mxu0 %vm638_vm5, %v5156_v43 }
0x2312   :  { %7924 = vmatmul.mubr.msk.f32.vlgmr.msra.gmra.mrb[64].mxu0 %vm638_vm5, %v5158_v31 }
0x2313   :  { %7932 = vmatpush3.msra.mxu0 %v9378_v24  ;;  %7933 = vmatprep.mubr.msk.f32.mxu0 %vm554_vm4, %v5327_v8 }
0x2314   :  { %7946 = vmatprep.subr.mxu0 %v9374_v42 }
0x2316   :  { %7934 = vmatmul.mubr.msk.f32.vlgmr.msra.gmra.mrb[66].mxu0 %vm554_vm4, %v5329_v0 }
0x2317   :  { %7947 = vmatpush3.msra.mxu0 %v9374_v42  ;;  %7948 = vmatprep.mubr.msk.f32.mxu0 %vm554_vm4, %v5601_v28 }
0x2318   :  { %7951 = vmatprep.subr.msk.mxu0 %vm638_vm5, %v7900_v60 }
0x231a   :  { %7949 = vmatmul.mubr.msk.f32.vlgmr.msra.gmra.mrb[68].mxu0 %vm554_vm4, %v5603_v4 }
0x231e   :  { %7952 = vmatpush3.xpose.msk.msra.mxu0 %vm638_vm5, %v7900_v60 }
0x23e5   :  { %v7925_v3 = vpop.f32.mrb[64].mxu0 }
0x23e6   :  { %v5234_v23 = vpop.f32.mrb[65].mxu0 }
0x23e7   :  { %7928 = vmatprep.mubr.msk.f32.mxu1 %vm554_vm4, %v5234_v23 }
0x23e8   :  { %7929 = vmatmul.mubr.msk.f32.vlgmr.msra.gmra.mrb[54].mxu1 %vm554_vm4, %v7925_v3 }
0x23e9   :  { %v7935_v30 = vpop.f32.mrb[66].mxu0  ;;  %7937 = vmatpush3.xpose.msk.msra.mxu1 %vm638_vm5, %v4771_v15 }
0x23ea   :  { %v5410_v11 = vmul.f32 0.35355338, %v7935_v30  ;;  %v5400_v41 = vpop.f32.mrb[67].mxu0  ;;  %7941 = vmatprep.subr.mxu1 %v9149_v57 }
0x23eb   :  { %v5409_v61 = vmul.f32 0.35355338, %v5400_v41 }
0x23ec   :  { %v5414_v56 = vsel %vm638_vm5, %v5410_v11, -inf }
0x23ed   :  { %5415 = vmax.xlane.f32.xlu1 %v5414_v56  ;;  %v7950_v36 = vpop.f32.mrb[68].mxu0  ;;  %v5411_v50 = vsel %vm638_vm5, %v5409_v61, -inf }
0x23ee   :  { %5412 = vmax.xlane.f32.xlu0 %v5411_v50  ;;  %v5674_v14 = vpop.f32.mrb[69].mxu0  ;;  %v5684_v24 = vmul.f32 0.35355338, %v7950_v36 }
0x23ef   :  { %v5683_v42 = vmul.f32 0.35355338, %v5674_v14 }
0x23f0   :  { %v5688_v25 = vsel %vm638_vm5, %v5684_v24, -inf }
0x23f1   :  { %v5685_v10 = vsel %vm638_vm5, %v5683_v42, -inf }
0x23f2   :  { %5686 = vmax.xlane.f32.xlu0 %v5685_v10 }
0x23f6   :  { %5689 = vmax.xlane.f32.xlu0 %v5688_v25 }
0x247a   :  { %v5416_v29 = vpop.xlane.xlu1 %5415 }
0x247b   :  { %v5418_v27 = vsub.f32 %v5410_v11, %v5416_v29  ;;  %v5413_v32 = vpop.xlane.xlu0 %5412 }
0x247c   :  { %v5417_v37 = vsub.f32 %v5409_v61, %v5413_v32 }
0x247d   :  { %v5421_v35 = vmul.f32 1.442695, %v5418_v27 }
0x247e   :  { %v5419_v33 = vmul.f32 1.442695, %v5417_v37  ;;  %v5948_v37 = vld [vmem:[%s9709_s2 + $0x31] sm:$0xff] }
0x247f   :  { %8417 = vpow2.f32 %v5421_v35  ;;  %v5687_v44 = vpop.xlane.xlu0 %5686  ;;  %v5949_v35 = vld [vmem:[%s9709_s2 + $0x39] sm:$0xff] }
0x2480   :  { %8419 = vpow2.f32 %v5419_v33  ;;  %v5691_v45 = vsub.f32 %v5683_v42, %v5687_v44  ;;  %v8159_v33 = vpack.c.bf16 %v5949_v35, %v5948_v37 }
0x2482   :  { %v5693_v39 = vmul.f32 1.442695, %v5691_v45 }
0x2483   :  { %v5690_v47 = vpop.xlane.xlu0 %5689 }
0x2484   :  { %8421 = vpow2.f32 %v5693_v39  ;;  %v5692_v38 = vsub.f32 %v5684_v24, %v5690_v47 }
0x2486   :  { %v5695_v5 = vmul.f32 1.442695, %v5692_v38 }
0x2488   :  { %8423 = vpow2.f32 %v5695_v5 }
0x2489   :  { %v8418_v49 = vpop.eup %8417 }
0x248a   :  { %v8420_v52 = vpop.eup %8419  ;;  %v5426_v53 = vsel %vm638_vm5, %v8418_v49, 0.0 }
0x248b   :  { %5427 = vadd.xlane.f32.xlu1 %v5426_v53  ;;  %v5423_v20 = vsel %vm638_vm5, %v8420_v52, 0.0 }
0x248c   :  { %5424 = vadd.xlane.f32.xlu0 %v5423_v20 }
0x248e   :  { %v8422_v21 = vpop.eup %8421 }
0x248f   :  { %v5697_v22 = vsel %vm638_vm5, %v8422_v21, 0.0 }
0x2490   :  { %5698 = vadd.xlane.f32.xlu0 %v5697_v22 }
0x2492   :  { %v8424_v19 = vpop.eup %8423 }
0x2493   :  { %v5700_v48 = vsel %vm638_vm5, %v8424_v19, 0.0 }
0x2494   :  { %5879 = vadd.xlane.f32.xlu0 %v5878_v1  ;;  %5701 = vadd.xlane.f32.xlu1 %v5700_v48 }
0x2498   :  { %5882 = vadd.xlane.f32.xlu1 %v5881_v7 }
0x2518   :  { %v5428_v17 = vpop.xlane.xlu1 %5427 }
0x2519   :  { %8425 = vrcp.f32 %v5428_v17  ;;  %v5425_v58 = vpop.xlane.xlu0 %5424  ;;  %v7259_v17 = vld [vmem:[%s9707_s1 + $0x26f] ss:$0 sm:$0xff] }
0x251a   :  { %8427 = vrcp.f32 %v5425_v58 }
0x251d   :  { %v5699_v59 = vpop.xlane.xlu0 %5698 }
0x251e   :  { %8429 = vrcp.f32 %v5699_v59 }
0x2521   :  { %v5702_v60 = vpop.xlane.xlu1 %5701  ;;  %v5880_v3 = vpop.xlane.xlu0 %5879 }
0x2522   :  { %8431 = vrcp.f32 %v5702_v60  ;;  %v5890_v30 = vmul.f32 0.03125, %v5880_v3  ;;  %v6096_v3 = vld [vmem:[%s9707_s1 + $0x2b0] sm:$0xff] }
0x2523   :  { %v8426_v54 = vpop.eup %8425 }
0x2524   :  { %v8428_v15 = vpop.eup %8427  ;;  %v5432_v16 = vmul.f32 %v8426_v54, %v8418_v49  ;;  %v5894_v36 = vsub.f32 %v9442_v40, %v5890_v30 }
0x2525   :  { %v5430_v6 = vmul.f32 %v8428_v15, %v8420_v52  ;;  %v6088_v15 = vld [vmem:[%s9707_s1 + $0x270] sm:$0xff] }
0x2526   :  { %v5898_v25 = vmul.f32 %v5894_v36, %v5894_v36 }
0x2527   :  { %7938 = vmatprep.mubr.msk.f32.mxu1 %vm638_vm5, %v5430_v6  ;;  %v6089_v6 = vld [vmem:[%s9707_s1 + $0x278] sm:$0xff] }
0x2528   :  { %v8430_v26 = vpop.eup %8429  ;;  %7939 = vmatmul.mubr.msk.f32.vlgmr.msra.gmra.mrb[58].mxu1 %vm638_vm5, %v5432_v16  ;;  %v5902_v27 = vsel %vm162_vm1, %v5898_v25, 0.0  ;;  %v8163_v16 = vpack.c.bf16 %v6089_v6, %v6088_v15 }
0x2529   :  { %v5704_v0 = vmul.f32 %v8430_v26, %v8422_v21  ;;  %7942 = vmatpush3.msra.mxu1 %v9149_v57  ;;  %v5883_v57 = vpop.xlane.xlu1 %5882  ;;  %v6090_v26 = vld [vmem:[%s9707_s1 + $0x280] sm:$0xff] }
0x252a   :  { %7956 = vmatprep.subr.mxu1 %v9154_v12  ;;  %v5891_v23 = vmul.f32 0.03125, %v5883_v57 }
0x252b   :  { %7953 = vmatprep.mubr.msk.f32.mxu0 %vm638_vm5, %v5704_v0  ;;  %v6091_v0 = vld [vmem:[%s9707_s1 + $0x288] sm:$0xff] }
0x252c   :  { %v8432_v63 = vpop.eup %8431  ;;  %v5895_v41 = vsub.f32 %v9446_v55, %v5891_v23  ;;  %v6097_v23 = vld [vmem:[%s9707_s1 + $0x2b8] sm:$0xff] }
0x252d   :  { %v5706_v43 = vmul.f32 %v8432_v63, %v8424_v19  ;;  %v9505_v19 = vld [vmem:[%s9707_s1 + $0x26e] ss:$0 sm:$0xff]  ;;  %v8167_v63 = vpack.c.bf16 %v6091_v0, %v6090_v26  ;;  %v8179_v30 = vpack.c.bf16 %v6097_v23, %v6096_v3 }
0x252e   :  { %v5899_v24 = vmul.f32 %v5895_v41, %v5895_v41 }
0x252f   :  { %7954 = vmatmul.mubr.msk.f32.vlgmr.msra.gmra.mrb[70].mxu0 %vm638_vm5, %v5706_v43  ;;  %v6092_v43 = vld [vmem:[%s9707_s1 + $0x290] sm:$0xff] }
0x2530   :  { %v5905_v29 = vsel %vm162_vm1, %v5899_v24, 0.0  ;;  %v6103_v24 = vld [vmem:[%s9707_s1 + $0x2e8] sm:$0xff] }
0x25fb   :  { %v7940_v31 = vpop.f32.mrb[58].mxu1 }
0x25fc   :  { %v5508_v8 = vpop.f32.mrb[59].mxu1 }
0x25fd   :  { %7943 = vmatprep.mubr.msk.f32.mxu1 %vm554_vm4, %v5508_v8 }
0x25fe   :  { %7944 = vmatmul.mubr.msk.f32.vlgmr.msra.gmra.mrb[54].mxu1 %vm554_vm4, %v7940_v31  ;;  %v6093_v31 = vld [vmem:[%s9707_s1 + $0x298] sm:$0xff] }
0x25ff   :  { %7957 = vmatpush3.msra.mxu1 %v9154_v12  ;;  %v8171_v8 = vpack.c.bf16 %v6093_v31, %v6092_v43 }
0x2600   :  { %8164 = vmatprep.subr.bf16.mxu1 %v8163_v16 }
0x2602   :  { %v7955_v28 = vpop.f32.mrb[70].mxu0 }
0x2603   :  { %v5782_v4 = vpop.f32.mrb[71].mxu0 }
0x2604   :  { %7958 = vmatprep.mubr.msk.f32.mxu1 %vm554_vm4, %v5782_v4  ;;  %v6095_v4 = vld [vmem:[%s9707_s1 + $0x2a8] sm:$0xff] }
0x2606   :  { %7959 = vmatmul.mubr.msk.f32.vlgmr.msra.gmra.mrb[54].mxu1 %vm554_vm4, %v7955_v28  ;;  %v6094_v28 = vld [vmem:[%s9707_s1 + $0x2a0] sm:$0xff] }
0x2607   :  { %8166 = vmatpush3.bf16.msra.mxu1 %v8163_v16  ;;  %v8175_v57 = vpack.c.bf16 %v6095_v4, %v6094_v28 }
0x2608   :  { %8168 = vmatprep.subr.bf16.mxu1 %v8167_v63 }
0x260b   :  { %8170 = vmatpush3.bf16.msra.mxu1 %v8167_v63 }
0x260c   :  { %8172 = vmatprep.subr.bf16.mxu1 %v8171_v8 }
0x260f   :  { %8174 = vmatpush3.bf16.msra.mxu1 %v8171_v8 }
0x2610   :  { %8176 = vmatprep.subr.bf16.mxu1 %v8175_v57 }
0x2613   :  { %8178 = vmatpush3.bf16.msra.mxu1 %v8175_v57 }
0x2614   :  { %8180 = vmatprep.subr.bf16.mxu1 %v8179_v30 }
0x2617   :  { %8182 = vmatpush3.bf16.msra.mxu1 %v8179_v30 }
0x26d9   :  { %v7960_v11 = vpop.f32.mrb[54].mxu1 }
0x26da   :  { %v8241_v61 = vadd.f32 %v7960_v11, %v3848_v51  ;;  %v5863_v56 = vpop.f32.mrb[55].mxu1  ;;  %v6098_v11 = vld [vmem:[%s9707_s1 + $0x2c0] sm:$0xff] }
0x26db   :  { %v8242_v50 = vadd.f32 %v5863_v56, %v3848_v51  ;;  %v6100_v56 = vld [vmem:[%s9707_s1 + $0x2d0] sm:$0xff] }
0x26dc   :  { %v9467_v12 = vadd.f32 %v8241_v61, %v9099_v9  ;;  %v5946_v9 = vld [vmem:[%s9709_s2 + $0x21] sm:$0xff] }
0x26dd   :  { %v9470_v14 = vadd.f32 %v8242_v50, %v9101_v2  ;;  %v5947_v2 = vld [vmem:[%s9709_s2 + $0x29] sm:$0xff] }
0x26de   :  { %v5887_v42 = vsel %vm162_vm1, %v9467_v12, 0.0  ;;  %v8155_v32 = vpack.c.bf16 %v5947_v2, %v5946_v9 }
0x26df   :  { %5888 = vadd.xlane.f32.xlu1 %v5887_v42  ;;  %v5884_v10 = vsel %vm162_vm1, %v9470_v14, 0.0  ;;  %v6102_v42 = vld [vmem:[%s9707_s1 + $0x2e0] sm:$0xff] }
0x26e0   :  { %5885 = vadd.xlane.f32.xlu0 %v5884_v10  ;;  %8156 = vmatprep.subr.bf16.mxu0 %v8155_v32  ;;  %v8191_v10 = vpack.c.bf16 %v6103_v24, %v6102_v42 }
0x26e1   :  { %8158 = vmatpush3.bf16.msra.mxu0 %v8155_v32 }
0x26e2   :  { %8160 = vmatprep.subr.bf16.mxu0 %v8159_v33 }
0x26e3   :  { %5906 = vadd.xlane.f32.xlu1 %v5905_v29 }
0x26e4   :  { %5903 = vadd.xlane.f32.xlu0 %v5902_v27 }
0x26e5   :  { %8162 = vmatpush3.bf16.msra.mxu0 %v8159_v33 }
0x276c   :  { %v5889_v44 = vpop.xlane.xlu1 %5888 }
0x276d   :  { %v5893_v45 = vmul.f32 0.03125, %v5889_v44  ;;  %v5886_v46 = vpop.xlane.xlu0 %5885 }
0x276e   :  { %v5892_v39 = vmul.f32 0.03125, %v5886_v46 }
0x276f   :  { %v9491_v47 = vsub.f32 %v9467_v12, %v5893_v45 }
0x2770   :  { %v9494_v38 = vsub.f32 %v9470_v14, %v5892_v39  ;;  %v5907_v62 = vpop.xlane.xlu1 %5906 }
0x2771   :  { %v5915_v5 = vmul.f32 0.03125, %v5907_v62  ;;  %v5904_v49 = vpop.xlane.xlu0 %5903  ;;  %v5901_v51 = vmul.f32 %v9491_v47, %v9491_v47 }
0x2772   :  { %v5914_v52 = vmul.f32 0.03125, %v5904_v49  ;;  %v5900_v53 = vmul.f32 %v9494_v38, %v9494_v38 }
0x2773   :  { %v5919_v18 = vadd.f32 1e-06, %v5915_v5  ;;  %v5911_v20 = vsel %vm162_vm1, %v5901_v51, 0.0  ;;  %v7260_v5 = vld [vmem:[%s9709_s2 + $0x41] ss:$0 sm:$0xff] }
0x2774   :  { %v5918_v21 = vadd.f32 1e-06, %v5914_v52  ;;  %5912 = vadd.xlane.f32.xlu1 %v5911_v20  ;;  %v5908_v34 = vsel %vm162_vm1, %v5900_v53, 0.0 }
0x2775   :  { %8433 = vrsqrt.f32 %v5919_v18  ;;  %5909 = vadd.xlane.f32.xlu0 %v5908_v34 }
0x2776   :  { %8435 = vrsqrt.f32 %v5918_v21 }
0x277f   :  { %v8434_v22 = vpop.eup %8433 }
0x2780   :  { %v8436_v1 = vpop.eup %8435  ;;  %v5927_v48 = vmul.f32 %v8434_v22, %v5895_v41  ;;  %v6099_v41 = vld [vmem:[%s9707_s1 + $0x2c8] sm:$0xff] }
0x2781   :  { %v5926_v7 = vmul.f32 %v8436_v1, %v5894_v36  ;;  %v8183_v61 = vpack.c.bf16 %v6099_v41, %v6098_v11  ;;  %v6101_v36 = vld [vmem:[%s9707_s1 + $0x2d8] sm:$0xff] }
0x2782   :  { %v5935_v58 = vmul.f32 %v9505_v19, %v5927_v48  ;;  %v8187_v50 = vpack.c.bf16 %v6101_v36, %v6100_v56 }
0x2783   :  { %v5934_v59 = vmul.f32 %v9505_v19, %v5926_v7  ;;  %8184 = vmatprep.subr.bf16.mxu1 %v8183_v61 }
0x2784   :  { %v5943_v54 = vadd.f32 %v7259_v17, %v5935_v58  ;;  %8186 = vmatpush3.bf16.msra.mxu1 %v8183_v61 }
0x2785   :  { %v5942_v60 = vadd.f32 %v7259_v17, %v5934_v59  ;;  %8188 = vmatprep.subr.bf16.mxu1 %v8187_v50 }
0x2787   :  { %7969 = vmatprep.mubr.msk.f32.mxu0 %vm162_vm1, %v5942_v60 }
0x2788   :  { %7970 = vmatmul.mubr.msk.f32.vlgmr.msra.gmra.mrb[72].mxu0 %vm162_vm1, %v5943_v54  ;;  %8190 = vmatpush3.bf16.msra.mxu1 %v8187_v50 }
0x2789   :  { %8192 = vmatprep.subr.bf16.mxu1 %v8191_v10 }
0x278c   :  { %8194 = vmatpush3.bf16.msra.mxu1 %v8191_v10 }
0x2801   :  { %v5913_v25 = vpop.xlane.xlu1 %5912 }
0x2802   :  { %v5917_v29 = vmul.f32 0.03125, %v5913_v25  ;;  %v5910_v27 = vpop.xlane.xlu0 %5909 }
0x2803   :  { %v5916_v9 = vmul.f32 0.03125, %v5910_v27 }
0x2804   :  { %v5921_v2 = vadd.f32 1e-06, %v5917_v29  ;;  %v7265_v29 = vld [vmem:[%s9707_s1 + $0x2f0] ss:$0 sm:$0xff] }
0x2805   :  { %v5920_v32 = vadd.f32 1e-06, %v5916_v9 }
0x2806   :  { %8437 = vrsqrt.f32 %v5921_v2 }
0x2807   :  { %8439 = vrsqrt.f32 %v5920_v32 }
0x2810   :  { %v8438_v37 = vpop.eup %8437 }
0x2811   :  { %v8440_v35 = vpop.eup %8439  ;;  %v5929_v33 = vmul.f32 %v8438_v37, %v9491_v47 }
0x2812   :  { %v5928_v44 = vmul.f32 %v8440_v35, %v9494_v38 }
0x2813   :  { %v5937_v45 = vmul.f32 %v9505_v19, %v5929_v33 }
0x2814   :  { %v5936_v46 = vmul.f32 %v9505_v19, %v5928_v44 }
0x2815   :  { %v5945_v62 = vadd.f32 %v7259_v17, %v5937_v45 }
0x2816   :  { %v5944_v39 = vadd.f32 %v7259_v17, %v5936_v46 }
0x2818   :  { %7972 = vmatprep.mubr.msk.f32.mxu0 %vm162_vm1, %v5944_v39 }
0x2819   :  { %7973 = vmatmul.mubr.msk.f32.gmra.mrb[74].mxu0 %vm162_vm1, %v5945_v62 }
0x285b   :  { %v7971_v49 = vpop.f32.mrb[72].mxu0 }
0x285c   :  { %v6039_v51 = vadd.f32 %v7971_v49, %v7260_v5  ;;  %v6033_v52 = vpop.f32.mrb[73].mxu0 }
0x285d   :  { %v6034_v47 = vadd.f32 %v7260_v5, %v6033_v52 }
0x285e   :  { %v6057_v53 = vmul.f32 0.044715, %v6039_v51  ;;  %v6053_v54 = vmul.f32 0.5, %v6039_v51 }
0x285f   :  { %v6056_v38 = vmul.f32 0.044715, %v6034_v47  ;;  %v6052_v59 = vmul.f32 0.5, %v6034_v47 }
0x2860   :  { %v6061_v18 = vmul.f32 %v6057_v53, %v6039_v51 }
0x2861   :  { %v6060_v20 = vmul.f32 %v6056_v38, %v6034_v47 }
0x2862   :  { %v6065_v21 = vmul.f32 %v6061_v18, %v6039_v51 }
0x2863   :  { %v6064_v34 = vmul.f32 %v6060_v20, %v6034_v47 }
0x2864   :  { %v6069_v22 = vadd.f32 %v6065_v21, %v6039_v51  ;;  %v6272_v21 = vld [vmem:[%s9707_s1 + $0x2f3] sm:$0xff] }
0x2865   :  { %v6068_v19 = vadd.f32 %v6064_v34, %v6034_v47  ;;  %v6273_v34 = vld [vmem:[%s9707_s1 + $0x2fb] sm:$0xff] }
0x2866   :  { %v6073_v1 = vmul.f32 0.7978846, %v6069_v22  ;;  %v8195_v22 = vpack.c.bf16 %v6273_v34, %v6272_v21  ;;  %v6385_v21 = vld [vmem:[%s9710_s3 + $0x38] sm:$0xff] }
0x2867   :  { %v6072_v48 = vmul.f32 0.7978846, %v6068_v19  ;;  %v6274_v19 = vld [vmem:[%s9707_s1 + $0x303] sm:$0xff]  ;;  %v6393_v34 = vld [vmem:[%s9710_s3 + $0x78] sm:$0xff] }
0x2868   :  { %8441 = vtanh.f32 %v6073_v1  ;;  %v6275_v1 = vld [vmem:[%s9707_s1 + $0x30b] sm:$0xff]  ;;  %8196 = vmatprep.subr.bf16.mxu0 %v8195_v22 }
0x2869   :  { %8443 = vtanh.f32 %v6072_v48  ;;  %v8199_v48 = vpack.c.bf16 %v6275_v1, %v6274_v19  ;;  %8198 = vmatpush3.bf16.msra.mxu0 %v8195_v22  ;;  %v8215_v22 = vpack.c.bf16 %v6393_v34, %v6385_v21  ;;  %v6383_v19 = vld [vmem:[%s9710_s3 + $0x28] sm:$0xff] }
0x286a   :  { %v6391_v1 = vld [vmem:[%s9710_s3 + $0x68] sm:$0xff] }
0x286b   :  { %8200 = vmatprep.subr.bf16.mxu0 %v8199_v48 }
0x286d   :  { %8202 = vmatpush3.bf16.msra.mxu0 %v8199_v48  ;;  %v8211_v48 = vpack.c.bf16 %v6391_v1, %v6383_v19 }
0x2872   :  { %v8442_v7 = vpop.eup %8441 }
0x2873   :  { %v8444_v17 = vpop.eup %8443  ;;  %v6081_v58 = vadd.f32 1.0, %v8442_v7 }
0x2874   :  { %v6080_v60 = vadd.f32 1.0, %v8444_v17 }
0x2875   :  { %v6085_v6 = vmul.f32 %v6081_v58, %v6053_v54 }
0x2876   :  { %v6084_v15 = vmul.f32 %v6080_v60, %v6052_v59 }
0x2878   :  { %8007 = vmatprep.mubr.f32.mxu1 %v6084_v15 }
0x2879   :  { %8008 = vmatmul.mubr.f32.vlgmr.msra.gmra.mrb[60].mxu1 %v6085_v6 }
0x28ec   :  { %v7974_v16 = vpop.f32.mrb[74].mxu0 }
0x28ed   :  { %v6049_v26 = vadd.f32 %v7974_v16, %v7260_v5  ;;  %v6043_v0 = vpop.f32.mrb[75].mxu0 }
0x28ee   :  { %v6044_v63 = vadd.f32 %v7260_v5, %v6043_v0 }
0x28ef   :  { %v6059_v43 = vmul.f32 0.044715, %v6049_v26  ;;  %v6055_v42 = vmul.f32 0.5, %v6049_v26 }
0x28f0   :  { %v6058_v31 = vmul.f32 0.044715, %v6044_v63  ;;  %v6054_v36 = vmul.f32 0.5, %v6044_v63 }
0x28f1   :  { %v6063_v8 = vmul.f32 %v6059_v43, %v6049_v26 }
0x28f2   :  { %v6062_v28 = vmul.f32 %v6058_v31, %v6044_v63 }
0x28f3   :  { %v6067_v4 = vmul.f32 %v6063_v8, %v6049_v26 }
0x28f4   :  { %v6066_v57 = vmul.f32 %v6062_v28, %v6044_v63 }
0x28f5   :  { %v6071_v3 = vadd.f32 %v6067_v4, %v6049_v26 }
0x28f6   :  { %v6070_v23 = vadd.f32 %v6066_v57, %v6044_v63  ;;  %v7266_v57 = vld [vmem:[%s9707_s1 + $0x2f1] ss:$0 sm:$0xff] }
0x28f7   :  { %v6075_v30 = vmul.f32 0.7978846, %v6071_v3 }
0x28f8   :  { %v6074_v11 = vmul.f32 0.7978846, %v6070_v23 }
0x28f9   :  { %8445 = vtanh.f32 %v6075_v30 }
0x28fa   :  { %8447 = vtanh.f32 %v6074_v11  ;;  %v7267_v11 = vld [vmem:[%s9707_s1 + $0x2f2] ss:$0 sm:$0xff] }
0x2903   :  { %v8446_v41 = vpop.eup %8445 }
0x2904   :  { %v8448_v61 = vpop.eup %8447  ;;  %v6083_v56 = vadd.f32 1.0, %v8446_v41 }
0x2905   :  { %v6082_v50 = vadd.f32 1.0, %v8448_v61 }
0x2906   :  { %v6087_v10 = vmul.f32 %v6083_v56, %v6055_v42 }
0x2907   :  { %v6086_v24 = vmul.f32 %v6082_v50, %v6054_v36 }
0x2909   :  { %8010 = vmatprep.mubr.f32.mxu1 %v6086_v24 }
0x290a   :  { %8011 = vmatmul.mubr.f32.gmra.mrb[62].mxu1 %v6087_v10 }
0x290b   :  { %6883 = vmatprep.mubr.f32.mxu1 %v8459_v13 }
0x294c   :  { %v8009_v25 = vpop.f32.mrb[60].mxu1 }
0x294d   :  { %v6190_v27 = vadd.f32 %v8009_v25, %v9446_v55  ;;  %v6170_v9 = vpop.f32.mrb[61].mxu1 }
0x294e   :  { %v6189_v2 = vadd.f32 %v6170_v9, %v9442_v40 }
0x294f   :  { %v6199_v32 = vadd.f32 %v7265_v29, %v6190_v27 }
0x2950   :  { %v6198_v37 = vadd.f32 %v7265_v29, %v6189_v2 }
0x2951   :  { %v6207_v35 = vsel %vm162_vm1, %v6199_v32, 0.0 }
0x2952   :  { %6208 = vadd.xlane.f32.xlu1 %v6207_v35  ;;  %v6204_v33 = vsel %vm162_vm1, %v6198_v37, 0.0 }
0x2953   :  { %6205 = vadd.xlane.f32.xlu0 %v6204_v33 }
0x29dd   :  { %v8012_v44 = vpop.f32.mrb[62].mxu1 }
0x29de   :  { %v6192_v45 = vadd.f32 %v8012_v44, %v9467_v12  ;;  %v6180_v46 = vpop.f32.mrb[63].mxu1 }
0x29df   :  { %v6191_v39 = vadd.f32 %v6180_v46, %v9470_v14  ;;  %v6209_v62 = vpop.xlane.xlu1 %6208 }
0x29e0   :  { %v6201_v5 = vadd.f32 %v7265_v29, %v6192_v45  ;;  %v6217_v55 = vmul.f32 0.03125, %v6209_v62  ;;  %v6206_v49 = vpop.xlane.xlu0 %6205  ;;  %v7268_v45 = vld [vmem:[%s9707_s1 + $0x313] ss:$0 sm:$0xff] }
0x29e1   :  { %v6200_v51 = vadd.f32 %v7265_v29, %v6191_v39  ;;  %v6216_v40 = vmul.f32 0.03125, %v6206_v49  ;;  %v6387_v49 = vld [vmem:[%s9710_s3 + $0x48] sm:$0xff] }
0x29e2   :  { %v6221_v52 = vsub.f32 %v6199_v32, %v6217_v55  ;;  %v6213_v47 = vsel %vm162_vm1, %v6201_v5, 0.0  ;;  %v6379_v55 = vld [vmem:[%s9710_s3 + $0x8] sm:$0xff] }
0x29e3   :  { %v6220_v53 = vsub.f32 %v6198_v37, %v6216_v40  ;;  %6214 = vadd.xlane.f32.xlu1 %v6213_v47  ;;  %v6210_v38 = vsel %vm162_vm1, %v6200_v51, 0.0  ;;  %v8203_v40 = vpack.c.bf16 %v6387_v49, %v6379_v55  ;;  %v6381_v47 = vld [vmem:[%s9710_s3 + $0x18] sm:$0xff] }
0x29e4   :  { %6211 = vadd.xlane.f32.xlu0 %v6210_v38  ;;  %v6225_v18 = vmul.f32 %v6221_v52, %v6221_v52 }
0x29e5   :  { %v6224_v20 = vmul.f32 %v6220_v53, %v6220_v53  ;;  %8204 = vmatprep.subr.bf16.mxu0 %v8203_v40 }
0x29e6   :  { %v6231_v12 = vsel %vm162_vm1, %v6225_v18, 0.0 }
0x29e7   :  { %6232 = vadd.xlane.f32.xlu1 %v6231_v12  ;;  %v6228_v14 = vsel %vm162_vm1, %v6224_v20, 0.0  ;;  %v6380_v20 = vld [vmem:[%s9710_s3 + $0x10] sm:$0xff] }
0x29e8   :  { %6229 = vadd.xlane.f32.xlu0 %v6228_v14  ;;  %v6388_v12 = vld [vmem:[%s9710_s3 + $0x50] sm:$0xff] }
0x29e9   :  { %v8209_v14 = vpack.c.bf16 %v6388_v12, %v6380_v20 }
0x2a70   :  { %v6215_v7 = vpop.xlane.xlu1 %6214 }
0x2a71   :  { %v6219_v17 = vmul.f32 0.03125, %v6215_v7  ;;  %v6212_v58 = vpop.xlane.xlu0 %6211  ;;  %v6382_v7 = vld [vmem:[%s9710_s3 + $0x20] sm:$0xff] }
0x2a72   :  { %v6218_v59 = vmul.f32 0.03125, %v6212_v58 }
0x2a73   :  { %v6223_v60 = vsub.f32 %v6201_v5, %v6219_v17  ;;  %v6390_v17 = vld [vmem:[%s9710_s3 + $0x60] sm:$0xff] }
0x2a74   :  { %v6222_v54 = vsub.f32 %v6200_v51, %v6218_v59  ;;  %v6233_v15 = vpop.xlane.xlu1 %6232  ;;  %v6378_v51 = vld [vmem:[%s9710_s3] sm:$0xff]  ;;  %v8213_v59 = vpack.c.bf16 %v6390_v17, %v6382_v7 }
0x2a75   :  { %v6241_v6 = vmul.f32 0.03125, %v6233_v15  ;;  %v6230_v16 = vpop.xlane.xlu0 %6229  ;;  %v6227_v26 = vmul.f32 %v6223_v60, %v6223_v60 }
0x2a76   :  { %v6240_v0 = vmul.f32 0.03125, %v6230_v16  ;;  %v6226_v63 = vmul.f32 %v6222_v54, %v6222_v54 }
0x2a77   :  { %v6245_v43 = vadd.f32 1e-06, %v6241_v6  ;;  %v6237_v31 = vsel %vm162_vm1, %v6227_v26, 0.0 }
0x2a78   :  { %v6244_v8 = vadd.f32 1e-06, %v6240_v0  ;;  %6238 = vadd.xlane.f32.xlu1 %v6237_v31  ;;  %v6234_v28 = vsel %vm162_vm1, %v6226_v63, 0.0 }
0x2a79   :  { %8449 = vrsqrt.f32 %v6245_v43  ;;  %6235 = vadd.xlane.f32.xlu0 %v6234_v28 }
0x2a7a   :  { %8451 = vrsqrt.f32 %v6244_v8 }
0x2a83   :  { %v8450_v4 = vpop.eup %8449 }
0x2a84   :  { %v8452_v3 = vpop.eup %8451  ;;  %v6253_v23 = vmul.f32 %v8450_v4, %v6221_v52  ;;  %v6386_v52 = vld [vmem:[%s9710_s3 + $0x40] sm:$0xff] }
0x2a85   :  { %v6252_v30 = vmul.f32 %v8452_v3, %v6220_v53  ;;  %v6389_v53 = vld [vmem:[%s9710_s3 + $0x58] sm:$0xff]  ;;  %v8205_v38 = vpack.c.bf16 %v6386_v52, %v6378_v51 }
0x2a86   :  { %v6261_v41 = vmul.f32 %v7266_v57, %v6253_v23  ;;  %v8207_v18 = vpack.c.bf16 %v6389_v53, %v6381_v47 }
0x2a87   :  { %v6260_v61 = vmul.f32 %v7266_v57, %v6252_v30 }
0x2a88   :  { %v6269_v36 = vadd.f32 %v7267_v11, %v6261_v41  ;;  %8224 = vmatprep.subr.bf16.mxu1 %v8207_v18 }
0x2a89   :  { %v6268_v56 = vadd.f32 %v7267_v11, %v6260_v61  ;;  %8226 = vmatpush1.bf16.msra.mxu1 %v8209_v14 }
0x2a8a   :  { %8232 = vmatprep.subr.bf16.mxu1 %v8215_v22 }
0x2a8b   :  { %8021 = vmatprep.mubr.msk.f32.mxu0 %vm162_vm1, %v6268_v56 }
0x2a8c   :  { %8022 = vmatmul.mubr.msk.f32.vlgmr.msra.gmra.mrb[76].mxu0 %vm162_vm1, %v6269_v36 }
0x2a8d   :  { %8206 = vmatpush1.bf16.msra.mxu0 %v8205_v38 }
0x2a8e   :  { %8208 = vmatprep.subr.bf16.mxu0 %v8207_v18 }
0x2b05   :  { %v6239_v50 = vpop.xlane.xlu1 %6238 }
0x2b06   :  { %v6243_v42 = vmul.f32 0.03125, %v6239_v50  ;;  %v6236_v24 = vpop.xlane.xlu0 %6235 }
0x2b07   :  { %v6242_v10 = vmul.f32 0.03125, %v6236_v24 }
0x2b08   :  { %v6247_v25 = vadd.f32 1e-06, %v6243_v42 }
0x2b09   :  { %v6246_v29 = vadd.f32 1e-06, %v6242_v10 }
0x2b0a   :  { %8453 = vrsqrt.f32 %v6247_v25 }
0x2b0b   :  { %8455 = vrsqrt.f32 %v6246_v29 }
0x2b14   :  { %v8454_v27 = vpop.eup %8453 }
0x2b15   :  { %v8456_v9 = vpop.eup %8455  ;;  %v6255_v2 = vmul.f32 %v8454_v27, %v6223_v60  ;;  %v6384_v60 = vld [vmem:[%s9710_s3 + $0x30] sm:$0xff] }
0x2b16   :  { %v6254_v32 = vmul.f32 %v8456_v9, %v6222_v54  ;;  %v6392_v54 = vld [vmem:[%s9710_s3 + $0x70] sm:$0xff] }
0x2b17   :  { %v6263_v37 = vmul.f32 %v7266_v57, %v6255_v2  ;;  %v8217_v15 = vpack.c.bf16 %v6392_v54, %v6384_v60 }
0x2b18   :  { %v6262_v35 = vmul.f32 %v7266_v57, %v6254_v32 }
0x2b19   :  { %v6271_v44 = vadd.f32 %v7267_v11, %v6263_v37 }
0x2b1a   :  { %v6270_v33 = vadd.f32 %v7267_v11, %v6262_v35 }
0x2b1c   :  { %8024 = vmatprep.mubr.msk.f32.mxu0 %vm162_vm1, %v6270_v33 }
0x2b1d   :  { %8025 = vmatmul.mubr.msk.f32.gmra.mrb[78].mxu0 %vm162_vm1, %v6271_v44 }
0x2b1e   :  { %6493 = vmatprep.mubr.f32.mxu0 %v8459_v13 }
0x2b5f   :  { %v8023_v46 = vpop.f32.mrb[76].mxu0 }
0x2b60   :  { %v6359_v39 = vpop.f32.mrb[77].mxu0  ;;  %v6365_v5 = vadd.f32 %v8023_v46, %v7268_v45 }
0x2b61   :  { %v6360_v62 = vadd.f32 %v7268_v45, %v6359_v39 }
0x2b63   :  { %6394 = vxpose.xlu0.b32.start [1/2] (short) (narrow) %v6360_v62, 8 }
0x2b67   :  { %6395 = vxpose.xlu0.b32.end [2/2] (short) (narrow) %v6365_v5, 8 }
0x2be3   :  { %v6410_v58 = vpop.trf.xlu0 }
0x2be4   :  { %7273 = vmatmul.mubr.msk.f32.vlgmr.msra.gmra.mrb[80].mxu0 %vm638_vm5, %v6410_v58 }
0x2be5   :  { %8210 = vmatpush1.bf16.msra.mxu0 %v8209_v14  ;;  %6564 = vmatprep.mubr.f32.mxu0 %v8459_v13 }
0x2be6   :  { %8212 = vmatprep.subr.bf16.mxu0 %v8211_v48 }
0x2be8   :  { %7274 = vmatmul.mubr.msk.f32.vlgmr.msra.gmra.mrb[82].mxu0 %vm638_vm5, %v6410_v58 }
0x2be9   :  { %8214 = vmatpush1.bf16.msra.mxu0 %v8213_v59  ;;  %6635 = vmatprep.mubr.f32.mxu0 %v8459_v13 }
0x2bea   :  { %8216 = vmatprep.subr.bf16.mxu0 %v8215_v22 }
0x2bec   :  { %7275 = vmatmul.mubr.msk.f32.vlgmr.msra.gmra.mrb[84].mxu0 %vm638_vm5, %v6410_v58 }
0x2bed   :  { %8218 = vmatpush1.bf16.msra.mxu0 %v8217_v15  ;;  %6706 = vmatprep.mubr.f32.mxu0 %v8459_v13 }
0x2bee   :  { %8220 = vmatprep.subr.bf16.mxu0 %v8203_v40 }
0x2bf0   :  { %v8026_v6 = vpop.f32.mrb[78].mxu0  ;;  %7276 = vmatmul.mubr.msk.f32.vlgmr.msra.gmra.mrb[86].mxu0 %vm638_vm5, %v6410_v58 }
0x2bf1   :  { %v6369_v16 = vpop.f32.mrb[79].mxu0  ;;  %8222 = vmatpush1.bf16.msra.mxu0 %v8205_v38  ;;  %6812 = vmatprep.mubr.f32.mxu0 %v8459_v13  ;;  %v6375_v0 = vadd.f32 %v8026_v6, %v7268_v45 }
0x2bf2   :  { %v6370_v26 = vadd.f32 %v7268_v45, %v6369_v16  ;;  %8228 = vmatprep.subr.bf16.mxu0 %v8211_v48 }
0x2bf4   :  { %6713 = vxpose.xlu1.b32.start [1/2] (short) (narrow) %v6370_v26, 8 }
0x2bf8   :  { %6714 = vxpose.xlu1.b32.end [2/2] (short) (narrow) %v6375_v0, 8 }
0x2c74   :  { %v6729_v63 = vpop.trf.xlu1 }
0x2c75   :  { %7277 = vmatmul.mubr.msk.f32.vlgmr.msra.gmra.mrb[88].mxu0 %vm638_vm5, %v6729_v63  ;;  %7278 = vmatmul.mubr.msk.f32.vlgmr.msra.gmra.mrb[64].mxu1 %vm638_vm5, %v6729_v63 }
0x2c76   :  { %8230 = vmatpush1.bf16.msra.mxu0 %v8213_v59  ;;  %8234 = vmatpush1.bf16.msra.mxu1 %v8217_v15 }
0x2c77   :  { %6954 = vmatprep.mubr.f32.mxu0 %v8459_v13  ;;  %7025 = vmatprep.mubr.f32.mxu1 %v8459_v13 }
0x2c79   :  { %7279 = vmatmul.mubr.msk.f32.vlgmr.msra.gmra.mrb[90].mxu0 %vm638_vm5, %v6729_v63  ;;  %7280 = vmatmul.mubr.msk.f32.vlgmr.msra.gmra.mrb[66].mxu1 %vm638_vm5, %v6729_v63 }
0x2cb7   :  { %v6495_v43 = vpop.f32.mrb[80].mxu0 }
0x2cb8   :  { %v6497_v31 = vpop.f32.mrb[81].mxu0 }
0x2cbb   :  { %v6566_v8 = vpop.f32.mrb[82].mxu0 }
0x2cbc   :  { %v6568_v28 = vpop.f32.mrb[83].mxu0 }
0x2cbf   :  { %v6637_v4 = vpop.f32.mrb[84].mxu0 }
0x2cc0   :  { %v6639_v57 = vpop.f32.mrb[85].mxu0 }
0x2cc3   :  { %v6708_v3 = vpop.f32.mrb[86].mxu0 }
0x2cc4   :  { %v6710_v23 = vpop.f32.mrb[87].mxu0 }
0x2d48   :  { %v6814_v30 = vpop.f32.mrb[88].mxu0  ;;  %v6885_v11 = vpop.f32.mrb[64].mxu1 }
0x2d49   :  { %v7040_v41 = vrot.slane %v6814_v30, 4  ;;  %v7042_v61 = vrot.slane %v6885_v11, 4  ;;  %v6816_v56 = vpop.f32.mrb[89].mxu0  ;;  %v6887_v36 = vpop.f32.mrb[65].mxu1 }
0x2d4a   :  { %v7041_v13 = vrot.slane %v6816_v56, 4  ;;  %v7043_v50 = vrot.slane %v6887_v36, 4 }
0x2d4b   :  { %v7057_v42 = vsel %vm7056_vm6, %v6495_v43, %v7040_v41  ;;  %v7059_v24 = vsel %vm7056_vm6, %v6566_v8, %v7042_v61 }
0x2d4c   :  { %7065 = vst [vmem:[%s9711_s4] sm:$0xff] %v7057_v42  ;;  %7067 = vst [vmem:[%s9711_s4 + $0x10] sm:$0xff] %v7059_v24  ;;  %v7058_v10 = vsel %vm7056_vm6, %v6497_v31, %v7041_v13  ;;  %v7060_v25 = vsel %vm7056_vm6, %v6568_v28, %v7043_v50  ;;  %v6956_v29 = vpop.f32.mrb[90].mxu0  ;;  %v7027_v27 = vpop.f32.mrb[66].mxu1 }
0x2d4d   :  { %7066 = vst [vmem:[%s9711_s4 + $0x8] sm:$0xff] %v7058_v10  ;;  %7068 = vst [vmem:[%s9711_s4 + $0x18] sm:$0xff] %v7060_v25  ;;  %v7044_v9 = vrot.slane %v6956_v29, 4  ;;  %v7046_v2 = vrot.slane %v7027_v27, 4  ;;  %v6958_v32 = vpop.f32.mrb[91].mxu0  ;;  %v7029_v37 = vpop.f32.mrb[67].mxu1 }
0x2d4e   :  { %v7045_v35 = vrot.slane %v6958_v32, 4  ;;  %v7047_v33 = vrot.slane %v7029_v37, 4 }
0x2d4f   :  { %v7061_v44 = vsel %vm7056_vm6, %v6637_v4, %v7044_v9  ;;  %v7063_v45 = vsel %vm7056_vm6, %v6708_v3, %v7046_v2 }
0x2d50   :  { %7069 = vst [vmem:[%s9711_s4 + $0x20] sm:$0xff] %v7061_v44  ;;  %7071 = vst [vmem:[%s9711_s4 + $0x30] sm:$0xff] %v7063_v45  ;;  %v7062_v46 = vsel %vm7056_vm6, %v6639_v57, %v7045_v35  ;;  %v7064_v39 = vsel %vm7056_vm6, %v6710_v23, %v7047_v33 }
0x2d51   :  { %7070 = vst [vmem:[%s9711_s4 + $0x28] sm:$0xff] %v7062_v46  ;;  %7072 = vst [vmem:[%s9711_s4 + $0x38] sm:$0xff] %v7064_v39 }

</bundles_post_ra>
